<compile_context>
chip_gen: v5e
topology: v5e:2x2
jax: 0.10.0
libtpu: 0.0.40
codegen_flags: <defaults>
</compile_context>

<pallas_src>
import jax
import jax.numpy as jnp
from jax.experimental import pallas as pl
from jax.experimental.pallas import tpu as pltpu


def decoder_kernel(y_ref, zx_ref, dts_ref, wih_ref, bih_ref, whh_ref, bhh_ref,
                   wfc_ref, bfc_ref, w1_ref, b1_ref, w2_ref, b2_ref,
                   w3_ref, b3_ref, o_ref):
    L, B, _ = y_ref.shape                 # (seq_len, batch, 1)
    R = whh_ref.shape[0]                  # rnn_size
    n_t = o_ref.shape[0]                  # number of ODE time points
    n_steps = n_t - 1

    # ---- GRU over y (h0 = 0), fully unrolled -------------------------------
    whh = whh_ref[...]                    # (R, 3R) fused r|z|n hidden weights
    bhh = bhh_ref[...]                    # (1, 3R)
    wih_r, wih_z, wih_n = wih_ref[0], wih_ref[1], wih_ref[2]   # (1, R) each
    bih_r, bih_z, bih_n = bih_ref[0], bih_ref[1], bih_ref[2]

    def sigmoid(v):                       # single EUP tanh, no f32 divide
        return 0.5 * (jnp.tanh(0.5 * v) + 1.0)

    h = jnp.zeros((B, R), jnp.float32)
    for i in range(L):                    # static trip count -> fully unrolled
        y_i = y_ref[i]                                            # (B, 1)
        gi_r = y_i * wih_r + bih_r                                # (B, R)
        gi_z = y_i * wih_z + bih_z
        gi_n = y_i * wih_n + bih_n
        gh = jnp.dot(h, whh, preferred_element_type=jnp.float32) + bhh
        r = sigmoid(gi_r + gh[:, :R])
        z = sigmoid(gi_z + gh[:, R:2 * R])
        n = jnp.tanh(gi_n + r * gh[:, 2 * R:])
        h = (1.0 - z) * n + z * h

    # ---- zy = fc_y(emb_y) ---------------------------------------------------
    zy = (jnp.dot(h, wfc_ref[...], preferred_element_type=jnp.float32)
          + bfc_ref[...])                                         # (B, H)

    w1, b1 = w1_ref[...], b1_ref[...]
    w2, b2 = w2_ref[...], b2_ref[...]
    w3, b3 = w3_ref[...], b3_ref[...]

    def elu(u):
        return jnp.where(u > 0, u, jnp.exp(u) - 1.0)

    def odefunc(zv):
        u = elu(jnp.dot(zv, w1, preferred_element_type=jnp.float32) + b1)
        u = elu(jnp.dot(u, w2, preferred_element_type=jnp.float32) + b2)
        return jnp.dot(u, w3, preferred_element_type=jnp.float32) + b3

    # ---- fixed-step RK4 over the provided time grid, fused zx reduction ----
    zcur = zy
    o_ref[0] = jnp.sum(zcur * zx_ref[0], axis=-1)                 # (B,)
    for i in range(n_steps):              # static trip count -> fully unrolled
        dt = dts_ref[i]
        half = dts_ref[n_steps + i]
        sixth = dts_ref[2 * n_steps + i]
        k1 = odefunc(zcur)
        k2 = odefunc(zcur + half * k1)
        k3 = odefunc(zcur + half * k2)
        k4 = odefunc(zcur + dt * k3)
        zcur = zcur + sixth * (k1 + 2.0 * (k2 + k3) + k4)
        o_ref[i + 1] = jnp.sum(zcur * zx_ref[i + 1], axis=-1)     # (B,)


def decoder_forward(y, zx, t, params):
    """y: (B, L) f32, zx: (n_t, B, hid) f32, t: (n_t,) f32 -> (n_t, B) f32."""
    B, L = y.shape
    n_t = t.shape[0]
    R = params["gru_w_hh"].shape[1]
    H = params["fc_y_w"].shape[0]

    # Host-side layout prep: sequence-major GRU input, per-gate input-side
    # weights/biases, transposed weights so the kernel computes plain `x @ W`,
    # biases as (1, ...) rows, and precomputed RK4 step scalars for SMEM.
    y_lb1 = jnp.transpose(y)[:, :, None]                  # (L, B, 1)
    wih3 = params["gru_w_ih"].reshape(3, 1, R)            # per-gate (1, R)
    bih3 = params["gru_b_ih"].reshape(3, 1, R)
    whh_t = params["gru_w_hh"].T                          # (R, 3R) fused r|z|n
    bhh = params["gru_b_hh"].reshape(1, 3 * R)
    wfc_t = params["fc_y_w"].T                            # (R, H)
    bfc = params["fc_y_b"].reshape(1, H)
    w1_t = params["fc1_w"].T
    b1 = params["fc1_b"].reshape(1, H)
    w2_t = params["fc2_w"].T
    b2 = params["fc2_b"].reshape(1, H)
    w3_t = params["fc3_w"].T
    b3 = params["fc3_b"].reshape(1, H)
    dt = t[1:] - t[:-1]                                   # (n_t-1,)
    dts = jnp.concatenate([dt, 0.5 * dt, dt / 6.0])       # (3*(n_t-1),)

    vmem = lambda: pl.BlockSpec(memory_space=pltpu.MemorySpace.VMEM)
    smem = lambda: pl.BlockSpec(memory_space=pltpu.MemorySpace.SMEM)

    return pl.pallas_call(
        decoder_kernel,
        out_shape=jax.ShapeDtypeStruct((n_t, B), jnp.float32),
        in_specs=[vmem(), vmem(), smem()] + [vmem() for _ in range(12)],
        out_specs=vmem(),
    )(y_lb1, zx, dts, wih3, bih3, whh_t, bhh, wfc_t, bfc,
      w1_t, b1, w2_t, b2, w3_t, b3)


def reference_forward(y, zx, t, params):
    """Pure-JAX reference mirroring the PyTorch module (RK4 odeint)."""
    B, L = y.shape
    R = params["gru_w_hh"].shape[1]
    w_ih, w_hh = params["gru_w_ih"], params["gru_w_hh"]
    b_ih, b_hh = params["gru_b_ih"], params["gru_b_hh"]
    sig = lambda v: 1.0 / (1.0 + jnp.exp(-v))

    h = jnp.zeros((B, R), jnp.float32)
    for step in range(L):
        x_t = y[:, step:step + 1]                     # (B, 1)
        gi = x_t @ w_ih.T + b_ih                      # (B, 3R)
        gh = h @ w_hh.T + b_hh
        r = sig(gi[:, :R] + gh[:, :R])
        z = sig(gi[:, R:2 * R] + gh[:, R:2 * R])
        n = jnp.tanh(gi[:, 2 * R:] + r * gh[:, 2 * R:])
        h = (1.0 - z) * n + z * h

    zy = h @ params["fc_y_w"].T + params["fc_y_b"]    # (B, H)

    elu = lambda u: jnp.where(u > 0, u, jnp.exp(u) - 1.0)

    def f(z):
        u = elu(z @ params["fc1_w"].T + params["fc1_b"])
        u = elu(u @ params["fc2_w"].T + params["fc2_b"])
        return u @ params["fc3_w"].T + params["fc3_b"]

    states = [zy]
    z = zy
    for i in range(t.shape[0] - 1):
        dt = t[i + 1] - t[i]
        k1 = f(z)
        k2 = f(z + 0.5 * dt * k1)
        k3 = f(z + 0.5 * dt * k2)
        k4 = f(z + dt * k3)
        z = z + (dt / 6.0) * (k1 + 2.0 * (k2 + k3) + k4)
        states.append(z)
    state_t = jnp.stack(states, axis=0)               # (n_t, B, H)
    return jnp.sum(state_t * zx, axis=2)              # (n_t, B)


if __name__ == "__main__":
    # Small shapes consistent with the module's forward:
    B = 2              # batch
    L = 8              # observed sequence length of y
    rnn_size = 32      # GRU hidden size
    hid_size = 32      # ODE latent size
    n_t = 8            # number of requested ODE time points

    key = jax.random.PRNGKey(0)
    ks = jax.random.split(key, 16)
    init = lambda k, shape: (0.1 * jax.random.normal(k, shape)).astype(jnp.float32)

    params = {
        "gru_w_ih": init(ks[0], (3 * rnn_size, 1)),
        "gru_w_hh": init(ks[1], (3 * rnn_size, rnn_size)),
        "gru_b_ih": init(ks[2], (3 * rnn_size,)),
        "gru_b_hh": init(ks[3], (3 * rnn_size,)),
        "fc_y_w": init(ks[4], (hid_size, rnn_size)),
        "fc_y_b": init(ks[5], (hid_size,)),
        "fc1_w": init(ks[6], (hid_size, hid_size)),
        "fc1_b": init(ks[7], (hid_size,)),
        "fc2_w": init(ks[8], (hid_size, hid_size)),
        "fc2_b": init(ks[9], (hid_size,)),
        "fc3_w": init(ks[10], (hid_size, hid_size)),
        "fc3_b": init(ks[11], (hid_size,)),
    }

    y = jax.random.normal(ks[12], (B, L), dtype=jnp.float32)
    zx = jax.random.normal(ks[13], (n_t, B, hid_size), dtype=jnp.float32)
    t = jnp.linspace(0.0, 1.0, n_t, dtype=jnp.float32)

    out = decoder_forward(y, zx, t, params)
    out = jax.block_until_ready(out)

    ref = reference_forward(y, zx, t, params)
    assert out.shape == (n_t, B)
    # Tolerance allows for transcendental-approximation ULP differences
    # (kernel uses the tanh form of sigmoid on the EUP); math is identical f32.
    assert jnp.allclose(out, ref, rtol=1e-3, atol=1e-3), "mismatch vs reference"

    print("KERNEL_OK")
</pallas_src>

<mosaic_0001>
module attributes {stable_mosaic.version = 11 : i64} {
  func.func @decoder_kernel(%arg0: memref<8x2x1xf32, #tpu.memory_space<vmem>>, %arg1: memref<8x2x32xf32, #tpu.memory_space<vmem>>, %arg2: memref<21xf32, #tpu.memory_space<smem>>, %arg3: memref<3x1x32xf32, #tpu.memory_space<vmem>>, %arg4: memref<3x1x32xf32, #tpu.memory_space<vmem>>, %arg5: memref<32x96xf32, #tpu.memory_space<vmem>>, %arg6: memref<1x96xf32, #tpu.memory_space<vmem>>, %arg7: memref<32x32xf32, #tpu.memory_space<vmem>>, %arg8: memref<1x32xf32, #tpu.memory_space<vmem>>, %arg9: memref<32x32xf32, #tpu.memory_space<vmem>>, %arg10: memref<1x32xf32, #tpu.memory_space<vmem>>, %arg11: memref<32x32xf32, #tpu.memory_space<vmem>>, %arg12: memref<1x32xf32, #tpu.memory_space<vmem>>, %arg13: memref<32x32xf32, #tpu.memory_space<vmem>>, %arg14: memref<1x32xf32, #tpu.memory_space<vmem>>, %arg15: memref<8x2xf32, #tpu.memory_space<vmem>>) attributes {dimension_semantics = [], scalar_prefetch = 0 : i64, scratch_operands = 0 : i64, tpu.core_type = #tpu.core_type<tc>} {
    %c0 = arith.constant 0 : index
    %c0_0 = arith.constant 0 : index
    %0 = vector.load %arg5[%c0, %c0_0] : memref<32x96xf32, #tpu.memory_space<vmem>>, vector<32x96xf32>
    %c0_1 = arith.constant 0 : index
    %c0_2 = arith.constant 0 : index
    %1 = vector.load %arg6[%c0_1, %c0_2] : memref<1x96xf32, #tpu.memory_space<vmem>>, vector<1x96xf32>
    %c0_3 = arith.constant 0 : index
    %c0_4 = arith.constant 0 : index
    %c0_5 = arith.constant 0 : index
    %2 = vector.load %arg3[%c0_3, %c0_4, %c0_5] : memref<3x1x32xf32, #tpu.memory_space<vmem>>, vector<1x1x32xf32>
    %3 = vector.shape_cast %2 : vector<1x1x32xf32> to vector<1x32xf32>
    %c1 = arith.constant 1 : index
    %c0_6 = arith.constant 0 : index
    %c0_7 = arith.constant 0 : index
    %4 = vector.load %arg3[%c1, %c0_6, %c0_7] : memref<3x1x32xf32, #tpu.memory_space<vmem>>, vector<1x1x32xf32>
    %5 = vector.shape_cast %4 : vector<1x1x32xf32> to vector<1x32xf32>
    %c2 = arith.constant 2 : index
    %c0_8 = arith.constant 0 : index
    %c0_9 = arith.constant 0 : index
    %6 = vector.load %arg3[%c2, %c0_8, %c0_9] : memref<3x1x32xf32, #tpu.memory_space<vmem>>, vector<1x1x32xf32>
    %7 = vector.shape_cast %6 : vector<1x1x32xf32> to vector<1x32xf32>
    %c0_10 = arith.constant 0 : index
    %c0_11 = arith.constant 0 : index
    %c0_12 = arith.constant 0 : index
    %8 = vector.load %arg4[%c0_10, %c0_11, %c0_12] : memref<3x1x32xf32, #tpu.memory_space<vmem>>, vector<1x1x32xf32>
    %9 = vector.shape_cast %8 : vector<1x1x32xf32> to vector<1x32xf32>
    %c1_13 = arith.constant 1 : index
    %c0_14 = arith.constant 0 : index
    %c0_15 = arith.constant 0 : index
    %10 = vector.load %arg4[%c1_13, %c0_14, %c0_15] : memref<3x1x32xf32, #tpu.memory_space<vmem>>, vector<1x1x32xf32>
    %11 = vector.shape_cast %10 : vector<1x1x32xf32> to vector<1x32xf32>
    %c2_16 = arith.constant 2 : index
    %c0_17 = arith.constant 0 : index
    %c0_18 = arith.constant 0 : index
    %12 = vector.load %arg4[%c2_16, %c0_17, %c0_18] : memref<3x1x32xf32, #tpu.memory_space<vmem>>, vector<1x1x32xf32>
    %13 = vector.shape_cast %12 : vector<1x1x32xf32> to vector<1x32xf32>
    %cst = arith.constant 0.000000e+00 : f32
    %14 = vector.broadcast %cst : f32 to vector<2x32xf32>
    %c0_19 = arith.constant 0 : index
    %c0_20 = arith.constant 0 : index
    %c0_21 = arith.constant 0 : index
    %15 = vector.load %arg0[%c0_19, %c0_20, %c0_21] : memref<8x2x1xf32, #tpu.memory_space<vmem>>, vector<1x2x1xf32>
    %16 = vector.shape_cast %15 : vector<1x2x1xf32> to vector<2x1xf32>
    %17 = vector.broadcast %16 : vector<2x1xf32> to vector<2x32xf32>
    %18 = vector.broadcast %3 : vector<1x32xf32> to vector<2x32xf32>
    %19 = arith.mulf %17, %18 : vector<2x32xf32>
    %20 = vector.broadcast %9 : vector<1x32xf32> to vector<2x32xf32>
    %21 = arith.addf %19, %20 : vector<2x32xf32>
    %22 = vector.broadcast %16 : vector<2x1xf32> to vector<2x32xf32>
    %23 = vector.broadcast %5 : vector<1x32xf32> to vector<2x32xf32>
    %24 = arith.mulf %22, %23 : vector<2x32xf32>
    %25 = vector.broadcast %11 : vector<1x32xf32> to vector<2x32xf32>
    %26 = arith.addf %24, %25 : vector<2x32xf32>
    %27 = vector.broadcast %16 : vector<2x1xf32> to vector<2x32xf32>
    %28 = vector.broadcast %7 : vector<1x32xf32> to vector<2x32xf32>
    %29 = arith.mulf %27, %28 : vector<2x32xf32>
    %30 = vector.broadcast %13 : vector<1x32xf32> to vector<2x32xf32>
    %31 = arith.addf %29, %30 : vector<2x32xf32>
    %cst_22 = arith.constant dense<0.000000e+00> : vector<2x96xf32>
    %32 = tpu.matmul %14, %0, %cst_22 {dimension_numbers = #tpu.dot_dimension_numbers<[1], [0], [0], [1], [0, 0, 1, 1], [], []>} : vector<2x32xf32>, vector<32x96xf32>, vector<2x96xf32> -> vector<2x96xf32>
    %33 = vector.broadcast %1 : vector<1x96xf32> to vector<2x96xf32>
    %34 = arith.addf %32, %33 : vector<2x96xf32>
    %35 = vector.extract_strided_slice %34 {offsets = [0, 0], sizes = [2, 32], strides = [1, 1]} : vector<2x96xf32> to vector<2x32xf32>
    %36 = arith.addf %21, %35 : vector<2x32xf32>
    %cst_23 = arith.constant 5.000000e-01 : f32
    %37 = vector.broadcast %cst_23 : f32 to vector<2x32xf32>
    %38 = arith.mulf %37, %36 : vector<2x32xf32>
    %39 = math.tanh %38 : vector<2x32xf32>
    %cst_24 = arith.constant 1.000000e+00 : f32
    %40 = vector.broadcast %cst_24 : f32 to vector<2x32xf32>
    %41 = arith.addf %39, %40 : vector<2x32xf32>
    %cst_25 = arith.constant 5.000000e-01 : f32
    %42 = vector.broadcast %cst_25 : f32 to vector<2x32xf32>
    %43 = arith.mulf %42, %41 : vector<2x32xf32>
    %44 = vector.extract_strided_slice %34 {offsets = [0, 32], sizes = [2, 32], strides = [1, 1]} : vector<2x96xf32> to vector<2x32xf32>
    %45 = arith.addf %26, %44 : vector<2x32xf32>
    %cst_26 = arith.constant 5.000000e-01 : f32
    %46 = vector.broadcast %cst_26 : f32 to vector<2x32xf32>
    %47 = arith.mulf %46, %45 : vector<2x32xf32>
    %48 = math.tanh %47 : vector<2x32xf32>
    %cst_27 = arith.constant 1.000000e+00 : f32
    %49 = vector.broadcast %cst_27 : f32 to vector<2x32xf32>
    %50 = arith.addf %48, %49 : vector<2x32xf32>
    %cst_28 = arith.constant 5.000000e-01 : f32
    %51 = vector.broadcast %cst_28 : f32 to vector<2x32xf32>
    %52 = arith.mulf %51, %50 : vector<2x32xf32>
    %53 = vector.extract_strided_slice %34 {offsets = [0, 64], sizes = [2, 32], strides = [1, 1]} : vector<2x96xf32> to vector<2x32xf32>
    %54 = arith.mulf %43, %53 : vector<2x32xf32>
    %55 = arith.addf %31, %54 : vector<2x32xf32>
    %56 = math.tanh %55 : vector<2x32xf32>
    %cst_29 = arith.constant 1.000000e+00 : f32
    %57 = vector.broadcast %cst_29 : f32 to vector<2x32xf32>
    %58 = arith.subf %57, %52 : vector<2x32xf32>
    %59 = arith.mulf %58, %56 : vector<2x32xf32>
    %60 = arith.mulf %52, %14 : vector<2x32xf32>
    %61 = arith.addf %59, %60 : vector<2x32xf32>
    %c1_30 = arith.constant 1 : index
    %c0_31 = arith.constant 0 : index
    %c0_32 = arith.constant 0 : index
    %62 = vector.load %arg0[%c1_30, %c0_31, %c0_32] : memref<8x2x1xf32, #tpu.memory_space<vmem>>, vector<1x2x1xf32>
    %63 = vector.shape_cast %62 : vector<1x2x1xf32> to vector<2x1xf32>
    %64 = vector.broadcast %63 : vector<2x1xf32> to vector<2x32xf32>
    %65 = vector.broadcast %3 : vector<1x32xf32> to vector<2x32xf32>
    %66 = arith.mulf %64, %65 : vector<2x32xf32>
    %67 = vector.broadcast %9 : vector<1x32xf32> to vector<2x32xf32>
    %68 = arith.addf %66, %67 : vector<2x32xf32>
    %69 = vector.broadcast %63 : vector<2x1xf32> to vector<2x32xf32>
    %70 = vector.broadcast %5 : vector<1x32xf32> to vector<2x32xf32>
    %71 = arith.mulf %69, %70 : vector<2x32xf32>
    %72 = vector.broadcast %11 : vector<1x32xf32> to vector<2x32xf32>
    %73 = arith.addf %71, %72 : vector<2x32xf32>
    %74 = vector.broadcast %63 : vector<2x1xf32> to vector<2x32xf32>
    %75 = vector.broadcast %7 : vector<1x32xf32> to vector<2x32xf32>
    %76 = arith.mulf %74, %75 : vector<2x32xf32>
    %77 = vector.broadcast %13 : vector<1x32xf32> to vector<2x32xf32>
    %78 = arith.addf %76, %77 : vector<2x32xf32>
    %cst_33 = arith.constant dense<0.000000e+00> : vector<2x96xf32>
    %79 = tpu.matmul %61, %0, %cst_33 {dimension_numbers = #tpu.dot_dimension_numbers<[1], [0], [0], [1], [0, 0, 1, 1], [], []>} : vector<2x32xf32>, vector<32x96xf32>, vector<2x96xf32> -> vector<2x96xf32>
    %80 = vector.broadcast %1 : vector<1x96xf32> to vector<2x96xf32>
    %81 = arith.addf %79, %80 : vector<2x96xf32>
    %82 = vector.extract_strided_slice %81 {offsets = [0, 0], sizes = [2, 32], strides = [1, 1]} : vector<2x96xf32> to vector<2x32xf32>
    %83 = arith.addf %68, %82 : vector<2x32xf32>
    %cst_34 = arith.constant 5.000000e-01 : f32
    %84 = vector.broadcast %cst_34 : f32 to vector<2x32xf32>
    %85 = arith.mulf %84, %83 : vector<2x32xf32>
    %86 = math.tanh %85 : vector<2x32xf32>
    %cst_35 = arith.constant 1.000000e+00 : f32
    %87 = vector.broadcast %cst_35 : f32 to vector<2x32xf32>
    %88 = arith.addf %86, %87 : vector<2x32xf32>
    %cst_36 = arith.constant 5.000000e-01 : f32
    %89 = vector.broadcast %cst_36 : f32 to vector<2x32xf32>
    %90 = arith.mulf %89, %88 : vector<2x32xf32>
    %91 = vector.extract_strided_slice %81 {offsets = [0, 32], sizes = [2, 32], strides = [1, 1]} : vector<2x96xf32> to vector<2x32xf32>
    %92 = arith.addf %73, %91 : vector<2x32xf32>
    %cst_37 = arith.constant 5.000000e-01 : f32
    %93 = vector.broadcast %cst_37 : f32 to vector<2x32xf32>
    %94 = arith.mulf %93, %92 : vector<2x32xf32>
    %95 = math.tanh %94 : vector<2x32xf32>
    %cst_38 = arith.constant 1.000000e+00 : f32
    %96 = vector.broadcast %cst_38 : f32 to vector<2x32xf32>
    %97 = arith.addf %95, %96 : vector<2x32xf32>
    %cst_39 = arith.constant 5.000000e-01 : f32
    %98 = vector.broadcast %cst_39 : f32 to vector<2x32xf32>
    %99 = arith.mulf %98, %97 : vector<2x32xf32>
    %100 = vector.extract_strided_slice %81 {offsets = [0, 64], sizes = [2, 32], strides = [1, 1]} : vector<2x96xf32> to vector<2x32xf32>
    %101 = arith.mulf %90, %100 : vector<2x32xf32>
    %102 = arith.addf %78, %101 : vector<2x32xf32>
    %103 = math.tanh %102 : vector<2x32xf32>
    %cst_40 = arith.constant 1.000000e+00 : f32
    %104 = vector.broadcast %cst_40 : f32 to vector<2x32xf32>
    %105 = arith.subf %104, %99 : vector<2x32xf32>
    %106 = arith.mulf %105, %103 : vector<2x32xf32>
    %107 = arith.mulf %99, %61 : vector<2x32xf32>
    %108 = arith.addf %106, %107 : vector<2x32xf32>
    %c2_41 = arith.constant 2 : index
    %c0_42 = arith.constant 0 : index
    %c0_43 = arith.constant 0 : index
    %109 = vector.load %arg0[%c2_41, %c0_42, %c0_43] : memref<8x2x1xf32, #tpu.memory_space<vmem>>, vector<1x2x1xf32>
    %110 = vector.shape_cast %109 : vector<1x2x1xf32> to vector<2x1xf32>
    %111 = vector.broadcast %110 : vector<2x1xf32> to vector<2x32xf32>
    %112 = vector.broadcast %3 : vector<1x32xf32> to vector<2x32xf32>
    %113 = arith.mulf %111, %112 : vector<2x32xf32>
    %114 = vector.broadcast %9 : vector<1x32xf32> to vector<2x32xf32>
    %115 = arith.addf %113, %114 : vector<2x32xf32>
    %116 = vector.broadcast %110 : vector<2x1xf32> to vector<2x32xf32>
    %117 = vector.broadcast %5 : vector<1x32xf32> to vector<2x32xf32>
    %118 = arith.mulf %116, %117 : vector<2x32xf32>
    %119 = vector.broadcast %11 : vector<1x32xf32> to vector<2x32xf32>
    %120 = arith.addf %118, %119 : vector<2x32xf32>
    %121 = vector.broadcast %110 : vector<2x1xf32> to vector<2x32xf32>
    %122 = vector.broadcast %7 : vector<1x32xf32> to vector<2x32xf32>
    %123 = arith.mulf %121, %122 : vector<2x32xf32>
    %124 = vector.broadcast %13 : vector<1x32xf32> to vector<2x32xf32>
    %125 = arith.addf %123, %124 : vector<2x32xf32>
    %cst_44 = arith.constant dense<0.000000e+00> : vector<2x96xf32>
    %126 = tpu.matmul %108, %0, %cst_44 {dimension_numbers = #tpu.dot_dimension_numbers<[1], [0], [0], [1], [0, 0, 1, 1], [], []>} : vector<2x32xf32>, vector<32x96xf32>, vector<2x96xf32> -> vector<2x96xf32>
    %127 = vector.broadcast %1 : vector<1x96xf32> to vector<2x96xf32>
    %128 = arith.addf %126, %127 : vector<2x96xf32>
    %129 = vector.extract_strided_slice %128 {offsets = [0, 0], sizes = [2, 32], strides = [1, 1]} : vector<2x96xf32> to vector<2x32xf32>
    %130 = arith.addf %115, %129 : vector<2x32xf32>
    %cst_45 = arith.constant 5.000000e-01 : f32
    %131 = vector.broadcast %cst_45 : f32 to vector<2x32xf32>
    %132 = arith.mulf %131, %130 : vector<2x32xf32>
    %133 = math.tanh %132 : vector<2x32xf32>
    %cst_46 = arith.constant 1.000000e+00 : f32
    %134 = vector.broadcast %cst_46 : f32 to vector<2x32xf32>
    %135 = arith.addf %133, %134 : vector<2x32xf32>
    %cst_47 = arith.constant 5.000000e-01 : f32
    %136 = vector.broadcast %cst_47 : f32 to vector<2x32xf32>
    %137 = arith.mulf %136, %135 : vector<2x32xf32>
    %138 = vector.extract_strided_slice %128 {offsets = [0, 32], sizes = [2, 32], strides = [1, 1]} : vector<2x96xf32> to vector<2x32xf32>
    %139 = arith.addf %120, %138 : vector<2x32xf32>
    %cst_48 = arith.constant 5.000000e-01 : f32
    %140 = vector.broadcast %cst_48 : f32 to vector<2x32xf32>
    %141 = arith.mulf %140, %139 : vector<2x32xf32>
    %142 = math.tanh %141 : vector<2x32xf32>
    %cst_49 = arith.constant 1.000000e+00 : f32
    %143 = vector.broadcast %cst_49 : f32 to vector<2x32xf32>
    %144 = arith.addf %142, %143 : vector<2x32xf32>
    %cst_50 = arith.constant 5.000000e-01 : f32
    %145 = vector.broadcast %cst_50 : f32 to vector<2x32xf32>
    %146 = arith.mulf %145, %144 : vector<2x32xf32>
    %147 = vector.extract_strided_slice %128 {offsets = [0, 64], sizes = [2, 32], strides = [1, 1]} : vector<2x96xf32> to vector<2x32xf32>
    %148 = arith.mulf %137, %147 : vector<2x32xf32>
    %149 = arith.addf %125, %148 : vector<2x32xf32>
    %150 = math.tanh %149 : vector<2x32xf32>
    %cst_51 = arith.constant 1.000000e+00 : f32
    %151 = vector.broadcast %cst_51 : f32 to vector<2x32xf32>
    %152 = arith.subf %151, %146 : vector<2x32xf32>
    %153 = arith.mulf %152, %150 : vector<2x32xf32>
    %154 = arith.mulf %146, %108 : vector<2x32xf32>
    %155 = arith.addf %153, %154 : vector<2x32xf32>
    %c3 = arith.constant 3 : index
    %c0_52 = arith.constant 0 : index
    %c0_53 = arith.constant 0 : index
    %156 = vector.load %arg0[%c3, %c0_52, %c0_53] : memref<8x2x1xf32, #tpu.memory_space<vmem>>, vector<1x2x1xf32>
    %157 = vector.shape_cast %156 : vector<1x2x1xf32> to vector<2x1xf32>
    %158 = vector.broadcast %157 : vector<2x1xf32> to vector<2x32xf32>
    %159 = vector.broadcast %3 : vector<1x32xf32> to vector<2x32xf32>
    %160 = arith.mulf %158, %159 : vector<2x32xf32>
    %161 = vector.broadcast %9 : vector<1x32xf32> to vector<2x32xf32>
    %162 = arith.addf %160, %161 : vector<2x32xf32>
    %163 = vector.broadcast %157 : vector<2x1xf32> to vector<2x32xf32>
    %164 = vector.broadcast %5 : vector<1x32xf32> to vector<2x32xf32>
    %165 = arith.mulf %163, %164 : vector<2x32xf32>
    %166 = vector.broadcast %11 : vector<1x32xf32> to vector<2x32xf32>
    %167 = arith.addf %165, %166 : vector<2x32xf32>
    %168 = vector.broadcast %157 : vector<2x1xf32> to vector<2x32xf32>
    %169 = vector.broadcast %7 : vector<1x32xf32> to vector<2x32xf32>
    %170 = arith.mulf %168, %169 : vector<2x32xf32>
    %171 = vector.broadcast %13 : vector<1x32xf32> to vector<2x32xf32>
    %172 = arith.addf %170, %171 : vector<2x32xf32>
    %cst_54 = arith.constant dense<0.000000e+00> : vector<2x96xf32>
    %173 = tpu.matmul %155, %0, %cst_54 {dimension_numbers = #tpu.dot_dimension_numbers<[1], [0], [0], [1], [0, 0, 1, 1], [], []>} : vector<2x32xf32>, vector<32x96xf32>, vector<2x96xf32> -> vector<2x96xf32>
    %174 = vector.broadcast %1 : vector<1x96xf32> to vector<2x96xf32>
    %175 = arith.addf %173, %174 : vector<2x96xf32>
    %176 = vector.extract_strided_slice %175 {offsets = [0, 0], sizes = [2, 32], strides = [1, 1]} : vector<2x96xf32> to vector<2x32xf32>
    %177 = arith.addf %162, %176 : vector<2x32xf32>
    %cst_55 = arith.constant 5.000000e-01 : f32
    %178 = vector.broadcast %cst_55 : f32 to vector<2x32xf32>
    %179 = arith.mulf %178, %177 : vector<2x32xf32>
    %180 = math.tanh %179 : vector<2x32xf32>
    %cst_56 = arith.constant 1.000000e+00 : f32
    %181 = vector.broadcast %cst_56 : f32 to vector<2x32xf32>
    %182 = arith.addf %180, %181 : vector<2x32xf32>
    %cst_57 = arith.constant 5.000000e-01 : f32
    %183 = vector.broadcast %cst_57 : f32 to vector<2x32xf32>
    %184 = arith.mulf %183, %182 : vector<2x32xf32>
    %185 = vector.extract_strided_slice %175 {offsets = [0, 32], sizes = [2, 32], strides = [1, 1]} : vector<2x96xf32> to vector<2x32xf32>
    %186 = arith.addf %167, %185 : vector<2x32xf32>
    %cst_58 = arith.constant 5.000000e-01 : f32
    %187 = vector.broadcast %cst_58 : f32 to vector<2x32xf32>
    %188 = arith.mulf %187, %186 : vector<2x32xf32>
    %189 = math.tanh %188 : vector<2x32xf32>
    %cst_59 = arith.constant 1.000000e+00 : f32
    %190 = vector.broadcast %cst_59 : f32 to vector<2x32xf32>
    %191 = arith.addf %189, %190 : vector<2x32xf32>
    %cst_60 = arith.constant 5.000000e-01 : f32
    %192 = vector.broadcast %cst_60 : f32 to vector<2x32xf32>
    %193 = arith.mulf %192, %191 : vector<2x32xf32>
    %194 = vector.extract_strided_slice %175 {offsets = [0, 64], sizes = [2, 32], strides = [1, 1]} : vector<2x96xf32> to vector<2x32xf32>
    %195 = arith.mulf %184, %194 : vector<2x32xf32>
    %196 = arith.addf %172, %195 : vector<2x32xf32>
    %197 = math.tanh %196 : vector<2x32xf32>
    %cst_61 = arith.constant 1.000000e+00 : f32
    %198 = vector.broadcast %cst_61 : f32 to vector<2x32xf32>
    %199 = arith.subf %198, %193 : vector<2x32xf32>
    %200 = arith.mulf %199, %197 : vector<2x32xf32>
    %201 = arith.mulf %193, %155 : vector<2x32xf32>
    %202 = arith.addf %200, %201 : vector<2x32xf32>
    %c4 = arith.constant 4 : index
    %c0_62 = arith.constant 0 : index
    %c0_63 = arith.constant 0 : index
    %203 = vector.load %arg0[%c4, %c0_62, %c0_63] : memref<8x2x1xf32, #tpu.memory_space<vmem>>, vector<1x2x1xf32>
    %204 = vector.shape_cast %203 : vector<1x2x1xf32> to vector<2x1xf32>
    %205 = vector.broadcast %204 : vector<2x1xf32> to vector<2x32xf32>
    %206 = vector.broadcast %3 : vector<1x32xf32> to vector<2x32xf32>
    %207 = arith.mulf %205, %206 : vector<2x32xf32>
    %208 = vector.broadcast %9 : vector<1x32xf32> to vector<2x32xf32>
    %209 = arith.addf %207, %208 : vector<2x32xf32>
    %210 = vector.broadcast %204 : vector<2x1xf32> to vector<2x32xf32>
    %211 = vector.broadcast %5 : vector<1x32xf32> to vector<2x32xf32>
    %212 = arith.mulf %210, %211 : vector<2x32xf32>
    %213 = vector.broadcast %11 : vector<1x32xf32> to vector<2x32xf32>
    %214 = arith.addf %212, %213 : vector<2x32xf32>
    %215 = vector.broadcast %204 : vector<2x1xf32> to vector<2x32xf32>
    %216 = vector.broadcast %7 : vector<1x32xf32> to vector<2x32xf32>
    %217 = arith.mulf %215, %216 : vector<2x32xf32>
    %218 = vector.broadcast %13 : vector<1x32xf32> to vector<2x32xf32>
    %219 = arith.addf %217, %218 : vector<2x32xf32>
    %cst_64 = arith.constant dense<0.000000e+00> : vector<2x96xf32>
    %220 = tpu.matmul %202, %0, %cst_64 {dimension_numbers = #tpu.dot_dimension_numbers<[1], [0], [0], [1], [0, 0, 1, 1], [], []>} : vector<2x32xf32>, vector<32x96xf32>, vector<2x96xf32> -> vector<2x96xf32>
    %221 = vector.broadcast %1 : vector<1x96xf32> to vector<2x96xf32>
    %222 = arith.addf %220, %221 : vector<2x96xf32>
    %223 = vector.extract_strided_slice %222 {offsets = [0, 0], sizes = [2, 32], strides = [1, 1]} : vector<2x96xf32> to vector<2x32xf32>
    %224 = arith.addf %209, %223 : vector<2x32xf32>
    %cst_65 = arith.constant 5.000000e-01 : f32
    %225 = vector.broadcast %cst_65 : f32 to vector<2x32xf32>
    %226 = arith.mulf %225, %224 : vector<2x32xf32>
    %227 = math.tanh %226 : vector<2x32xf32>
    %cst_66 = arith.constant 1.000000e+00 : f32
    %228 = vector.broadcast %cst_66 : f32 to vector<2x32xf32>
    %229 = arith.addf %227, %228 : vector<2x32xf32>
    %cst_67 = arith.constant 5.000000e-01 : f32
    %230 = vector.broadcast %cst_67 : f32 to vector<2x32xf32>
    %231 = arith.mulf %230, %229 : vector<2x32xf32>
    %232 = vector.extract_strided_slice %222 {offsets = [0, 32], sizes = [2, 32], strides = [1, 1]} : vector<2x96xf32> to vector<2x32xf32>
    %233 = arith.addf %214, %232 : vector<2x32xf32>
    %cst_68 = arith.constant 5.000000e-01 : f32
    %234 = vector.broadcast %cst_68 : f32 to vector<2x32xf32>
    %235 = arith.mulf %234, %233 : vector<2x32xf32>
    %236 = math.tanh %235 : vector<2x32xf32>
    %cst_69 = arith.constant 1.000000e+00 : f32
    %237 = vector.broadcast %cst_69 : f32 to vector<2x32xf32>
    %238 = arith.addf %236, %237 : vector<2x32xf32>
    %cst_70 = arith.constant 5.000000e-01 : f32
    %239 = vector.broadcast %cst_70 : f32 to vector<2x32xf32>
    %240 = arith.mulf %239, %238 : vector<2x32xf32>
    %241 = vector.extract_strided_slice %222 {offsets = [0, 64], sizes = [2, 32], strides = [1, 1]} : vector<2x96xf32> to vector<2x32xf32>
    %242 = arith.mulf %231, %241 : vector<2x32xf32>
    %243 = arith.addf %219, %242 : vector<2x32xf32>
    %244 = math.tanh %243 : vector<2x32xf32>
    %cst_71 = arith.constant 1.000000e+00 : f32
    %245 = vector.broadcast %cst_71 : f32 to vector<2x32xf32>
    %246 = arith.subf %245, %240 : vector<2x32xf32>
    %247 = arith.mulf %246, %244 : vector<2x32xf32>
    %248 = arith.mulf %240, %202 : vector<2x32xf32>
    %249 = arith.addf %247, %248 : vector<2x32xf32>
    %c5 = arith.constant 5 : index
    %c0_72 = arith.constant 0 : index
    %c0_73 = arith.constant 0 : index
    %250 = vector.load %arg0[%c5, %c0_72, %c0_73] : memref<8x2x1xf32, #tpu.memory_space<vmem>>, vector<1x2x1xf32>
    %251 = vector.shape_cast %250 : vector<1x2x1xf32> to vector<2x1xf32>
    %252 = vector.broadcast %251 : vector<2x1xf32> to vector<2x32xf32>
    %253 = vector.broadcast %3 : vector<1x32xf32> to vector<2x32xf32>
    %254 = arith.mulf %252, %253 : vector<2x32xf32>
    %255 = vector.broadcast %9 : vector<1x32xf32> to vector<2x32xf32>
    %256 = arith.addf %254, %255 : vector<2x32xf32>
    %257 = vector.broadcast %251 : vector<2x1xf32> to vector<2x32xf32>
    %258 = vector.broadcast %5 : vector<1x32xf32> to vector<2x32xf32>
    %259 = arith.mulf %257, %258 : vector<2x32xf32>
    %260 = vector.broadcast %11 : vector<1x32xf32> to vector<2x32xf32>
    %261 = arith.addf %259, %260 : vector<2x32xf32>
    %262 = vector.broadcast %251 : vector<2x1xf32> to vector<2x32xf32>
    %263 = vector.broadcast %7 : vector<1x32xf32> to vector<2x32xf32>
    %264 = arith.mulf %262, %263 : vector<2x32xf32>
    %265 = vector.broadcast %13 : vector<1x32xf32> to vector<2x32xf32>
    %266 = arith.addf %264, %265 : vector<2x32xf32>
    %cst_74 = arith.constant dense<0.000000e+00> : vector<2x96xf32>
    %267 = tpu.matmul %249, %0, %cst_74 {dimension_numbers = #tpu.dot_dimension_numbers<[1], [0], [0], [1], [0, 0, 1, 1], [], []>} : vector<2x32xf32>, vector<32x96xf32>, vector<2x96xf32> -> vector<2x96xf32>
    %268 = vector.broadcast %1 : vector<1x96xf32> to vector<2x96xf32>
    %269 = arith.addf %267, %268 : vector<2x96xf32>
    %270 = vector.extract_strided_slice %269 {offsets = [0, 0], sizes = [2, 32], strides = [1, 1]} : vector<2x96xf32> to vector<2x32xf32>
    %271 = arith.addf %256, %270 : vector<2x32xf32>
    %cst_75 = arith.constant 5.000000e-01 : f32
    %272 = vector.broadcast %cst_75 : f32 to vector<2x32xf32>
    %273 = arith.mulf %272, %271 : vector<2x32xf32>
    %274 = math.tanh %273 : vector<2x32xf32>
    %cst_76 = arith.constant 1.000000e+00 : f32
    %275 = vector.broadcast %cst_76 : f32 to vector<2x32xf32>
    %276 = arith.addf %274, %275 : vector<2x32xf32>
    %cst_77 = arith.constant 5.000000e-01 : f32
    %277 = vector.broadcast %cst_77 : f32 to vector<2x32xf32>
    %278 = arith.mulf %277, %276 : vector<2x32xf32>
    %279 = vector.extract_strided_slice %269 {offsets = [0, 32], sizes = [2, 32], strides = [1, 1]} : vector<2x96xf32> to vector<2x32xf32>
    %280 = arith.addf %261, %279 : vector<2x32xf32>
    %cst_78 = arith.constant 5.000000e-01 : f32
    %281 = vector.broadcast %cst_78 : f32 to vector<2x32xf32>
    %282 = arith.mulf %281, %280 : vector<2x32xf32>
    %283 = math.tanh %282 : vector<2x32xf32>
    %cst_79 = arith.constant 1.000000e+00 : f32
    %284 = vector.broadcast %cst_79 : f32 to vector<2x32xf32>
    %285 = arith.addf %283, %284 : vector<2x32xf32>
    %cst_80 = arith.constant 5.000000e-01 : f32
    %286 = vector.broadcast %cst_80 : f32 to vector<2x32xf32>
    %287 = arith.mulf %286, %285 : vector<2x32xf32>
    %288 = vector.extract_strided_slice %269 {offsets = [0, 64], sizes = [2, 32], strides = [1, 1]} : vector<2x96xf32> to vector<2x32xf32>
    %289 = arith.mulf %278, %288 : vector<2x32xf32>
    %290 = arith.addf %266, %289 : vector<2x32xf32>
    %291 = math.tanh %290 : vector<2x32xf32>
    %cst_81 = arith.constant 1.000000e+00 : f32
    %292 = vector.broadcast %cst_81 : f32 to vector<2x32xf32>
    %293 = arith.subf %292, %287 : vector<2x32xf32>
    %294 = arith.mulf %293, %291 : vector<2x32xf32>
    %295 = arith.mulf %287, %249 : vector<2x32xf32>
    %296 = arith.addf %294, %295 : vector<2x32xf32>
    %c6 = arith.constant 6 : index
    %c0_82 = arith.constant 0 : index
    %c0_83 = arith.constant 0 : index
    %297 = vector.load %arg0[%c6, %c0_82, %c0_83] : memref<8x2x1xf32, #tpu.memory_space<vmem>>, vector<1x2x1xf32>
    %298 = vector.shape_cast %297 : vector<1x2x1xf32> to vector<2x1xf32>
    %299 = vector.broadcast %298 : vector<2x1xf32> to vector<2x32xf32>
    %300 = vector.broadcast %3 : vector<1x32xf32> to vector<2x32xf32>
    %301 = arith.mulf %299, %300 : vector<2x32xf32>
    %302 = vector.broadcast %9 : vector<1x32xf32> to vector<2x32xf32>
    %303 = arith.addf %301, %302 : vector<2x32xf32>
    %304 = vector.broadcast %298 : vector<2x1xf32> to vector<2x32xf32>
    %305 = vector.broadcast %5 : vector<1x32xf32> to vector<2x32xf32>
    %306 = arith.mulf %304, %305 : vector<2x32xf32>
    %307 = vector.broadcast %11 : vector<1x32xf32> to vector<2x32xf32>
    %308 = arith.addf %306, %307 : vector<2x32xf32>
    %309 = vector.broadcast %298 : vector<2x1xf32> to vector<2x32xf32>
    %310 = vector.broadcast %7 : vector<1x32xf32> to vector<2x32xf32>
    %311 = arith.mulf %309, %310 : vector<2x32xf32>
    %312 = vector.broadcast %13 : vector<1x32xf32> to vector<2x32xf32>
    %313 = arith.addf %311, %312 : vector<2x32xf32>
    %cst_84 = arith.constant dense<0.000000e+00> : vector<2x96xf32>
    %314 = tpu.matmul %296, %0, %cst_84 {dimension_numbers = #tpu.dot_dimension_numbers<[1], [0], [0], [1], [0, 0, 1, 1], [], []>} : vector<2x32xf32>, vector<32x96xf32>, vector<2x96xf32> -> vector<2x96xf32>
    %315 = vector.broadcast %1 : vector<1x96xf32> to vector<2x96xf32>
    %316 = arith.addf %314, %315 : vector<2x96xf32>
    %317 = vector.extract_strided_slice %316 {offsets = [0, 0], sizes = [2, 32], strides = [1, 1]} : vector<2x96xf32> to vector<2x32xf32>
    %318 = arith.addf %303, %317 : vector<2x32xf32>
    %cst_85 = arith.constant 5.000000e-01 : f32
    %319 = vector.broadcast %cst_85 : f32 to vector<2x32xf32>
    %320 = arith.mulf %319, %318 : vector<2x32xf32>
    %321 = math.tanh %320 : vector<2x32xf32>
    %cst_86 = arith.constant 1.000000e+00 : f32
    %322 = vector.broadcast %cst_86 : f32 to vector<2x32xf32>
    %323 = arith.addf %321, %322 : vector<2x32xf32>
    %cst_87 = arith.constant 5.000000e-01 : f32
    %324 = vector.broadcast %cst_87 : f32 to vector<2x32xf32>
    %325 = arith.mulf %324, %323 : vector<2x32xf32>
    %326 = vector.extract_strided_slice %316 {offsets = [0, 32], sizes = [2, 32], strides = [1, 1]} : vector<2x96xf32> to vector<2x32xf32>
    %327 = arith.addf %308, %326 : vector<2x32xf32>
    %cst_88 = arith.constant 5.000000e-01 : f32
    %328 = vector.broadcast %cst_88 : f32 to vector<2x32xf32>
    %329 = arith.mulf %328, %327 : vector<2x32xf32>
    %330 = math.tanh %329 : vector<2x32xf32>
    %cst_89 = arith.constant 1.000000e+00 : f32
    %331 = vector.broadcast %cst_89 : f32 to vector<2x32xf32>
    %332 = arith.addf %330, %331 : vector<2x32xf32>
    %cst_90 = arith.constant 5.000000e-01 : f32
    %333 = vector.broadcast %cst_90 : f32 to vector<2x32xf32>
    %334 = arith.mulf %333, %332 : vector<2x32xf32>
    %335 = vector.extract_strided_slice %316 {offsets = [0, 64], sizes = [2, 32], strides = [1, 1]} : vector<2x96xf32> to vector<2x32xf32>
    %336 = arith.mulf %325, %335 : vector<2x32xf32>
    %337 = arith.addf %313, %336 : vector<2x32xf32>
    %338 = math.tanh %337 : vector<2x32xf32>
    %cst_91 = arith.constant 1.000000e+00 : f32
    %339 = vector.broadcast %cst_91 : f32 to vector<2x32xf32>
    %340 = arith.subf %339, %334 : vector<2x32xf32>
    %341 = arith.mulf %340, %338 : vector<2x32xf32>
    %342 = arith.mulf %334, %296 : vector<2x32xf32>
    %343 = arith.addf %341, %342 : vector<2x32xf32>
    %c7 = arith.constant 7 : index
    %c0_92 = arith.constant 0 : index
    %c0_93 = arith.constant 0 : index
    %344 = vector.load %arg0[%c7, %c0_92, %c0_93] : memref<8x2x1xf32, #tpu.memory_space<vmem>>, vector<1x2x1xf32>
    %345 = vector.shape_cast %344 : vector<1x2x1xf32> to vector<2x1xf32>
    %346 = vector.broadcast %345 : vector<2x1xf32> to vector<2x32xf32>
    %347 = vector.broadcast %3 : vector<1x32xf32> to vector<2x32xf32>
    %348 = arith.mulf %346, %347 : vector<2x32xf32>
    %349 = vector.broadcast %9 : vector<1x32xf32> to vector<2x32xf32>
    %350 = arith.addf %348, %349 : vector<2x32xf32>
    %351 = vector.broadcast %345 : vector<2x1xf32> to vector<2x32xf32>
    %352 = vector.broadcast %5 : vector<1x32xf32> to vector<2x32xf32>
    %353 = arith.mulf %351, %352 : vector<2x32xf32>
    %354 = vector.broadcast %11 : vector<1x32xf32> to vector<2x32xf32>
    %355 = arith.addf %353, %354 : vector<2x32xf32>
    %356 = vector.broadcast %345 : vector<2x1xf32> to vector<2x32xf32>
    %357 = vector.broadcast %7 : vector<1x32xf32> to vector<2x32xf32>
    %358 = arith.mulf %356, %357 : vector<2x32xf32>
    %359 = vector.broadcast %13 : vector<1x32xf32> to vector<2x32xf32>
    %360 = arith.addf %358, %359 : vector<2x32xf32>
    %cst_94 = arith.constant dense<0.000000e+00> : vector<2x96xf32>
    %361 = tpu.matmul %343, %0, %cst_94 {dimension_numbers = #tpu.dot_dimension_numbers<[1], [0], [0], [1], [0, 0, 1, 1], [], []>} : vector<2x32xf32>, vector<32x96xf32>, vector<2x96xf32> -> vector<2x96xf32>
    %362 = vector.broadcast %1 : vector<1x96xf32> to vector<2x96xf32>
    %363 = arith.addf %361, %362 : vector<2x96xf32>
    %364 = vector.extract_strided_slice %363 {offsets = [0, 0], sizes = [2, 32], strides = [1, 1]} : vector<2x96xf32> to vector<2x32xf32>
    %365 = arith.addf %350, %364 : vector<2x32xf32>
    %cst_95 = arith.constant 5.000000e-01 : f32
    %366 = vector.broadcast %cst_95 : f32 to vector<2x32xf32>
    %367 = arith.mulf %366, %365 : vector<2x32xf32>
    %368 = math.tanh %367 : vector<2x32xf32>
    %cst_96 = arith.constant 1.000000e+00 : f32
    %369 = vector.broadcast %cst_96 : f32 to vector<2x32xf32>
    %370 = arith.addf %368, %369 : vector<2x32xf32>
    %cst_97 = arith.constant 5.000000e-01 : f32
    %371 = vector.broadcast %cst_97 : f32 to vector<2x32xf32>
    %372 = arith.mulf %371, %370 : vector<2x32xf32>
    %373 = vector.extract_strided_slice %363 {offsets = [0, 32], sizes = [2, 32], strides = [1, 1]} : vector<2x96xf32> to vector<2x32xf32>
    %374 = arith.addf %355, %373 : vector<2x32xf32>
    %cst_98 = arith.constant 5.000000e-01 : f32
    %375 = vector.broadcast %cst_98 : f32 to vector<2x32xf32>
    %376 = arith.mulf %375, %374 : vector<2x32xf32>
    %377 = math.tanh %376 : vector<2x32xf32>
    %cst_99 = arith.constant 1.000000e+00 : f32
    %378 = vector.broadcast %cst_99 : f32 to vector<2x32xf32>
    %379 = arith.addf %377, %378 : vector<2x32xf32>
    %cst_100 = arith.constant 5.000000e-01 : f32
    %380 = vector.broadcast %cst_100 : f32 to vector<2x32xf32>
    %381 = arith.mulf %380, %379 : vector<2x32xf32>
    %382 = vector.extract_strided_slice %363 {offsets = [0, 64], sizes = [2, 32], strides = [1, 1]} : vector<2x96xf32> to vector<2x32xf32>
    %383 = arith.mulf %372, %382 : vector<2x32xf32>
    %384 = arith.addf %360, %383 : vector<2x32xf32>
    %385 = math.tanh %384 : vector<2x32xf32>
    %cst_101 = arith.constant 1.000000e+00 : f32
    %386 = vector.broadcast %cst_101 : f32 to vector<2x32xf32>
    %387 = arith.subf %386, %381 : vector<2x32xf32>
    %388 = arith.mulf %387, %385 : vector<2x32xf32>
    %389 = arith.mulf %381, %343 : vector<2x32xf32>
    %390 = arith.addf %388, %389 : vector<2x32xf32>
    %c0_102 = arith.constant 0 : index
    %c0_103 = arith.constant 0 : index
    %391 = vector.load %arg7[%c0_102, %c0_103] : memref<32x32xf32, #tpu.memory_space<vmem>>, vector<32x32xf32>
    %cst_104 = arith.constant dense<0.000000e+00> : vector<2x32xf32>
    %392 = tpu.matmul %390, %391, %cst_104 {dimension_numbers = #tpu.dot_dimension_numbers<[1], [0], [0], [1], [0, 0, 1, 1], [], []>} : vector<2x32xf32>, vector<32x32xf32>, vector<2x32xf32> -> vector<2x32xf32>
    %c0_105 = arith.constant 0 : index
    %c0_106 = arith.constant 0 : index
    %393 = vector.load %arg8[%c0_105, %c0_106] : memref<1x32xf32, #tpu.memory_space<vmem>>, vector<1x32xf32>
    %394 = vector.broadcast %393 : vector<1x32xf32> to vector<2x32xf32>
    %395 = arith.addf %392, %394 : vector<2x32xf32>
    %c0_107 = arith.constant 0 : index
    %c0_108 = arith.constant 0 : index
    %396 = vector.load %arg9[%c0_107, %c0_108] : memref<32x32xf32, #tpu.memory_space<vmem>>, vector<32x32xf32>
    %c0_109 = arith.constant 0 : index
    %c0_110 = arith.constant 0 : index
    %397 = vector.load %arg10[%c0_109, %c0_110] : memref<1x32xf32, #tpu.memory_space<vmem>>, vector<1x32xf32>
    %c0_111 = arith.constant 0 : index
    %c0_112 = arith.constant 0 : index
    %398 = vector.load %arg11[%c0_111, %c0_112] : memref<32x32xf32, #tpu.memory_space<vmem>>, vector<32x32xf32>
    %c0_113 = arith.constant 0 : index
    %c0_114 = arith.constant 0 : index
    %399 = vector.load %arg12[%c0_113, %c0_114] : memref<1x32xf32, #tpu.memory_space<vmem>>, vector<1x32xf32>
    %c0_115 = arith.constant 0 : index
    %c0_116 = arith.constant 0 : index
    %400 = vector.load %arg13[%c0_115, %c0_116] : memref<32x32xf32, #tpu.memory_space<vmem>>, vector<32x32xf32>
    %c0_117 = arith.constant 0 : index
    %c0_118 = arith.constant 0 : index
    %401 = vector.load %arg14[%c0_117, %c0_118] : memref<1x32xf32, #tpu.memory_space<vmem>>, vector<1x32xf32>
    %c0_119 = arith.constant 0 : index
    %c0_120 = arith.constant 0 : index
    %c0_121 = arith.constant 0 : index
    %402 = vector.load %arg1[%c0_119, %c0_120, %c0_121] : memref<8x2x32xf32, #tpu.memory_space<vmem>>, vector<1x2x32xf32>
    %403 = vector.shape_cast %402 : vector<1x2x32xf32> to vector<2x32xf32>
    %404 = arith.mulf %395, %403 : vector<2x32xf32>
    %cst_122 = arith.constant dense<0.000000e+00> : vector<2xf32>
    %405 = vector.multi_reduction <add>, %404, %cst_122 [1] : vector<2x32xf32> to vector<2xf32>
    %c0_123 = arith.constant 0 : index
    %c0_124 = arith.constant 0 : index
    %406 = vector.load %arg15[%c0_123, %c0_124] : memref<8x2xf32, #tpu.memory_space<vmem>>, vector<1x2xf32>
    %407 = vector.shape_cast %406 : vector<1x2xf32> to vector<2xf32>
    %408 = vector.shape_cast %405 : vector<2xf32> to vector<1x2xf32>
    tpu.vector_store %arg15[%c0_123, %c0_124], %408 {strides = array<i32>} : memref<8x2xf32, #tpu.memory_space<vmem>>, vector<1x2xf32>,
    %c0_125 = arith.constant 0 : index
    %409 = memref.load %arg2[%c0_125] : memref<21xf32, #tpu.memory_space<smem>>
    %c7_126 = arith.constant 7 : index
    %410 = memref.load %arg2[%c7_126] : memref<21xf32, #tpu.memory_space<smem>>
    %c14 = arith.constant 14 : index
    %411 = memref.load %arg2[%c14] : memref<21xf32, #tpu.memory_space<smem>>
    %cst_127 = arith.constant dense<0.000000e+00> : vector<2x32xf32>
    %412 = tpu.matmul %395, %396, %cst_127 {dimension_numbers = #tpu.dot_dimension_numbers<[1], [0], [0], [1], [0, 0, 1, 1], [], []>} : vector<2x32xf32>, vector<32x32xf32>, vector<2x32xf32> -> vector<2x32xf32>
    %413 = vector.broadcast %397 : vector<1x32xf32> to vector<2x32xf32>
    %414 = arith.addf %412, %413 : vector<2x32xf32>
    %cst_128 = arith.constant 0.000000e+00 : f32
    %415 = vector.broadcast %cst_128 : f32 to vector<2x32xf32>
    %416 = arith.cmpf ogt, %414, %415 : vector<2x32xf32>
    %417 = math.exp %414 : vector<2x32xf32>
    %cst_129 = arith.constant 1.000000e+00 : f32
    %418 = vector.broadcast %cst_129 : f32 to vector<2x32xf32>
    %419 = arith.subf %417, %418 : vector<2x32xf32>
    %420 = arith.select %416, %414, %419 : vector<2x32xi1>, vector<2x32xf32>
    %cst_130 = arith.constant dense<0.000000e+00> : vector<2x32xf32>
    %421 = tpu.matmul %420, %398, %cst_130 {dimension_numbers = #tpu.dot_dimension_numbers<[1], [0], [0], [1], [0, 0, 1, 1], [], []>} : vector<2x32xf32>, vector<32x32xf32>, vector<2x32xf32> -> vector<2x32xf32>
    %422 = vector.broadcast %399 : vector<1x32xf32> to vector<2x32xf32>
    %423 = arith.addf %421, %422 : vector<2x32xf32>
    %cst_131 = arith.constant 0.000000e+00 : f32
    %424 = vector.broadcast %cst_131 : f32 to vector<2x32xf32>
    %425 = arith.cmpf ogt, %423, %424 : vector<2x32xf32>
    %426 = math.exp %423 : vector<2x32xf32>
    %cst_132 = arith.constant 1.000000e+00 : f32
    %427 = vector.broadcast %cst_132 : f32 to vector<2x32xf32>
    %428 = arith.subf %426, %427 : vector<2x32xf32>
    %429 = arith.select %425, %423, %428 : vector<2x32xi1>, vector<2x32xf32>
    %cst_133 = arith.constant dense<0.000000e+00> : vector<2x32xf32>
    %430 = tpu.matmul %429, %400, %cst_133 {dimension_numbers = #tpu.dot_dimension_numbers<[1], [0], [0], [1], [0, 0, 1, 1], [], []>} : vector<2x32xf32>, vector<32x32xf32>, vector<2x32xf32> -> vector<2x32xf32>
    %431 = vector.broadcast %401 : vector<1x32xf32> to vector<2x32xf32>
    %432 = arith.addf %430, %431 : vector<2x32xf32>
    %433 = vector.broadcast %410 : f32 to vector<2x32xf32>
    %434 = arith.mulf %433, %432 : vector<2x32xf32>
    %435 = arith.addf %395, %434 : vector<2x32xf32>
    %cst_134 = arith.constant dense<0.000000e+00> : vector<2x32xf32>
    %436 = tpu.matmul %435, %396, %cst_134 {dimension_numbers = #tpu.dot_dimension_numbers<[1], [0], [0], [1], [0, 0, 1, 1], [], []>} : vector<2x32xf32>, vector<32x32xf32>, vector<2x32xf32> -> vector<2x32xf32>
    %437 = vector.broadcast %397 : vector<1x32xf32> to vector<2x32xf32>
    %438 = arith.addf %436, %437 : vector<2x32xf32>
    %cst_135 = arith.constant 0.000000e+00 : f32
    %439 = vector.broadcast %cst_135 : f32 to vector<2x32xf32>
    %440 = arith.cmpf ogt, %438, %439 : vector<2x32xf32>
    %441 = math.exp %438 : vector<2x32xf32>
    %cst_136 = arith.constant 1.000000e+00 : f32
    %442 = vector.broadcast %cst_136 : f32 to vector<2x32xf32>
    %443 = arith.subf %441, %442 : vector<2x32xf32>
    %444 = arith.select %440, %438, %443 : vector<2x32xi1>, vector<2x32xf32>
    %cst_137 = arith.constant dense<0.000000e+00> : vector<2x32xf32>
    %445 = tpu.matmul %444, %398, %cst_137 {dimension_numbers = #tpu.dot_dimension_numbers<[1], [0], [0], [1], [0, 0, 1, 1], [], []>} : vector<2x32xf32>, vector<32x32xf32>, vector<2x32xf32> -> vector<2x32xf32>
    %446 = vector.broadcast %399 : vector<1x32xf32> to vector<2x32xf32>
    %447 = arith.addf %445, %446 : vector<2x32xf32>
    %cst_138 = arith.constant 0.000000e+00 : f32
    %448 = vector.broadcast %cst_138 : f32 to vector<2x32xf32>
    %449 = arith.cmpf ogt, %447, %448 : vector<2x32xf32>
    %450 = math.exp %447 : vector<2x32xf32>
    %cst_139 = arith.constant 1.000000e+00 : f32
    %451 = vector.broadcast %cst_139 : f32 to vector<2x32xf32>
    %452 = arith.subf %450, %451 : vector<2x32xf32>
    %453 = arith.select %449, %447, %452 : vector<2x32xi1>, vector<2x32xf32>
    %cst_140 = arith.constant dense<0.000000e+00> : vector<2x32xf32>
    %454 = tpu.matmul %453, %400, %cst_140 {dimension_numbers = #tpu.dot_dimension_numbers<[1], [0], [0], [1], [0, 0, 1, 1], [], []>} : vector<2x32xf32>, vector<32x32xf32>, vector<2x32xf32> -> vector<2x32xf32>
    %455 = vector.broadcast %401 : vector<1x32xf32> to vector<2x32xf32>
    %456 = arith.addf %454, %455 : vector<2x32xf32>
    %457 = vector.broadcast %410 : f32 to vector<2x32xf32>
    %458 = arith.mulf %457, %456 : vector<2x32xf32>
    %459 = arith.addf %395, %458 : vector<2x32xf32>
    %cst_141 = arith.constant dense<0.000000e+00> : vector<2x32xf32>
    %460 = tpu.matmul %459, %396, %cst_141 {dimension_numbers = #tpu.dot_dimension_numbers<[1], [0], [0], [1], [0, 0, 1, 1], [], []>} : vector<2x32xf32>, vector<32x32xf32>, vector<2x32xf32> -> vector<2x32xf32>
    %461 = vector.broadcast %397 : vector<1x32xf32> to vector<2x32xf32>
    %462 = arith.addf %460, %461 : vector<2x32xf32>
    %cst_142 = arith.constant 0.000000e+00 : f32
    %463 = vector.broadcast %cst_142 : f32 to vector<2x32xf32>
    %464 = arith.cmpf ogt, %462, %463 : vector<2x32xf32>
    %465 = math.exp %462 : vector<2x32xf32>
    %cst_143 = arith.constant 1.000000e+00 : f32
    %466 = vector.broadcast %cst_143 : f32 to vector<2x32xf32>
    %467 = arith.subf %465, %466 : vector<2x32xf32>
    %468 = arith.select %464, %462, %467 : vector<2x32xi1>, vector<2x32xf32>
    %cst_144 = arith.constant dense<0.000000e+00> : vector<2x32xf32>
    %469 = tpu.matmul %468, %398, %cst_144 {dimension_numbers = #tpu.dot_dimension_numbers<[1], [0], [0], [1], [0, 0, 1, 1], [], []>} : vector<2x32xf32>, vector<32x32xf32>, vector<2x32xf32> -> vector<2x32xf32>
    %470 = vector.broadcast %399 : vector<1x32xf32> to vector<2x32xf32>
    %471 = arith.addf %469, %470 : vector<2x32xf32>
    %cst_145 = arith.constant 0.000000e+00 : f32
    %472 = vector.broadcast %cst_145 : f32 to vector<2x32xf32>
    %473 = arith.cmpf ogt, %471, %472 : vector<2x32xf32>
    %474 = math.exp %471 : vector<2x32xf32>
    %cst_146 = arith.constant 1.000000e+00 : f32
    %475 = vector.broadcast %cst_146 : f32 to vector<2x32xf32>
    %476 = arith.subf %474, %475 : vector<2x32xf32>
    %477 = arith.select %473, %471, %476 : vector<2x32xi1>, vector<2x32xf32>
    %cst_147 = arith.constant dense<0.000000e+00> : vector<2x32xf32>
    %478 = tpu.matmul %477, %400, %cst_147 {dimension_numbers = #tpu.dot_dimension_numbers<[1], [0], [0], [1], [0, 0, 1, 1], [], []>} : vector<2x32xf32>, vector<32x32xf32>, vector<2x32xf32> -> vector<2x32xf32>
    %479 = vector.broadcast %401 : vector<1x32xf32> to vector<2x32xf32>
    %480 = arith.addf %478, %479 : vector<2x32xf32>
    %481 = vector.broadcast %409 : f32 to vector<2x32xf32>
    %482 = arith.mulf %481, %480 : vector<2x32xf32>
    %483 = arith.addf %395, %482 : vector<2x32xf32>
    %cst_148 = arith.constant dense<0.000000e+00> : vector<2x32xf32>
    %484 = tpu.matmul %483, %396, %cst_148 {dimension_numbers = #tpu.dot_dimension_numbers<[1], [0], [0], [1], [0, 0, 1, 1], [], []>} : vector<2x32xf32>, vector<32x32xf32>, vector<2x32xf32> -> vector<2x32xf32>
    %485 = vector.broadcast %397 : vector<1x32xf32> to vector<2x32xf32>
    %486 = arith.addf %484, %485 : vector<2x32xf32>
    %cst_149 = arith.constant 0.000000e+00 : f32
    %487 = vector.broadcast %cst_149 : f32 to vector<2x32xf32>
    %488 = arith.cmpf ogt, %486, %487 : vector<2x32xf32>
    %489 = math.exp %486 : vector<2x32xf32>
    %cst_150 = arith.constant 1.000000e+00 : f32
    %490 = vector.broadcast %cst_150 : f32 to vector<2x32xf32>
    %491 = arith.subf %489, %490 : vector<2x32xf32>
    %492 = arith.select %488, %486, %491 : vector<2x32xi1>, vector<2x32xf32>
    %cst_151 = arith.constant dense<0.000000e+00> : vector<2x32xf32>
    %493 = tpu.matmul %492, %398, %cst_151 {dimension_numbers = #tpu.dot_dimension_numbers<[1], [0], [0], [1], [0, 0, 1, 1], [], []>} : vector<2x32xf32>, vector<32x32xf32>, vector<2x32xf32> -> vector<2x32xf32>
    %494 = vector.broadcast %399 : vector<1x32xf32> to vector<2x32xf32>
    %495 = arith.addf %493, %494 : vector<2x32xf32>
    %cst_152 = arith.constant 0.000000e+00 : f32
    %496 = vector.broadcast %cst_152 : f32 to vector<2x32xf32>
    %497 = arith.cmpf ogt, %495, %496 : vector<2x32xf32>
    %498 = math.exp %495 : vector<2x32xf32>
    %cst_153 = arith.constant 1.000000e+00 : f32
    %499 = vector.broadcast %cst_153 : f32 to vector<2x32xf32>
    %500 = arith.subf %498, %499 : vector<2x32xf32>
    %501 = arith.select %497, %495, %500 : vector<2x32xi1>, vector<2x32xf32>
    %cst_154 = arith.constant dense<0.000000e+00> : vector<2x32xf32>
    %502 = tpu.matmul %501, %400, %cst_154 {dimension_numbers = #tpu.dot_dimension_numbers<[1], [0], [0], [1], [0, 0, 1, 1], [], []>} : vector<2x32xf32>, vector<32x32xf32>, vector<2x32xf32> -> vector<2x32xf32>
    %503 = vector.broadcast %401 : vector<1x32xf32> to vector<2x32xf32>
    %504 = arith.addf %502, %503 : vector<2x32xf32>
    %505 = arith.addf %456, %480 : vector<2x32xf32>
    %cst_155 = arith.constant 2.000000e+00 : f32
    %506 = vector.broadcast %cst_155 : f32 to vector<2x32xf32>
    %507 = arith.mulf %506, %505 : vector<2x32xf32>
    %508 = arith.addf %432, %507 : vector<2x32xf32>
    %509 = arith.addf %508, %504 : vector<2x32xf32>
    %510 = vector.broadcast %411 : f32 to vector<2x32xf32>
    %511 = arith.mulf %510, %509 : vector<2x32xf32>
    %512 = arith.addf %395, %511 : vector<2x32xf32>
    %c1_156 = arith.constant 1 : index
    %c0_157 = arith.constant 0 : index
    %c0_158 = arith.constant 0 : index
    %513 = vector.load %arg1[%c1_156, %c0_157, %c0_158] : memref<8x2x32xf32, #tpu.memory_space<vmem>>, vector<1x2x32xf32>
    %514 = vector.shape_cast %513 : vector<1x2x32xf32> to vector<2x32xf32>
    %515 = arith.mulf %512, %514 : vector<2x32xf32>
    %cst_159 = arith.constant dense<0.000000e+00> : vector<2xf32>
    %516 = vector.multi_reduction <add>, %515, %cst_159 [1] : vector<2x32xf32> to vector<2xf32>
    %c1_160 = arith.constant 1 : index
    %c0_161 = arith.constant 0 : index
    %517 = vector.load %arg15[%c1_160, %c0_161] : memref<8x2xf32, #tpu.memory_space<vmem>>, vector<1x2xf32>
    %518 = vector.shape_cast %517 : vector<1x2xf32> to vector<2xf32>
    %519 = vector.shape_cast %516 : vector<2xf32> to vector<1x2xf32>
    tpu.vector_store %arg15[%c1_160, %c0_161], %519 {strides = array<i32>} : memref<8x2xf32, #tpu.memory_space<vmem>>, vector<1x2xf32>,
    %c1_162 = arith.constant 1 : index
    %520 = memref.load %arg2[%c1_162] : memref<21xf32, #tpu.memory_space<smem>>
    %c8 = arith.constant 8 : index
    %521 = memref.load %arg2[%c8] : memref<21xf32, #tpu.memory_space<smem>>
    %c15 = arith.constant 15 : index
    %522 = memref.load %arg2[%c15] : memref<21xf32, #tpu.memory_space<smem>>
    %cst_163 = arith.constant dense<0.000000e+00> : vector<2x32xf32>
    %523 = tpu.matmul %512, %396, %cst_163 {dimension_numbers = #tpu.dot_dimension_numbers<[1], [0], [0], [1], [0, 0, 1, 1], [], []>} : vector<2x32xf32>, vector<32x32xf32>, vector<2x32xf32> -> vector<2x32xf32>
    %524 = vector.broadcast %397 : vector<1x32xf32> to vector<2x32xf32>
    %525 = arith.addf %523, %524 : vector<2x32xf32>
    %cst_164 = arith.constant 0.000000e+00 : f32
    %526 = vector.broadcast %cst_164 : f32 to vector<2x32xf32>
    %527 = arith.cmpf ogt, %525, %526 : vector<2x32xf32>
    %528 = math.exp %525 : vector<2x32xf32>
    %cst_165 = arith.constant 1.000000e+00 : f32
    %529 = vector.broadcast %cst_165 : f32 to vector<2x32xf32>
    %530 = arith.subf %528, %529 : vector<2x32xf32>
    %531 = arith.select %527, %525, %530 : vector<2x32xi1>, vector<2x32xf32>
    %cst_166 = arith.constant dense<0.000000e+00> : vector<2x32xf32>
    %532 = tpu.matmul %531, %398, %cst_166 {dimension_numbers = #tpu.dot_dimension_numbers<[1], [0], [0], [1], [0, 0, 1, 1], [], []>} : vector<2x32xf32>, vector<32x32xf32>, vector<2x32xf32> -> vector<2x32xf32>
    %533 = vector.broadcast %399 : vector<1x32xf32> to vector<2x32xf32>
    %534 = arith.addf %532, %533 : vector<2x32xf32>
    %cst_167 = arith.constant 0.000000e+00 : f32
    %535 = vector.broadcast %cst_167 : f32 to vector<2x32xf32>
    %536 = arith.cmpf ogt, %534, %535 : vector<2x32xf32>
    %537 = math.exp %534 : vector<2x32xf32>
    %cst_168 = arith.constant 1.000000e+00 : f32
    %538 = vector.broadcast %cst_168 : f32 to vector<2x32xf32>
    %539 = arith.subf %537, %538 : vector<2x32xf32>
    %540 = arith.select %536, %534, %539 : vector<2x32xi1>, vector<2x32xf32>
    %cst_169 = arith.constant dense<0.000000e+00> : vector<2x32xf32>
    %541 = tpu.matmul %540, %400, %cst_169 {dimension_numbers = #tpu.dot_dimension_numbers<[1], [0], [0], [1], [0, 0, 1, 1], [], []>} : vector<2x32xf32>, vector<32x32xf32>, vector<2x32xf32> -> vector<2x32xf32>
    %542 = vector.broadcast %401 : vector<1x32xf32> to vector<2x32xf32>
    %543 = arith.addf %541, %542 : vector<2x32xf32>
    %544 = vector.broadcast %521 : f32 to vector<2x32xf32>
    %545 = arith.mulf %544, %543 : vector<2x32xf32>
    %546 = arith.addf %512, %545 : vector<2x32xf32>
    %cst_170 = arith.constant dense<0.000000e+00> : vector<2x32xf32>
    %547 = tpu.matmul %546, %396, %cst_170 {dimension_numbers = #tpu.dot_dimension_numbers<[1], [0], [0], [1], [0, 0, 1, 1], [], []>} : vector<2x32xf32>, vector<32x32xf32>, vector<2x32xf32> -> vector<2x32xf32>
    %548 = vector.broadcast %397 : vector<1x32xf32> to vector<2x32xf32>
    %549 = arith.addf %547, %548 : vector<2x32xf32>
    %cst_171 = arith.constant 0.000000e+00 : f32
    %550 = vector.broadcast %cst_171 : f32 to vector<2x32xf32>
    %551 = arith.cmpf ogt, %549, %550 : vector<2x32xf32>
    %552 = math.exp %549 : vector<2x32xf32>
    %cst_172 = arith.constant 1.000000e+00 : f32
    %553 = vector.broadcast %cst_172 : f32 to vector<2x32xf32>
    %554 = arith.subf %552, %553 : vector<2x32xf32>
    %555 = arith.select %551, %549, %554 : vector<2x32xi1>, vector<2x32xf32>
    %cst_173 = arith.constant dense<0.000000e+00> : vector<2x32xf32>
    %556 = tpu.matmul %555, %398, %cst_173 {dimension_numbers = #tpu.dot_dimension_numbers<[1], [0], [0], [1], [0, 0, 1, 1], [], []>} : vector<2x32xf32>, vector<32x32xf32>, vector<2x32xf32> -> vector<2x32xf32>
    %557 = vector.broadcast %399 : vector<1x32xf32> to vector<2x32xf32>
    %558 = arith.addf %556, %557 : vector<2x32xf32>
    %cst_174 = arith.constant 0.000000e+00 : f32
    %559 = vector.broadcast %cst_174 : f32 to vector<2x32xf32>
    %560 = arith.cmpf ogt, %558, %559 : vector<2x32xf32>
    %561 = math.exp %558 : vector<2x32xf32>
    %cst_175 = arith.constant 1.000000e+00 : f32
    %562 = vector.broadcast %cst_175 : f32 to vector<2x32xf32>
    %563 = arith.subf %561, %562 : vector<2x32xf32>
    %564 = arith.select %560, %558, %563 : vector<2x32xi1>, vector<2x32xf32>
    %cst_176 = arith.constant dense<0.000000e+00> : vector<2x32xf32>
    %565 = tpu.matmul %564, %400, %cst_176 {dimension_numbers = #tpu.dot_dimension_numbers<[1], [0], [0], [1], [0, 0, 1, 1], [], []>} : vector<2x32xf32>, vector<32x32xf32>, vector<2x32xf32> -> vector<2x32xf32>
    %566 = vector.broadcast %401 : vector<1x32xf32> to vector<2x32xf32>
    %567 = arith.addf %565, %566 : vector<2x32xf32>
    %568 = vector.broadcast %521 : f32 to vector<2x32xf32>
    %569 = arith.mulf %568, %567 : vector<2x32xf32>
    %570 = arith.addf %512, %569 : vector<2x32xf32>
    %cst_177 = arith.constant dense<0.000000e+00> : vector<2x32xf32>
    %571 = tpu.matmul %570, %396, %cst_177 {dimension_numbers = #tpu.dot_dimension_numbers<[1], [0], [0], [1], [0, 0, 1, 1], [], []>} : vector<2x32xf32>, vector<32x32xf32>, vector<2x32xf32> -> vector<2x32xf32>
    %572 = vector.broadcast %397 : vector<1x32xf32> to vector<2x32xf32>
    %573 = arith.addf %571, %572 : vector<2x32xf32>
    %cst_178 = arith.constant 0.000000e+00 : f32
    %574 = vector.broadcast %cst_178 : f32 to vector<2x32xf32>
    %575 = arith.cmpf ogt, %573, %574 : vector<2x32xf32>
    %576 = math.exp %573 : vector<2x32xf32>
    %cst_179 = arith.constant 1.000000e+00 : f32
    %577 = vector.broadcast %cst_179 : f32 to vector<2x32xf32>
    %578 = arith.subf %576, %577 : vector<2x32xf32>
    %579 = arith.select %575, %573, %578 : vector<2x32xi1>, vector<2x32xf32>
    %cst_180 = arith.constant dense<0.000000e+00> : vector<2x32xf32>
    %580 = tpu.matmul %579, %398, %cst_180 {dimension_numbers = #tpu.dot_dimension_numbers<[1], [0], [0], [1], [0, 0, 1, 1], [], []>} : vector<2x32xf32>, vector<32x32xf32>, vector<2x32xf32> -> vector<2x32xf32>
    %581 = vector.broadcast %399 : vector<1x32xf32> to vector<2x32xf32>
    %582 = arith.addf %580, %581 : vector<2x32xf32>
    %cst_181 = arith.constant 0.000000e+00 : f32
    %583 = vector.broadcast %cst_181 : f32 to vector<2x32xf32>
    %584 = arith.cmpf ogt, %582, %583 : vector<2x32xf32>
    %585 = math.exp %582 : vector<2x32xf32>
    %cst_182 = arith.constant 1.000000e+00 : f32
    %586 = vector.broadcast %cst_182 : f32 to vector<2x32xf32>
    %587 = arith.subf %585, %586 : vector<2x32xf32>
    %588 = arith.select %584, %582, %587 : vector<2x32xi1>, vector<2x32xf32>
    %cst_183 = arith.constant dense<0.000000e+00> : vector<2x32xf32>
    %589 = tpu.matmul %588, %400, %cst_183 {dimension_numbers = #tpu.dot_dimension_numbers<[1], [0], [0], [1], [0, 0, 1, 1], [], []>} : vector<2x32xf32>, vector<32x32xf32>, vector<2x32xf32> -> vector<2x32xf32>
    %590 = vector.broadcast %401 : vector<1x32xf32> to vector<2x32xf32>
    %591 = arith.addf %589, %590 : vector<2x32xf32>
    %592 = vector.broadcast %520 : f32 to vector<2x32xf32>
    %593 = arith.mulf %592, %591 : vector<2x32xf32>
    %594 = arith.addf %512, %593 : vector<2x32xf32>
    %cst_184 = arith.constant dense<0.000000e+00> : vector<2x32xf32>
    %595 = tpu.matmul %594, %396, %cst_184 {dimension_numbers = #tpu.dot_dimension_numbers<[1], [0], [0], [1], [0, 0, 1, 1], [], []>} : vector<2x32xf32>, vector<32x32xf32>, vector<2x32xf32> -> vector<2x32xf32>
    %596 = vector.broadcast %397 : vector<1x32xf32> to vector<2x32xf32>
    %597 = arith.addf %595, %596 : vector<2x32xf32>
    %cst_185 = arith.constant 0.000000e+00 : f32
    %598 = vector.broadcast %cst_185 : f32 to vector<2x32xf32>
    %599 = arith.cmpf ogt, %597, %598 : vector<2x32xf32>
    %600 = math.exp %597 : vector<2x32xf32>
    %cst_186 = arith.constant 1.000000e+00 : f32
    %601 = vector.broadcast %cst_186 : f32 to vector<2x32xf32>
    %602 = arith.subf %600, %601 : vector<2x32xf32>
    %603 = arith.select %599, %597, %602 : vector<2x32xi1>, vector<2x32xf32>
    %cst_187 = arith.constant dense<0.000000e+00> : vector<2x32xf32>
    %604 = tpu.matmul %603, %398, %cst_187 {dimension_numbers = #tpu.dot_dimension_numbers<[1], [0], [0], [1], [0, 0, 1, 1], [], []>} : vector<2x32xf32>, vector<32x32xf32>, vector<2x32xf32> -> vector<2x32xf32>
    %605 = vector.broadcast %399 : vector<1x32xf32> to vector<2x32xf32>
    %606 = arith.addf %604, %605 : vector<2x32xf32>
    %cst_188 = arith.constant 0.000000e+00 : f32
    %607 = vector.broadcast %cst_188 : f32 to vector<2x32xf32>
    %608 = arith.cmpf ogt, %606, %607 : vector<2x32xf32>
    %609 = math.exp %606 : vector<2x32xf32>
    %cst_189 = arith.constant 1.000000e+00 : f32
    %610 = vector.broadcast %cst_189 : f32 to vector<2x32xf32>
    %611 = arith.subf %609, %610 : vector<2x32xf32>
    %612 = arith.select %608, %606, %611 : vector<2x32xi1>, vector<2x32xf32>
    %cst_190 = arith.constant dense<0.000000e+00> : vector<2x32xf32>
    %613 = tpu.matmul %612, %400, %cst_190 {dimension_numbers = #tpu.dot_dimension_numbers<[1], [0], [0], [1], [0, 0, 1, 1], [], []>} : vector<2x32xf32>, vector<32x32xf32>, vector<2x32xf32> -> vector<2x32xf32>
    %614 = vector.broadcast %401 : vector<1x32xf32> to vector<2x32xf32>
    %615 = arith.addf %613, %614 : vector<2x32xf32>
    %616 = arith.addf %567, %591 : vector<2x32xf32>
    %cst_191 = arith.constant 2.000000e+00 : f32
    %617 = vector.broadcast %cst_191 : f32 to vector<2x32xf32>
    %618 = arith.mulf %617, %616 : vector<2x32xf32>
    %619 = arith.addf %543, %618 : vector<2x32xf32>
    %620 = arith.addf %619, %615 : vector<2x32xf32>
    %621 = vector.broadcast %522 : f32 to vector<2x32xf32>
    %622 = arith.mulf %621, %620 : vector<2x32xf32>
    %623 = arith.addf %512, %622 : vector<2x32xf32>
    %c2_192 = arith.constant 2 : index
    %c0_193 = arith.constant 0 : index
    %c0_194 = arith.constant 0 : index
    %624 = vector.load %arg1[%c2_192, %c0_193, %c0_194] : memref<8x2x32xf32, #tpu.memory_space<vmem>>, vector<1x2x32xf32>
    %625 = vector.shape_cast %624 : vector<1x2x32xf32> to vector<2x32xf32>
    %626 = arith.mulf %623, %625 : vector<2x32xf32>
    %cst_195 = arith.constant dense<0.000000e+00> : vector<2xf32>
    %627 = vector.multi_reduction <add>, %626, %cst_195 [1] : vector<2x32xf32> to vector<2xf32>
    %c2_196 = arith.constant 2 : index
    %c0_197 = arith.constant 0 : index
    %628 = vector.load %arg15[%c2_196, %c0_197] : memref<8x2xf32, #tpu.memory_space<vmem>>, vector<1x2xf32>
    %629 = vector.shape_cast %628 : vector<1x2xf32> to vector<2xf32>
    %630 = vector.shape_cast %627 : vector<2xf32> to vector<1x2xf32>
    tpu.vector_store %arg15[%c2_196, %c0_197], %630 {strides = array<i32>} : memref<8x2xf32, #tpu.memory_space<vmem>>, vector<1x2xf32>,
    %c2_198 = arith.constant 2 : index
    %631 = memref.load %arg2[%c2_198] : memref<21xf32, #tpu.memory_space<smem>>
    %c9 = arith.constant 9 : index
    %632 = memref.load %arg2[%c9] : memref<21xf32, #tpu.memory_space<smem>>
    %c16 = arith.constant 16 : index
    %633 = memref.load %arg2[%c16] : memref<21xf32, #tpu.memory_space<smem>>
    %cst_199 = arith.constant dense<0.000000e+00> : vector<2x32xf32>
    %634 = tpu.matmul %623, %396, %cst_199 {dimension_numbers = #tpu.dot_dimension_numbers<[1], [0], [0], [1], [0, 0, 1, 1], [], []>} : vector<2x32xf32>, vector<32x32xf32>, vector<2x32xf32> -> vector<2x32xf32>
    %635 = vector.broadcast %397 : vector<1x32xf32> to vector<2x32xf32>
    %636 = arith.addf %634, %635 : vector<2x32xf32>
    %cst_200 = arith.constant 0.000000e+00 : f32
    %637 = vector.broadcast %cst_200 : f32 to vector<2x32xf32>
    %638 = arith.cmpf ogt, %636, %637 : vector<2x32xf32>
    %639 = math.exp %636 : vector<2x32xf32>
    %cst_201 = arith.constant 1.000000e+00 : f32
    %640 = vector.broadcast %cst_201 : f32 to vector<2x32xf32>
    %641 = arith.subf %639, %640 : vector<2x32xf32>
    %642 = arith.select %638, %636, %641 : vector<2x32xi1>, vector<2x32xf32>
    %cst_202 = arith.constant dense<0.000000e+00> : vector<2x32xf32>
    %643 = tpu.matmul %642, %398, %cst_202 {dimension_numbers = #tpu.dot_dimension_numbers<[1], [0], [0], [1], [0, 0, 1, 1], [], []>} : vector<2x32xf32>, vector<32x32xf32>, vector<2x32xf32> -> vector<2x32xf32>
    %644 = vector.broadcast %399 : vector<1x32xf32> to vector<2x32xf32>
    %645 = arith.addf %643, %644 : vector<2x32xf32>
    %cst_203 = arith.constant 0.000000e+00 : f32
    %646 = vector.broadcast %cst_203 : f32 to vector<2x32xf32>
    %647 = arith.cmpf ogt, %645, %646 : vector<2x32xf32>
    %648 = math.exp %645 : vector<2x32xf32>
    %cst_204 = arith.constant 1.000000e+00 : f32
    %649 = vector.broadcast %cst_204 : f32 to vector<2x32xf32>
    %650 = arith.subf %648, %649 : vector<2x32xf32>
    %651 = arith.select %647, %645, %650 : vector<2x32xi1>, vector<2x32xf32>
    %cst_205 = arith.constant dense<0.000000e+00> : vector<2x32xf32>
    %652 = tpu.matmul %651, %400, %cst_205 {dimension_numbers = #tpu.dot_dimension_numbers<[1], [0], [0], [1], [0, 0, 1, 1], [], []>} : vector<2x32xf32>, vector<32x32xf32>, vector<2x32xf32> -> vector<2x32xf32>
    %653 = vector.broadcast %401 : vector<1x32xf32> to vector<2x32xf32>
    %654 = arith.addf %652, %653 : vector<2x32xf32>
    %655 = vector.broadcast %632 : f32 to vector<2x32xf32>
    %656 = arith.mulf %655, %654 : vector<2x32xf32>
    %657 = arith.addf %623, %656 : vector<2x32xf32>
    %cst_206 = arith.constant dense<0.000000e+00> : vector<2x32xf32>
    %658 = tpu.matmul %657, %396, %cst_206 {dimension_numbers = #tpu.dot_dimension_numbers<[1], [0], [0], [1], [0, 0, 1, 1], [], []>} : vector<2x32xf32>, vector<32x32xf32>, vector<2x32xf32> -> vector<2x32xf32>
    %659 = vector.broadcast %397 : vector<1x32xf32> to vector<2x32xf32>
    %660 = arith.addf %658, %659 : vector<2x32xf32>
    %cst_207 = arith.constant 0.000000e+00 : f32
    %661 = vector.broadcast %cst_207 : f32 to vector<2x32xf32>
    %662 = arith.cmpf ogt, %660, %661 : vector<2x32xf32>
    %663 = math.exp %660 : vector<2x32xf32>
    %cst_208 = arith.constant 1.000000e+00 : f32
    %664 = vector.broadcast %cst_208 : f32 to vector<2x32xf32>
    %665 = arith.subf %663, %664 : vector<2x32xf32>
    %666 = arith.select %662, %660, %665 : vector<2x32xi1>, vector<2x32xf32>
    %cst_209 = arith.constant dense<0.000000e+00> : vector<2x32xf32>
    %667 = tpu.matmul %666, %398, %cst_209 {dimension_numbers = #tpu.dot_dimension_numbers<[1], [0], [0], [1], [0, 0, 1, 1], [], []>} : vector<2x32xf32>, vector<32x32xf32>, vector<2x32xf32> -> vector<2x32xf32>
    %668 = vector.broadcast %399 : vector<1x32xf32> to vector<2x32xf32>
    %669 = arith.addf %667, %668 : vector<2x32xf32>
    %cst_210 = arith.constant 0.000000e+00 : f32
    %670 = vector.broadcast %cst_210 : f32 to vector<2x32xf32>
    %671 = arith.cmpf ogt, %669, %670 : vector<2x32xf32>
    %672 = math.exp %669 : vector<2x32xf32>
    %cst_211 = arith.constant 1.000000e+00 : f32
    %673 = vector.broadcast %cst_211 : f32 to vector<2x32xf32>
    %674 = arith.subf %672, %673 : vector<2x32xf32>
    %675 = arith.select %671, %669, %674 : vector<2x32xi1>, vector<2x32xf32>
    %cst_212 = arith.constant dense<0.000000e+00> : vector<2x32xf32>
    %676 = tpu.matmul %675, %400, %cst_212 {dimension_numbers = #tpu.dot_dimension_numbers<[1], [0], [0], [1], [0, 0, 1, 1], [], []>} : vector<2x32xf32>, vector<32x32xf32>, vector<2x32xf32> -> vector<2x32xf32>
    %677 = vector.broadcast %401 : vector<1x32xf32> to vector<2x32xf32>
    %678 = arith.addf %676, %677 : vector<2x32xf32>
    %679 = vector.broadcast %632 : f32 to vector<2x32xf32>
    %680 = arith.mulf %679, %678 : vector<2x32xf32>
    %681 = arith.addf %623, %680 : vector<2x32xf32>
    %cst_213 = arith.constant dense<0.000000e+00> : vector<2x32xf32>
    %682 = tpu.matmul %681, %396, %cst_213 {dimension_numbers = #tpu.dot_dimension_numbers<[1], [0], [0], [1], [0, 0, 1, 1], [], []>} : vector<2x32xf32>, vector<32x32xf32>, vector<2x32xf32> -> vector<2x32xf32>
    %683 = vector.broadcast %397 : vector<1x32xf32> to vector<2x32xf32>
    %684 = arith.addf %682, %683 : vector<2x32xf32>
    %cst_214 = arith.constant 0.000000e+00 : f32
    %685 = vector.broadcast %cst_214 : f32 to vector<2x32xf32>
    %686 = arith.cmpf ogt, %684, %685 : vector<2x32xf32>
    %687 = math.exp %684 : vector<2x32xf32>
    %cst_215 = arith.constant 1.000000e+00 : f32
    %688 = vector.broadcast %cst_215 : f32 to vector<2x32xf32>
    %689 = arith.subf %687, %688 : vector<2x32xf32>
    %690 = arith.select %686, %684, %689 : vector<2x32xi1>, vector<2x32xf32>
    %cst_216 = arith.constant dense<0.000000e+00> : vector<2x32xf32>
    %691 = tpu.matmul %690, %398, %cst_216 {dimension_numbers = #tpu.dot_dimension_numbers<[1], [0], [0], [1], [0, 0, 1, 1], [], []>} : vector<2x32xf32>, vector<32x32xf32>, vector<2x32xf32> -> vector<2x32xf32>
    %692 = vector.broadcast %399 : vector<1x32xf32> to vector<2x32xf32>
    %693 = arith.addf %691, %692 : vector<2x32xf32>
    %cst_217 = arith.constant 0.000000e+00 : f32
    %694 = vector.broadcast %cst_217 : f32 to vector<2x32xf32>
    %695 = arith.cmpf ogt, %693, %694 : vector<2x32xf32>
    %696 = math.exp %693 : vector<2x32xf32>
    %cst_218 = arith.constant 1.000000e+00 : f32
    %697 = vector.broadcast %cst_218 : f32 to vector<2x32xf32>
    %698 = arith.subf %696, %697 : vector<2x32xf32>
    %699 = arith.select %695, %693, %698 : vector<2x32xi1>, vector<2x32xf32>
    %cst_219 = arith.constant dense<0.000000e+00> : vector<2x32xf32>
    %700 = tpu.matmul %699, %400, %cst_219 {dimension_numbers = #tpu.dot_dimension_numbers<[1], [0], [0], [1], [0, 0, 1, 1], [], []>} : vector<2x32xf32>, vector<32x32xf32>, vector<2x32xf32> -> vector<2x32xf32>
    %701 = vector.broadcast %401 : vector<1x32xf32> to vector<2x32xf32>
    %702 = arith.addf %700, %701 : vector<2x32xf32>
    %703 = vector.broadcast %631 : f32 to vector<2x32xf32>
    %704 = arith.mulf %703, %702 : vector<2x32xf32>
    %705 = arith.addf %623, %704 : vector<2x32xf32>
    %cst_220 = arith.constant dense<0.000000e+00> : vector<2x32xf32>
    %706 = tpu.matmul %705, %396, %cst_220 {dimension_numbers = #tpu.dot_dimension_numbers<[1], [0], [0], [1], [0, 0, 1, 1], [], []>} : vector<2x32xf32>, vector<32x32xf32>, vector<2x32xf32> -> vector<2x32xf32>
    %707 = vector.broadcast %397 : vector<1x32xf32> to vector<2x32xf32>
    %708 = arith.addf %706, %707 : vector<2x32xf32>
    %cst_221 = arith.constant 0.000000e+00 : f32
    %709 = vector.broadcast %cst_221 : f32 to vector<2x32xf32>
    %710 = arith.cmpf ogt, %708, %709 : vector<2x32xf32>
    %711 = math.exp %708 : vector<2x32xf32>
    %cst_222 = arith.constant 1.000000e+00 : f32
    %712 = vector.broadcast %cst_222 : f32 to vector<2x32xf32>
    %713 = arith.subf %711, %712 : vector<2x32xf32>
    %714 = arith.select %710, %708, %713 : vector<2x32xi1>, vector<2x32xf32>
    %cst_223 = arith.constant dense<0.000000e+00> : vector<2x32xf32>
    %715 = tpu.matmul %714, %398, %cst_223 {dimension_numbers = #tpu.dot_dimension_numbers<[1], [0], [0], [1], [0, 0, 1, 1], [], []>} : vector<2x32xf32>, vector<32x32xf32>, vector<2x32xf32> -> vector<2x32xf32>
    %716 = vector.broadcast %399 : vector<1x32xf32> to vector<2x32xf32>
    %717 = arith.addf %715, %716 : vector<2x32xf32>
    %cst_224 = arith.constant 0.000000e+00 : f32
    %718 = vector.broadcast %cst_224 : f32 to vector<2x32xf32>
    %719 = arith.cmpf ogt, %717, %718 : vector<2x32xf32>
    %720 = math.exp %717 : vector<2x32xf32>
    %cst_225 = arith.constant 1.000000e+00 : f32
    %721 = vector.broadcast %cst_225 : f32 to vector<2x32xf32>
    %722 = arith.subf %720, %721 : vector<2x32xf32>
    %723 = arith.select %719, %717, %722 : vector<2x32xi1>, vector<2x32xf32>
    %cst_226 = arith.constant dense<0.000000e+00> : vector<2x32xf32>
    %724 = tpu.matmul %723, %400, %cst_226 {dimension_numbers = #tpu.dot_dimension_numbers<[1], [0], [0], [1], [0, 0, 1, 1], [], []>} : vector<2x32xf32>, vector<32x32xf32>, vector<2x32xf32> -> vector<2x32xf32>
    %725 = vector.broadcast %401 : vector<1x32xf32> to vector<2x32xf32>
    %726 = arith.addf %724, %725 : vector<2x32xf32>
    %727 = arith.addf %678, %702 : vector<2x32xf32>
    %cst_227 = arith.constant 2.000000e+00 : f32
    %728 = vector.broadcast %cst_227 : f32 to vector<2x32xf32>
    %729 = arith.mulf %728, %727 : vector<2x32xf32>
    %730 = arith.addf %654, %729 : vector<2x32xf32>
    %731 = arith.addf %730, %726 : vector<2x32xf32>
    %732 = vector.broadcast %633 : f32 to vector<2x32xf32>
    %733 = arith.mulf %732, %731 : vector<2x32xf32>
    %734 = arith.addf %623, %733 : vector<2x32xf32>
    %c3_228 = arith.constant 3 : index
    %c0_229 = arith.constant 0 : index
    %c0_230 = arith.constant 0 : index
    %735 = vector.load %arg1[%c3_228, %c0_229, %c0_230] : memref<8x2x32xf32, #tpu.memory_space<vmem>>, vector<1x2x32xf32>
    %736 = vector.shape_cast %735 : vector<1x2x32xf32> to vector<2x32xf32>
    %737 = arith.mulf %734, %736 : vector<2x32xf32>
    %cst_231 = arith.constant dense<0.000000e+00> : vector<2xf32>
    %738 = vector.multi_reduction <add>, %737, %cst_231 [1] : vector<2x32xf32> to vector<2xf32>
    %c3_232 = arith.constant 3 : index
    %c0_233 = arith.constant 0 : index
    %739 = vector.load %arg15[%c3_232, %c0_233] : memref<8x2xf32, #tpu.memory_space<vmem>>, vector<1x2xf32>
    %740 = vector.shape_cast %739 : vector<1x2xf32> to vector<2xf32>
    %741 = vector.shape_cast %738 : vector<2xf32> to vector<1x2xf32>
    tpu.vector_store %arg15[%c3_232, %c0_233], %741 {strides = array<i32>} : memref<8x2xf32, #tpu.memory_space<vmem>>, vector<1x2xf32>,
    %c3_234 = arith.constant 3 : index
    %742 = memref.load %arg2[%c3_234] : memref<21xf32, #tpu.memory_space<smem>>
    %c10 = arith.constant 10 : index
    %743 = memref.load %arg2[%c10] : memref<21xf32, #tpu.memory_space<smem>>
    %c17 = arith.constant 17 : index
    %744 = memref.load %arg2[%c17] : memref<21xf32, #tpu.memory_space<smem>>
    %cst_235 = arith.constant dense<0.000000e+00> : vector<2x32xf32>
    %745 = tpu.matmul %734, %396, %cst_235 {dimension_numbers = #tpu.dot_dimension_numbers<[1], [0], [0], [1], [0, 0, 1, 1], [], []>} : vector<2x32xf32>, vector<32x32xf32>, vector<2x32xf32> -> vector<2x32xf32>
    %746 = vector.broadcast %397 : vector<1x32xf32> to vector<2x32xf32>
    %747 = arith.addf %745, %746 : vector<2x32xf32>
    %cst_236 = arith.constant 0.000000e+00 : f32
    %748 = vector.broadcast %cst_236 : f32 to vector<2x32xf32>
    %749 = arith.cmpf ogt, %747, %748 : vector<2x32xf32>
    %750 = math.exp %747 : vector<2x32xf32>
    %cst_237 = arith.constant 1.000000e+00 : f32
    %751 = vector.broadcast %cst_237 : f32 to vector<2x32xf32>
    %752 = arith.subf %750, %751 : vector<2x32xf32>
    %753 = arith.select %749, %747, %752 : vector<2x32xi1>, vector<2x32xf32>
    %cst_238 = arith.constant dense<0.000000e+00> : vector<2x32xf32>
    %754 = tpu.matmul %753, %398, %cst_238 {dimension_numbers = #tpu.dot_dimension_numbers<[1], [0], [0], [1], [0, 0, 1, 1], [], []>} : vector<2x32xf32>, vector<32x32xf32>, vector<2x32xf32> -> vector<2x32xf32>
    %755 = vector.broadcast %399 : vector<1x32xf32> to vector<2x32xf32>
    %756 = arith.addf %754, %755 : vector<2x32xf32>
    %cst_239 = arith.constant 0.000000e+00 : f32
    %757 = vector.broadcast %cst_239 : f32 to vector<2x32xf32>
    %758 = arith.cmpf ogt, %756, %757 : vector<2x32xf32>
    %759 = math.exp %756 : vector<2x32xf32>
    %cst_240 = arith.constant 1.000000e+00 : f32
    %760 = vector.broadcast %cst_240 : f32 to vector<2x32xf32>
    %761 = arith.subf %759, %760 : vector<2x32xf32>
    %762 = arith.select %758, %756, %761 : vector<2x32xi1>, vector<2x32xf32>
    %cst_241 = arith.constant dense<0.000000e+00> : vector<2x32xf32>
    %763 = tpu.matmul %762, %400, %cst_241 {dimension_numbers = #tpu.dot_dimension_numbers<[1], [0], [0], [1], [0, 0, 1, 1], [], []>} : vector<2x32xf32>, vector<32x32xf32>, vector<2x32xf32> -> vector<2x32xf32>
    %764 = vector.broadcast %401 : vector<1x32xf32> to vector<2x32xf32>
    %765 = arith.addf %763, %764 : vector<2x32xf32>
    %766 = vector.broadcast %743 : f32 to vector<2x32xf32>
    %767 = arith.mulf %766, %765 : vector<2x32xf32>
    %768 = arith.addf %734, %767 : vector<2x32xf32>
    %cst_242 = arith.constant dense<0.000000e+00> : vector<2x32xf32>
    %769 = tpu.matmul %768, %396, %cst_242 {dimension_numbers = #tpu.dot_dimension_numbers<[1], [0], [0], [1], [0, 0, 1, 1], [], []>} : vector<2x32xf32>, vector<32x32xf32>, vector<2x32xf32> -> vector<2x32xf32>
    %770 = vector.broadcast %397 : vector<1x32xf32> to vector<2x32xf32>
    %771 = arith.addf %769, %770 : vector<2x32xf32>
    %cst_243 = arith.constant 0.000000e+00 : f32
    %772 = vector.broadcast %cst_243 : f32 to vector<2x32xf32>
    %773 = arith.cmpf ogt, %771, %772 : vector<2x32xf32>
    %774 = math.exp %771 : vector<2x32xf32>
    %cst_244 = arith.constant 1.000000e+00 : f32
    %775 = vector.broadcast %cst_244 : f32 to vector<2x32xf32>
    %776 = arith.subf %774, %775 : vector<2x32xf32>
    %777 = arith.select %773, %771, %776 : vector<2x32xi1>, vector<2x32xf32>
    %cst_245 = arith.constant dense<0.000000e+00> : vector<2x32xf32>
    %778 = tpu.matmul %777, %398, %cst_245 {dimension_numbers = #tpu.dot_dimension_numbers<[1], [0], [0], [1], [0, 0, 1, 1], [], []>} : vector<2x32xf32>, vector<32x32xf32>, vector<2x32xf32> -> vector<2x32xf32>
    %779 = vector.broadcast %399 : vector<1x32xf32> to vector<2x32xf32>
    %780 = arith.addf %778, %779 : vector<2x32xf32>
    %cst_246 = arith.constant 0.000000e+00 : f32
    %781 = vector.broadcast %cst_246 : f32 to vector<2x32xf32>
    %782 = arith.cmpf ogt, %780, %781 : vector<2x32xf32>
    %783 = math.exp %780 : vector<2x32xf32>
    %cst_247 = arith.constant 1.000000e+00 : f32
    %784 = vector.broadcast %cst_247 : f32 to vector<2x32xf32>
    %785 = arith.subf %783, %784 : vector<2x32xf32>
    %786 = arith.select %782, %780, %785 : vector<2x32xi1>, vector<2x32xf32>
    %cst_248 = arith.constant dense<0.000000e+00> : vector<2x32xf32>
    %787 = tpu.matmul %786, %400, %cst_248 {dimension_numbers = #tpu.dot_dimension_numbers<[1], [0], [0], [1], [0, 0, 1, 1], [], []>} : vector<2x32xf32>, vector<32x32xf32>, vector<2x32xf32> -> vector<2x32xf32>
    %788 = vector.broadcast %401 : vector<1x32xf32> to vector<2x32xf32>
    %789 = arith.addf %787, %788 : vector<2x32xf32>
    %790 = vector.broadcast %743 : f32 to vector<2x32xf32>
    %791 = arith.mulf %790, %789 : vector<2x32xf32>
    %792 = arith.addf %734, %791 : vector<2x32xf32>
    %cst_249 = arith.constant dense<0.000000e+00> : vector<2x32xf32>
    %793 = tpu.matmul %792, %396, %cst_249 {dimension_numbers = #tpu.dot_dimension_numbers<[1], [0], [0], [1], [0, 0, 1, 1], [], []>} : vector<2x32xf32>, vector<32x32xf32>, vector<2x32xf32> -> vector<2x32xf32>
    %794 = vector.broadcast %397 : vector<1x32xf32> to vector<2x32xf32>
    %795 = arith.addf %793, %794 : vector<2x32xf32>
    %cst_250 = arith.constant 0.000000e+00 : f32
    %796 = vector.broadcast %cst_250 : f32 to vector<2x32xf32>
    %797 = arith.cmpf ogt, %795, %796 : vector<2x32xf32>
    %798 = math.exp %795 : vector<2x32xf32>
    %cst_251 = arith.constant 1.000000e+00 : f32
    %799 = vector.broadcast %cst_251 : f32 to vector<2x32xf32>
    %800 = arith.subf %798, %799 : vector<2x32xf32>
    %801 = arith.select %797, %795, %800 : vector<2x32xi1>, vector<2x32xf32>
    %cst_252 = arith.constant dense<0.000000e+00> : vector<2x32xf32>
    %802 = tpu.matmul %801, %398, %cst_252 {dimension_numbers = #tpu.dot_dimension_numbers<[1], [0], [0], [1], [0, 0, 1, 1], [], []>} : vector<2x32xf32>, vector<32x32xf32>, vector<2x32xf32> -> vector<2x32xf32>
    %803 = vector.broadcast %399 : vector<1x32xf32> to vector<2x32xf32>
    %804 = arith.addf %802, %803 : vector<2x32xf32>
    %cst_253 = arith.constant 0.000000e+00 : f32
    %805 = vector.broadcast %cst_253 : f32 to vector<2x32xf32>
    %806 = arith.cmpf ogt, %804, %805 : vector<2x32xf32>
    %807 = math.exp %804 : vector<2x32xf32>
    %cst_254 = arith.constant 1.000000e+00 : f32
    %808 = vector.broadcast %cst_254 : f32 to vector<2x32xf32>
    %809 = arith.subf %807, %808 : vector<2x32xf32>
    %810 = arith.select %806, %804, %809 : vector<2x32xi1>, vector<2x32xf32>
    %cst_255 = arith.constant dense<0.000000e+00> : vector<2x32xf32>
    %811 = tpu.matmul %810, %400, %cst_255 {dimension_numbers = #tpu.dot_dimension_numbers<[1], [0], [0], [1], [0, 0, 1, 1], [], []>} : vector<2x32xf32>, vector<32x32xf32>, vector<2x32xf32> -> vector<2x32xf32>
    %812 = vector.broadcast %401 : vector<1x32xf32> to vector<2x32xf32>
    %813 = arith.addf %811, %812 : vector<2x32xf32>
    %814 = vector.broadcast %742 : f32 to vector<2x32xf32>
    %815 = arith.mulf %814, %813 : vector<2x32xf32>
    %816 = arith.addf %734, %815 : vector<2x32xf32>
    %cst_256 = arith.constant dense<0.000000e+00> : vector<2x32xf32>
    %817 = tpu.matmul %816, %396, %cst_256 {dimension_numbers = #tpu.dot_dimension_numbers<[1], [0], [0], [1], [0, 0, 1, 1], [], []>} : vector<2x32xf32>, vector<32x32xf32>, vector<2x32xf32> -> vector<2x32xf32>
    %818 = vector.broadcast %397 : vector<1x32xf32> to vector<2x32xf32>
    %819 = arith.addf %817, %818 : vector<2x32xf32>
    %cst_257 = arith.constant 0.000000e+00 : f32
    %820 = vector.broadcast %cst_257 : f32 to vector<2x32xf32>
    %821 = arith.cmpf ogt, %819, %820 : vector<2x32xf32>
    %822 = math.exp %819 : vector<2x32xf32>
    %cst_258 = arith.constant 1.000000e+00 : f32
    %823 = vector.broadcast %cst_258 : f32 to vector<2x32xf32>
    %824 = arith.subf %822, %823 : vector<2x32xf32>
    %825 = arith.select %821, %819, %824 : vector<2x32xi1>, vector<2x32xf32>
    %cst_259 = arith.constant dense<0.000000e+00> : vector<2x32xf32>
    %826 = tpu.matmul %825, %398, %cst_259 {dimension_numbers = #tpu.dot_dimension_numbers<[1], [0], [0], [1], [0, 0, 1, 1], [], []>} : vector<2x32xf32>, vector<32x32xf32>, vector<2x32xf32> -> vector<2x32xf32>
    %827 = vector.broadcast %399 : vector<1x32xf32> to vector<2x32xf32>
    %828 = arith.addf %826, %827 : vector<2x32xf32>
    %cst_260 = arith.constant 0.000000e+00 : f32
    %829 = vector.broadcast %cst_260 : f32 to vector<2x32xf32>
    %830 = arith.cmpf ogt, %828, %829 : vector<2x32xf32>
    %831 = math.exp %828 : vector<2x32xf32>
    %cst_261 = arith.constant 1.000000e+00 : f32
    %832 = vector.broadcast %cst_261 : f32 to vector<2x32xf32>
    %833 = arith.subf %831, %832 : vector<2x32xf32>
    %834 = arith.select %830, %828, %833 : vector<2x32xi1>, vector<2x32xf32>
    %cst_262 = arith.constant dense<0.000000e+00> : vector<2x32xf32>
    %835 = tpu.matmul %834, %400, %cst_262 {dimension_numbers = #tpu.dot_dimension_numbers<[1], [0], [0], [1], [0, 0, 1, 1], [], []>} : vector<2x32xf32>, vector<32x32xf32>, vector<2x32xf32> -> vector<2x32xf32>
    %836 = vector.broadcast %401 : vector<1x32xf32> to vector<2x32xf32>
    %837 = arith.addf %835, %836 : vector<2x32xf32>
    %838 = arith.addf %789, %813 : vector<2x32xf32>
    %cst_263 = arith.constant 2.000000e+00 : f32
    %839 = vector.broadcast %cst_263 : f32 to vector<2x32xf32>
    %840 = arith.mulf %839, %838 : vector<2x32xf32>
    %841 = arith.addf %765, %840 : vector<2x32xf32>
    %842 = arith.addf %841, %837 : vector<2x32xf32>
    %843 = vector.broadcast %744 : f32 to vector<2x32xf32>
    %844 = arith.mulf %843, %842 : vector<2x32xf32>
    %845 = arith.addf %734, %844 : vector<2x32xf32>
    %c4_264 = arith.constant 4 : index
    %c0_265 = arith.constant 0 : index
    %c0_266 = arith.constant 0 : index
    %846 = vector.load %arg1[%c4_264, %c0_265, %c0_266] : memref<8x2x32xf32, #tpu.memory_space<vmem>>, vector<1x2x32xf32>
    %847 = vector.shape_cast %846 : vector<1x2x32xf32> to vector<2x32xf32>
    %848 = arith.mulf %845, %847 : vector<2x32xf32>
    %cst_267 = arith.constant dense<0.000000e+00> : vector<2xf32>
    %849 = vector.multi_reduction <add>, %848, %cst_267 [1] : vector<2x32xf32> to vector<2xf32>
    %c4_268 = arith.constant 4 : index
    %c0_269 = arith.constant 0 : index
    %850 = vector.load %arg15[%c4_268, %c0_269] : memref<8x2xf32, #tpu.memory_space<vmem>>, vector<1x2xf32>
    %851 = vector.shape_cast %850 : vector<1x2xf32> to vector<2xf32>
    %852 = vector.shape_cast %849 : vector<2xf32> to vector<1x2xf32>
    tpu.vector_store %arg15[%c4_268, %c0_269], %852 {strides = array<i32>} : memref<8x2xf32, #tpu.memory_space<vmem>>, vector<1x2xf32>,
    %c4_270 = arith.constant 4 : index
    %853 = memref.load %arg2[%c4_270] : memref<21xf32, #tpu.memory_space<smem>>
    %c11 = arith.constant 11 : index
    %854 = memref.load %arg2[%c11] : memref<21xf32, #tpu.memory_space<smem>>
    %c18 = arith.constant 18 : index
    %855 = memref.load %arg2[%c18] : memref<21xf32, #tpu.memory_space<smem>>
    %cst_271 = arith.constant dense<0.000000e+00> : vector<2x32xf32>
    %856 = tpu.matmul %845, %396, %cst_271 {dimension_numbers = #tpu.dot_dimension_numbers<[1], [0], [0], [1], [0, 0, 1, 1], [], []>} : vector<2x32xf32>, vector<32x32xf32>, vector<2x32xf32> -> vector<2x32xf32>
    %857 = vector.broadcast %397 : vector<1x32xf32> to vector<2x32xf32>
    %858 = arith.addf %856, %857 : vector<2x32xf32>
    %cst_272 = arith.constant 0.000000e+00 : f32
    %859 = vector.broadcast %cst_272 : f32 to vector<2x32xf32>
    %860 = arith.cmpf ogt, %858, %859 : vector<2x32xf32>
    %861 = math.exp %858 : vector<2x32xf32>
    %cst_273 = arith.constant 1.000000e+00 : f32
    %862 = vector.broadcast %cst_273 : f32 to vector<2x32xf32>
    %863 = arith.subf %861, %862 : vector<2x32xf32>
    %864 = arith.select %860, %858, %863 : vector<2x32xi1>, vector<2x32xf32>
    %cst_274 = arith.constant dense<0.000000e+00> : vector<2x32xf32>
    %865 = tpu.matmul %864, %398, %cst_274 {dimension_numbers = #tpu.dot_dimension_numbers<[1], [0], [0], [1], [0, 0, 1, 1], [], []>} : vector<2x32xf32>, vector<32x32xf32>, vector<2x32xf32> -> vector<2x32xf32>
    %866 = vector.broadcast %399 : vector<1x32xf32> to vector<2x32xf32>
    %867 = arith.addf %865, %866 : vector<2x32xf32>
    %cst_275 = arith.constant 0.000000e+00 : f32
    %868 = vector.broadcast %cst_275 : f32 to vector<2x32xf32>
    %869 = arith.cmpf ogt, %867, %868 : vector<2x32xf32>
    %870 = math.exp %867 : vector<2x32xf32>
    %cst_276 = arith.constant 1.000000e+00 : f32
    %871 = vector.broadcast %cst_276 : f32 to vector<2x32xf32>
    %872 = arith.subf %870, %871 : vector<2x32xf32>
    %873 = arith.select %869, %867, %872 : vector<2x32xi1>, vector<2x32xf32>
    %cst_277 = arith.constant dense<0.000000e+00> : vector<2x32xf32>
    %874 = tpu.matmul %873, %400, %cst_277 {dimension_numbers = #tpu.dot_dimension_numbers<[1], [0], [0], [1], [0, 0, 1, 1], [], []>} : vector<2x32xf32>, vector<32x32xf32>, vector<2x32xf32> -> vector<2x32xf32>
    %875 = vector.broadcast %401 : vector<1x32xf32> to vector<2x32xf32>
    %876 = arith.addf %874, %875 : vector<2x32xf32>
    %877 = vector.broadcast %854 : f32 to vector<2x32xf32>
    %878 = arith.mulf %877, %876 : vector<2x32xf32>
    %879 = arith.addf %845, %878 : vector<2x32xf32>
    %cst_278 = arith.constant dense<0.000000e+00> : vector<2x32xf32>
    %880 = tpu.matmul %879, %396, %cst_278 {dimension_numbers = #tpu.dot_dimension_numbers<[1], [0], [0], [1], [0, 0, 1, 1], [], []>} : vector<2x32xf32>, vector<32x32xf32>, vector<2x32xf32> -> vector<2x32xf32>
    %881 = vector.broadcast %397 : vector<1x32xf32> to vector<2x32xf32>
    %882 = arith.addf %880, %881 : vector<2x32xf32>
    %cst_279 = arith.constant 0.000000e+00 : f32
    %883 = vector.broadcast %cst_279 : f32 to vector<2x32xf32>
    %884 = arith.cmpf ogt, %882, %883 : vector<2x32xf32>
    %885 = math.exp %882 : vector<2x32xf32>
    %cst_280 = arith.constant 1.000000e+00 : f32
    %886 = vector.broadcast %cst_280 : f32 to vector<2x32xf32>
    %887 = arith.subf %885, %886 : vector<2x32xf32>
    %888 = arith.select %884, %882, %887 : vector<2x32xi1>, vector<2x32xf32>
    %cst_281 = arith.constant dense<0.000000e+00> : vector<2x32xf32>
    %889 = tpu.matmul %888, %398, %cst_281 {dimension_numbers = #tpu.dot_dimension_numbers<[1], [0], [0], [1], [0, 0, 1, 1], [], []>} : vector<2x32xf32>, vector<32x32xf32>, vector<2x32xf32> -> vector<2x32xf32>
    %890 = vector.broadcast %399 : vector<1x32xf32> to vector<2x32xf32>
    %891 = arith.addf %889, %890 : vector<2x32xf32>
    %cst_282 = arith.constant 0.000000e+00 : f32
    %892 = vector.broadcast %cst_282 : f32 to vector<2x32xf32>
    %893 = arith.cmpf ogt, %891, %892 : vector<2x32xf32>
    %894 = math.exp %891 : vector<2x32xf32>
    %cst_283 = arith.constant 1.000000e+00 : f32
    %895 = vector.broadcast %cst_283 : f32 to vector<2x32xf32>
    %896 = arith.subf %894, %895 : vector<2x32xf32>
    %897 = arith.select %893, %891, %896 : vector<2x32xi1>, vector<2x32xf32>
    %cst_284 = arith.constant dense<0.000000e+00> : vector<2x32xf32>
    %898 = tpu.matmul %897, %400, %cst_284 {dimension_numbers = #tpu.dot_dimension_numbers<[1], [0], [0], [1], [0, 0, 1, 1], [], []>} : vector<2x32xf32>, vector<32x32xf32>, vector<2x32xf32> -> vector<2x32xf32>
    %899 = vector.broadcast %401 : vector<1x32xf32> to vector<2x32xf32>
    %900 = arith.addf %898, %899 : vector<2x32xf32>
    %901 = vector.broadcast %854 : f32 to vector<2x32xf32>
    %902 = arith.mulf %901, %900 : vector<2x32xf32>
    %903 = arith.addf %845, %902 : vector<2x32xf32>
    %cst_285 = arith.constant dense<0.000000e+00> : vector<2x32xf32>
    %904 = tpu.matmul %903, %396, %cst_285 {dimension_numbers = #tpu.dot_dimension_numbers<[1], [0], [0], [1], [0, 0, 1, 1], [], []>} : vector<2x32xf32>, vector<32x32xf32>, vector<2x32xf32> -> vector<2x32xf32>
    %905 = vector.broadcast %397 : vector<1x32xf32> to vector<2x32xf32>
    %906 = arith.addf %904, %905 : vector<2x32xf32>
    %cst_286 = arith.constant 0.000000e+00 : f32
    %907 = vector.broadcast %cst_286 : f32 to vector<2x32xf32>
    %908 = arith.cmpf ogt, %906, %907 : vector<2x32xf32>
    %909 = math.exp %906 : vector<2x32xf32>
    %cst_287 = arith.constant 1.000000e+00 : f32
    %910 = vector.broadcast %cst_287 : f32 to vector<2x32xf32>
    %911 = arith.subf %909, %910 : vector<2x32xf32>
    %912 = arith.select %908, %906, %911 : vector<2x32xi1>, vector<2x32xf32>
    %cst_288 = arith.constant dense<0.000000e+00> : vector<2x32xf32>
    %913 = tpu.matmul %912, %398, %cst_288 {dimension_numbers = #tpu.dot_dimension_numbers<[1], [0], [0], [1], [0, 0, 1, 1], [], []>} : vector<2x32xf32>, vector<32x32xf32>, vector<2x32xf32> -> vector<2x32xf32>
    %914 = vector.broadcast %399 : vector<1x32xf32> to vector<2x32xf32>
    %915 = arith.addf %913, %914 : vector<2x32xf32>
    %cst_289 = arith.constant 0.000000e+00 : f32
    %916 = vector.broadcast %cst_289 : f32 to vector<2x32xf32>
    %917 = arith.cmpf ogt, %915, %916 : vector<2x32xf32>
    %918 = math.exp %915 : vector<2x32xf32>
    %cst_290 = arith.constant 1.000000e+00 : f32
    %919 = vector.broadcast %cst_290 : f32 to vector<2x32xf32>
    %920 = arith.subf %918, %919 : vector<2x32xf32>
    %921 = arith.select %917, %915, %920 : vector<2x32xi1>, vector<2x32xf32>
    %cst_291 = arith.constant dense<0.000000e+00> : vector<2x32xf32>
    %922 = tpu.matmul %921, %400, %cst_291 {dimension_numbers = #tpu.dot_dimension_numbers<[1], [0], [0], [1], [0, 0, 1, 1], [], []>} : vector<2x32xf32>, vector<32x32xf32>, vector<2x32xf32> -> vector<2x32xf32>
    %923 = vector.broadcast %401 : vector<1x32xf32> to vector<2x32xf32>
    %924 = arith.addf %922, %923 : vector<2x32xf32>
    %925 = vector.broadcast %853 : f32 to vector<2x32xf32>
    %926 = arith.mulf %925, %924 : vector<2x32xf32>
    %927 = arith.addf %845, %926 : vector<2x32xf32>
    %cst_292 = arith.constant dense<0.000000e+00> : vector<2x32xf32>
    %928 = tpu.matmul %927, %396, %cst_292 {dimension_numbers = #tpu.dot_dimension_numbers<[1], [0], [0], [1], [0, 0, 1, 1], [], []>} : vector<2x32xf32>, vector<32x32xf32>, vector<2x32xf32> -> vector<2x32xf32>
    %929 = vector.broadcast %397 : vector<1x32xf32> to vector<2x32xf32>
    %930 = arith.addf %928, %929 : vector<2x32xf32>
    %cst_293 = arith.constant 0.000000e+00 : f32
    %931 = vector.broadcast %cst_293 : f32 to vector<2x32xf32>
    %932 = arith.cmpf ogt, %930, %931 : vector<2x32xf32>
    %933 = math.exp %930 : vector<2x32xf32>
    %cst_294 = arith.constant 1.000000e+00 : f32
    %934 = vector.broadcast %cst_294 : f32 to vector<2x32xf32>
    %935 = arith.subf %933, %934 : vector<2x32xf32>
    %936 = arith.select %932, %930, %935 : vector<2x32xi1>, vector<2x32xf32>
    %cst_295 = arith.constant dense<0.000000e+00> : vector<2x32xf32>
    %937 = tpu.matmul %936, %398, %cst_295 {dimension_numbers = #tpu.dot_dimension_numbers<[1], [0], [0], [1], [0, 0, 1, 1], [], []>} : vector<2x32xf32>, vector<32x32xf32>, vector<2x32xf32> -> vector<2x32xf32>
    %938 = vector.broadcast %399 : vector<1x32xf32> to vector<2x32xf32>
    %939 = arith.addf %937, %938 : vector<2x32xf32>
    %cst_296 = arith.constant 0.000000e+00 : f32
    %940 = vector.broadcast %cst_296 : f32 to vector<2x32xf32>
    %941 = arith.cmpf ogt, %939, %940 : vector<2x32xf32>
    %942 = math.exp %939 : vector<2x32xf32>
    %cst_297 = arith.constant 1.000000e+00 : f32
    %943 = vector.broadcast %cst_297 : f32 to vector<2x32xf32>
    %944 = arith.subf %942, %943 : vector<2x32xf32>
    %945 = arith.select %941, %939, %944 : vector<2x32xi1>, vector<2x32xf32>
    %cst_298 = arith.constant dense<0.000000e+00> : vector<2x32xf32>
    %946 = tpu.matmul %945, %400, %cst_298 {dimension_numbers = #tpu.dot_dimension_numbers<[1], [0], [0], [1], [0, 0, 1, 1], [], []>} : vector<2x32xf32>, vector<32x32xf32>, vector<2x32xf32> -> vector<2x32xf32>
    %947 = vector.broadcast %401 : vector<1x32xf32> to vector<2x32xf32>
    %948 = arith.addf %946, %947 : vector<2x32xf32>
    %949 = arith.addf %900, %924 : vector<2x32xf32>
    %cst_299 = arith.constant 2.000000e+00 : f32
    %950 = vector.broadcast %cst_299 : f32 to vector<2x32xf32>
    %951 = arith.mulf %950, %949 : vector<2x32xf32>
    %952 = arith.addf %876, %951 : vector<2x32xf32>
    %953 = arith.addf %952, %948 : vector<2x32xf32>
    %954 = vector.broadcast %855 : f32 to vector<2x32xf32>
    %955 = arith.mulf %954, %953 : vector<2x32xf32>
    %956 = arith.addf %845, %955 : vector<2x32xf32>
    %c5_300 = arith.constant 5 : index
    %c0_301 = arith.constant 0 : index
    %c0_302 = arith.constant 0 : index
    %957 = vector.load %arg1[%c5_300, %c0_301, %c0_302] : memref<8x2x32xf32, #tpu.memory_space<vmem>>, vector<1x2x32xf32>
    %958 = vector.shape_cast %957 : vector<1x2x32xf32> to vector<2x32xf32>
    %959 = arith.mulf %956, %958 : vector<2x32xf32>
    %cst_303 = arith.constant dense<0.000000e+00> : vector<2xf32>
    %960 = vector.multi_reduction <add>, %959, %cst_303 [1] : vector<2x32xf32> to vector<2xf32>
    %c5_304 = arith.constant 5 : index
    %c0_305 = arith.constant 0 : index
    %961 = vector.load %arg15[%c5_304, %c0_305] : memref<8x2xf32, #tpu.memory_space<vmem>>, vector<1x2xf32>
    %962 = vector.shape_cast %961 : vector<1x2xf32> to vector<2xf32>
    %963 = vector.shape_cast %960 : vector<2xf32> to vector<1x2xf32>
    tpu.vector_store %arg15[%c5_304, %c0_305], %963 {strides = array<i32>} : memref<8x2xf32, #tpu.memory_space<vmem>>, vector<1x2xf32>,
    %c5_306 = arith.constant 5 : index
    %964 = memref.load %arg2[%c5_306] : memref<21xf32, #tpu.memory_space<smem>>
    %c12 = arith.constant 12 : index
    %965 = memref.load %arg2[%c12] : memref<21xf32, #tpu.memory_space<smem>>
    %c19 = arith.constant 19 : index
    %966 = memref.load %arg2[%c19] : memref<21xf32, #tpu.memory_space<smem>>
    %cst_307 = arith.constant dense<0.000000e+00> : vector<2x32xf32>
    %967 = tpu.matmul %956, %396, %cst_307 {dimension_numbers = #tpu.dot_dimension_numbers<[1], [0], [0], [1], [0, 0, 1, 1], [], []>} : vector<2x32xf32>, vector<32x32xf32>, vector<2x32xf32> -> vector<2x32xf32>
    %968 = vector.broadcast %397 : vector<1x32xf32> to vector<2x32xf32>
    %969 = arith.addf %967, %968 : vector<2x32xf32>
    %cst_308 = arith.constant 0.000000e+00 : f32
    %970 = vector.broadcast %cst_308 : f32 to vector<2x32xf32>
    %971 = arith.cmpf ogt, %969, %970 : vector<2x32xf32>
    %972 = math.exp %969 : vector<2x32xf32>
    %cst_309 = arith.constant 1.000000e+00 : f32
    %973 = vector.broadcast %cst_309 : f32 to vector<2x32xf32>
    %974 = arith.subf %972, %973 : vector<2x32xf32>
    %975 = arith.select %971, %969, %974 : vector<2x32xi1>, vector<2x32xf32>
    %cst_310 = arith.constant dense<0.000000e+00> : vector<2x32xf32>
    %976 = tpu.matmul %975, %398, %cst_310 {dimension_numbers = #tpu.dot_dimension_numbers<[1], [0], [0], [1], [0, 0, 1, 1], [], []>} : vector<2x32xf32>, vector<32x32xf32>, vector<2x32xf32> -> vector<2x32xf32>
    %977 = vector.broadcast %399 : vector<1x32xf32> to vector<2x32xf32>
    %978 = arith.addf %976, %977 : vector<2x32xf32>
    %cst_311 = arith.constant 0.000000e+00 : f32
    %979 = vector.broadcast %cst_311 : f32 to vector<2x32xf32>
    %980 = arith.cmpf ogt, %978, %979 : vector<2x32xf32>
    %981 = math.exp %978 : vector<2x32xf32>
    %cst_312 = arith.constant 1.000000e+00 : f32
    %982 = vector.broadcast %cst_312 : f32 to vector<2x32xf32>
    %983 = arith.subf %981, %982 : vector<2x32xf32>
    %984 = arith.select %980, %978, %983 : vector<2x32xi1>, vector<2x32xf32>
    %cst_313 = arith.constant dense<0.000000e+00> : vector<2x32xf32>
    %985 = tpu.matmul %984, %400, %cst_313 {dimension_numbers = #tpu.dot_dimension_numbers<[1], [0], [0], [1], [0, 0, 1, 1], [], []>} : vector<2x32xf32>, vector<32x32xf32>, vector<2x32xf32> -> vector<2x32xf32>
    %986 = vector.broadcast %401 : vector<1x32xf32> to vector<2x32xf32>
    %987 = arith.addf %985, %986 : vector<2x32xf32>
    %988 = vector.broadcast %965 : f32 to vector<2x32xf32>
    %989 = arith.mulf %988, %987 : vector<2x32xf32>
    %990 = arith.addf %956, %989 : vector<2x32xf32>
    %cst_314 = arith.constant dense<0.000000e+00> : vector<2x32xf32>
    %991 = tpu.matmul %990, %396, %cst_314 {dimension_numbers = #tpu.dot_dimension_numbers<[1], [0], [0], [1], [0, 0, 1, 1], [], []>} : vector<2x32xf32>, vector<32x32xf32>, vector<2x32xf32> -> vector<2x32xf32>
    %992 = vector.broadcast %397 : vector<1x32xf32> to vector<2x32xf32>
    %993 = arith.addf %991, %992 : vector<2x32xf32>
    %cst_315 = arith.constant 0.000000e+00 : f32
    %994 = vector.broadcast %cst_315 : f32 to vector<2x32xf32>
    %995 = arith.cmpf ogt, %993, %994 : vector<2x32xf32>
    %996 = math.exp %993 : vector<2x32xf32>
    %cst_316 = arith.constant 1.000000e+00 : f32
    %997 = vector.broadcast %cst_316 : f32 to vector<2x32xf32>
    %998 = arith.subf %996, %997 : vector<2x32xf32>
    %999 = arith.select %995, %993, %998 : vector<2x32xi1>, vector<2x32xf32>
    %cst_317 = arith.constant dense<0.000000e+00> : vector<2x32xf32>
    %1000 = tpu.matmul %999, %398, %cst_317 {dimension_numbers = #tpu.dot_dimension_numbers<[1], [0], [0], [1], [0, 0, 1, 1], [], []>} : vector<2x32xf32>, vector<32x32xf32>, vector<2x32xf32> -> vector<2x32xf32>
    %1001 = vector.broadcast %399 : vector<1x32xf32> to vector<2x32xf32>
    %1002 = arith.addf %1000, %1001 : vector<2x32xf32>
    %cst_318 = arith.constant 0.000000e+00 : f32
    %1003 = vector.broadcast %cst_318 : f32 to vector<2x32xf32>
    %1004 = arith.cmpf ogt, %1002, %1003 : vector<2x32xf32>
    %1005 = math.exp %1002 : vector<2x32xf32>
    %cst_319 = arith.constant 1.000000e+00 : f32
    %1006 = vector.broadcast %cst_319 : f32 to vector<2x32xf32>
    %1007 = arith.subf %1005, %1006 : vector<2x32xf32>
    %1008 = arith.select %1004, %1002, %1007 : vector<2x32xi1>, vector<2x32xf32>
    %cst_320 = arith.constant dense<0.000000e+00> : vector<2x32xf32>
    %1009 = tpu.matmul %1008, %400, %cst_320 {dimension_numbers = #tpu.dot_dimension_numbers<[1], [0], [0], [1], [0, 0, 1, 1], [], []>} : vector<2x32xf32>, vector<32x32xf32>, vector<2x32xf32> -> vector<2x32xf32>
    %1010 = vector.broadcast %401 : vector<1x32xf32> to vector<2x32xf32>
    %1011 = arith.addf %1009, %1010 : vector<2x32xf32>
    %1012 = vector.broadcast %965 : f32 to vector<2x32xf32>
    %1013 = arith.mulf %1012, %1011 : vector<2x32xf32>
    %1014 = arith.addf %956, %1013 : vector<2x32xf32>
    %cst_321 = arith.constant dense<0.000000e+00> : vector<2x32xf32>
    %1015 = tpu.matmul %1014, %396, %cst_321 {dimension_numbers = #tpu.dot_dimension_numbers<[1], [0], [0], [1], [0, 0, 1, 1], [], []>} : vector<2x32xf32>, vector<32x32xf32>, vector<2x32xf32> -> vector<2x32xf32>
    %1016 = vector.broadcast %397 : vector<1x32xf32> to vector<2x32xf32>
    %1017 = arith.addf %1015, %1016 : vector<2x32xf32>
    %cst_322 = arith.constant 0.000000e+00 : f32
    %1018 = vector.broadcast %cst_322 : f32 to vector<2x32xf32>
    %1019 = arith.cmpf ogt, %1017, %1018 : vector<2x32xf32>
    %1020 = math.exp %1017 : vector<2x32xf32>
    %cst_323 = arith.constant 1.000000e+00 : f32
    %1021 = vector.broadcast %cst_323 : f32 to vector<2x32xf32>
    %1022 = arith.subf %1020, %1021 : vector<2x32xf32>
    %1023 = arith.select %1019, %1017, %1022 : vector<2x32xi1>, vector<2x32xf32>
    %cst_324 = arith.constant dense<0.000000e+00> : vector<2x32xf32>
    %1024 = tpu.matmul %1023, %398, %cst_324 {dimension_numbers = #tpu.dot_dimension_numbers<[1], [0], [0], [1], [0, 0, 1, 1], [], []>} : vector<2x32xf32>, vector<32x32xf32>, vector<2x32xf32> -> vector<2x32xf32>
    %1025 = vector.broadcast %399 : vector<1x32xf32> to vector<2x32xf32>
    %1026 = arith.addf %1024, %1025 : vector<2x32xf32>
    %cst_325 = arith.constant 0.000000e+00 : f32
    %1027 = vector.broadcast %cst_325 : f32 to vector<2x32xf32>
    %1028 = arith.cmpf ogt, %1026, %1027 : vector<2x32xf32>
    %1029 = math.exp %1026 : vector<2x32xf32>
    %cst_326 = arith.constant 1.000000e+00 : f32
    %1030 = vector.broadcast %cst_326 : f32 to vector<2x32xf32>
    %1031 = arith.subf %1029, %1030 : vector<2x32xf32>
    %1032 = arith.select %1028, %1026, %1031 : vector<2x32xi1>, vector<2x32xf32>
    %cst_327 = arith.constant dense<0.000000e+00> : vector<2x32xf32>
    %1033 = tpu.matmul %1032, %400, %cst_327 {dimension_numbers = #tpu.dot_dimension_numbers<[1], [0], [0], [1], [0, 0, 1, 1], [], []>} : vector<2x32xf32>, vector<32x32xf32>, vector<2x32xf32> -> vector<2x32xf32>
    %1034 = vector.broadcast %401 : vector<1x32xf32> to vector<2x32xf32>
    %1035 = arith.addf %1033, %1034 : vector<2x32xf32>
    %1036 = vector.broadcast %964 : f32 to vector<2x32xf32>
    %1037 = arith.mulf %1036, %1035 : vector<2x32xf32>
    %1038 = arith.addf %956, %1037 : vector<2x32xf32>
    %cst_328 = arith.constant dense<0.000000e+00> : vector<2x32xf32>
    %1039 = tpu.matmul %1038, %396, %cst_328 {dimension_numbers = #tpu.dot_dimension_numbers<[1], [0], [0], [1], [0, 0, 1, 1], [], []>} : vector<2x32xf32>, vector<32x32xf32>, vector<2x32xf32> -> vector<2x32xf32>
    %1040 = vector.broadcast %397 : vector<1x32xf32> to vector<2x32xf32>
    %1041 = arith.addf %1039, %1040 : vector<2x32xf32>
    %cst_329 = arith.constant 0.000000e+00 : f32
    %1042 = vector.broadcast %cst_329 : f32 to vector<2x32xf32>
    %1043 = arith.cmpf ogt, %1041, %1042 : vector<2x32xf32>
    %1044 = math.exp %1041 : vector<2x32xf32>
    %cst_330 = arith.constant 1.000000e+00 : f32
    %1045 = vector.broadcast %cst_330 : f32 to vector<2x32xf32>
    %1046 = arith.subf %1044, %1045 : vector<2x32xf32>
    %1047 = arith.select %1043, %1041, %1046 : vector<2x32xi1>, vector<2x32xf32>
    %cst_331 = arith.constant dense<0.000000e+00> : vector<2x32xf32>
    %1048 = tpu.matmul %1047, %398, %cst_331 {dimension_numbers = #tpu.dot_dimension_numbers<[1], [0], [0], [1], [0, 0, 1, 1], [], []>} : vector<2x32xf32>, vector<32x32xf32>, vector<2x32xf32> -> vector<2x32xf32>
    %1049 = vector.broadcast %399 : vector<1x32xf32> to vector<2x32xf32>
    %1050 = arith.addf %1048, %1049 : vector<2x32xf32>
    %cst_332 = arith.constant 0.000000e+00 : f32
    %1051 = vector.broadcast %cst_332 : f32 to vector<2x32xf32>
    %1052 = arith.cmpf ogt, %1050, %1051 : vector<2x32xf32>
    %1053 = math.exp %1050 : vector<2x32xf32>
    %cst_333 = arith.constant 1.000000e+00 : f32
    %1054 = vector.broadcast %cst_333 : f32 to vector<2x32xf32>
    %1055 = arith.subf %1053, %1054 : vector<2x32xf32>
    %1056 = arith.select %1052, %1050, %1055 : vector<2x32xi1>, vector<2x32xf32>
    %cst_334 = arith.constant dense<0.000000e+00> : vector<2x32xf32>
    %1057 = tpu.matmul %1056, %400, %cst_334 {dimension_numbers = #tpu.dot_dimension_numbers<[1], [0], [0], [1], [0, 0, 1, 1], [], []>} : vector<2x32xf32>, vector<32x32xf32>, vector<2x32xf32> -> vector<2x32xf32>
    %1058 = vector.broadcast %401 : vector<1x32xf32> to vector<2x32xf32>
    %1059 = arith.addf %1057, %1058 : vector<2x32xf32>
    %1060 = arith.addf %1011, %1035 : vector<2x32xf32>
    %cst_335 = arith.constant 2.000000e+00 : f32
    %1061 = vector.broadcast %cst_335 : f32 to vector<2x32xf32>
    %1062 = arith.mulf %1061, %1060 : vector<2x32xf32>
    %1063 = arith.addf %987, %1062 : vector<2x32xf32>
    %1064 = arith.addf %1063, %1059 : vector<2x32xf32>
    %1065 = vector.broadcast %966 : f32 to vector<2x32xf32>
    %1066 = arith.mulf %1065, %1064 : vector<2x32xf32>
    %1067 = arith.addf %956, %1066 : vector<2x32xf32>
    %c6_336 = arith.constant 6 : index
    %c0_337 = arith.constant 0 : index
    %c0_338 = arith.constant 0 : index
    %1068 = vector.load %arg1[%c6_336, %c0_337, %c0_338] : memref<8x2x32xf32, #tpu.memory_space<vmem>>, vector<1x2x32xf32>
    %1069 = vector.shape_cast %1068 : vector<1x2x32xf32> to vector<2x32xf32>
    %1070 = arith.mulf %1067, %1069 : vector<2x32xf32>
    %cst_339 = arith.constant dense<0.000000e+00> : vector<2xf32>
    %1071 = vector.multi_reduction <add>, %1070, %cst_339 [1] : vector<2x32xf32> to vector<2xf32>
    %c6_340 = arith.constant 6 : index
    %c0_341 = arith.constant 0 : index
    %1072 = vector.load %arg15[%c6_340, %c0_341] : memref<8x2xf32, #tpu.memory_space<vmem>>, vector<1x2xf32>
    %1073 = vector.shape_cast %1072 : vector<1x2xf32> to vector<2xf32>
    %1074 = vector.shape_cast %1071 : vector<2xf32> to vector<1x2xf32>
    tpu.vector_store %arg15[%c6_340, %c0_341], %1074 {strides = array<i32>} : memref<8x2xf32, #tpu.memory_space<vmem>>, vector<1x2xf32>,
    %c6_342 = arith.constant 6 : index
    %1075 = memref.load %arg2[%c6_342] : memref<21xf32, #tpu.memory_space<smem>>
    %c13 = arith.constant 13 : index
    %1076 = memref.load %arg2[%c13] : memref<21xf32, #tpu.memory_space<smem>>
    %c20 = arith.constant 20 : index
    %1077 = memref.load %arg2[%c20] : memref<21xf32, #tpu.memory_space<smem>>
    %cst_343 = arith.constant dense<0.000000e+00> : vector<2x32xf32>
    %1078 = tpu.matmul %1067, %396, %cst_343 {dimension_numbers = #tpu.dot_dimension_numbers<[1], [0], [0], [1], [0, 0, 1, 1], [], []>} : vector<2x32xf32>, vector<32x32xf32>, vector<2x32xf32> -> vector<2x32xf32>
    %1079 = vector.broadcast %397 : vector<1x32xf32> to vector<2x32xf32>
    %1080 = arith.addf %1078, %1079 : vector<2x32xf32>
    %cst_344 = arith.constant 0.000000e+00 : f32
    %1081 = vector.broadcast %cst_344 : f32 to vector<2x32xf32>
    %1082 = arith.cmpf ogt, %1080, %1081 : vector<2x32xf32>
    %1083 = math.exp %1080 : vector<2x32xf32>
    %cst_345 = arith.constant 1.000000e+00 : f32
    %1084 = vector.broadcast %cst_345 : f32 to vector<2x32xf32>
    %1085 = arith.subf %1083, %1084 : vector<2x32xf32>
    %1086 = arith.select %1082, %1080, %1085 : vector<2x32xi1>, vector<2x32xf32>
    %cst_346 = arith.constant dense<0.000000e+00> : vector<2x32xf32>
    %1087 = tpu.matmul %1086, %398, %cst_346 {dimension_numbers = #tpu.dot_dimension_numbers<[1], [0], [0], [1], [0, 0, 1, 1], [], []>} : vector<2x32xf32>, vector<32x32xf32>, vector<2x32xf32> -> vector<2x32xf32>
    %1088 = vector.broadcast %399 : vector<1x32xf32> to vector<2x32xf32>
    %1089 = arith.addf %1087, %1088 : vector<2x32xf32>
    %cst_347 = arith.constant 0.000000e+00 : f32
    %1090 = vector.broadcast %cst_347 : f32 to vector<2x32xf32>
    %1091 = arith.cmpf ogt, %1089, %1090 : vector<2x32xf32>
    %1092 = math.exp %1089 : vector<2x32xf32>
    %cst_348 = arith.constant 1.000000e+00 : f32
    %1093 = vector.broadcast %cst_348 : f32 to vector<2x32xf32>
    %1094 = arith.subf %1092, %1093 : vector<2x32xf32>
    %1095 = arith.select %1091, %1089, %1094 : vector<2x32xi1>, vector<2x32xf32>
    %cst_349 = arith.constant dense<0.000000e+00> : vector<2x32xf32>
    %1096 = tpu.matmul %1095, %400, %cst_349 {dimension_numbers = #tpu.dot_dimension_numbers<[1], [0], [0], [1], [0, 0, 1, 1], [], []>} : vector<2x32xf32>, vector<32x32xf32>, vector<2x32xf32> -> vector<2x32xf32>
    %1097 = vector.broadcast %401 : vector<1x32xf32> to vector<2x32xf32>
    %1098 = arith.addf %1096, %1097 : vector<2x32xf32>
    %1099 = vector.broadcast %1076 : f32 to vector<2x32xf32>
    %1100 = arith.mulf %1099, %1098 : vector<2x32xf32>
    %1101 = arith.addf %1067, %1100 : vector<2x32xf32>
    %cst_350 = arith.constant dense<0.000000e+00> : vector<2x32xf32>
    %1102 = tpu.matmul %1101, %396, %cst_350 {dimension_numbers = #tpu.dot_dimension_numbers<[1], [0], [0], [1], [0, 0, 1, 1], [], []>} : vector<2x32xf32>, vector<32x32xf32>, vector<2x32xf32> -> vector<2x32xf32>
    %1103 = vector.broadcast %397 : vector<1x32xf32> to vector<2x32xf32>
    %1104 = arith.addf %1102, %1103 : vector<2x32xf32>
    %cst_351 = arith.constant 0.000000e+00 : f32
    %1105 = vector.broadcast %cst_351 : f32 to vector<2x32xf32>
    %1106 = arith.cmpf ogt, %1104, %1105 : vector<2x32xf32>
    %1107 = math.exp %1104 : vector<2x32xf32>
    %cst_352 = arith.constant 1.000000e+00 : f32
    %1108 = vector.broadcast %cst_352 : f32 to vector<2x32xf32>
    %1109 = arith.subf %1107, %1108 : vector<2x32xf32>
    %1110 = arith.select %1106, %1104, %1109 : vector<2x32xi1>, vector<2x32xf32>
    %cst_353 = arith.constant dense<0.000000e+00> : vector<2x32xf32>
    %1111 = tpu.matmul %1110, %398, %cst_353 {dimension_numbers = #tpu.dot_dimension_numbers<[1], [0], [0], [1], [0, 0, 1, 1], [], []>} : vector<2x32xf32>, vector<32x32xf32>, vector<2x32xf32> -> vector<2x32xf32>
    %1112 = vector.broadcast %399 : vector<1x32xf32> to vector<2x32xf32>
    %1113 = arith.addf %1111, %1112 : vector<2x32xf32>
    %cst_354 = arith.constant 0.000000e+00 : f32
    %1114 = vector.broadcast %cst_354 : f32 to vector<2x32xf32>
    %1115 = arith.cmpf ogt, %1113, %1114 : vector<2x32xf32>
    %1116 = math.exp %1113 : vector<2x32xf32>
    %cst_355 = arith.constant 1.000000e+00 : f32
    %1117 = vector.broadcast %cst_355 : f32 to vector<2x32xf32>
    %1118 = arith.subf %1116, %1117 : vector<2x32xf32>
    %1119 = arith.select %1115, %1113, %1118 : vector<2x32xi1>, vector<2x32xf32>
    %cst_356 = arith.constant dense<0.000000e+00> : vector<2x32xf32>
    %1120 = tpu.matmul %1119, %400, %cst_356 {dimension_numbers = #tpu.dot_dimension_numbers<[1], [0], [0], [1], [0, 0, 1, 1], [], []>} : vector<2x32xf32>, vector<32x32xf32>, vector<2x32xf32> -> vector<2x32xf32>
    %1121 = vector.broadcast %401 : vector<1x32xf32> to vector<2x32xf32>
    %1122 = arith.addf %1120, %1121 : vector<2x32xf32>
    %1123 = vector.broadcast %1076 : f32 to vector<2x32xf32>
    %1124 = arith.mulf %1123, %1122 : vector<2x32xf32>
    %1125 = arith.addf %1067, %1124 : vector<2x32xf32>
    %cst_357 = arith.constant dense<0.000000e+00> : vector<2x32xf32>
    %1126 = tpu.matmul %1125, %396, %cst_357 {dimension_numbers = #tpu.dot_dimension_numbers<[1], [0], [0], [1], [0, 0, 1, 1], [], []>} : vector<2x32xf32>, vector<32x32xf32>, vector<2x32xf32> -> vector<2x32xf32>
    %1127 = vector.broadcast %397 : vector<1x32xf32> to vector<2x32xf32>
    %1128 = arith.addf %1126, %1127 : vector<2x32xf32>
    %cst_358 = arith.constant 0.000000e+00 : f32
    %1129 = vector.broadcast %cst_358 : f32 to vector<2x32xf32>
    %1130 = arith.cmpf ogt, %1128, %1129 : vector<2x32xf32>
    %1131 = math.exp %1128 : vector<2x32xf32>
    %cst_359 = arith.constant 1.000000e+00 : f32
    %1132 = vector.broadcast %cst_359 : f32 to vector<2x32xf32>
    %1133 = arith.subf %1131, %1132 : vector<2x32xf32>
    %1134 = arith.select %1130, %1128, %1133 : vector<2x32xi1>, vector<2x32xf32>
    %cst_360 = arith.constant dense<0.000000e+00> : vector<2x32xf32>
    %1135 = tpu.matmul %1134, %398, %cst_360 {dimension_numbers = #tpu.dot_dimension_numbers<[1], [0], [0], [1], [0, 0, 1, 1], [], []>} : vector<2x32xf32>, vector<32x32xf32>, vector<2x32xf32> -> vector<2x32xf32>
    %1136 = vector.broadcast %399 : vector<1x32xf32> to vector<2x32xf32>
    %1137 = arith.addf %1135, %1136 : vector<2x32xf32>
    %cst_361 = arith.constant 0.000000e+00 : f32
    %1138 = vector.broadcast %cst_361 : f32 to vector<2x32xf32>
    %1139 = arith.cmpf ogt, %1137, %1138 : vector<2x32xf32>
    %1140 = math.exp %1137 : vector<2x32xf32>
    %cst_362 = arith.constant 1.000000e+00 : f32
    %1141 = vector.broadcast %cst_362 : f32 to vector<2x32xf32>
    %1142 = arith.subf %1140, %1141 : vector<2x32xf32>
    %1143 = arith.select %1139, %1137, %1142 : vector<2x32xi1>, vector<2x32xf32>
    %cst_363 = arith.constant dense<0.000000e+00> : vector<2x32xf32>
    %1144 = tpu.matmul %1143, %400, %cst_363 {dimension_numbers = #tpu.dot_dimension_numbers<[1], [0], [0], [1], [0, 0, 1, 1], [], []>} : vector<2x32xf32>, vector<32x32xf32>, vector<2x32xf32> -> vector<2x32xf32>
    %1145 = vector.broadcast %401 : vector<1x32xf32> to vector<2x32xf32>
    %1146 = arith.addf %1144, %1145 : vector<2x32xf32>
    %1147 = vector.broadcast %1075 : f32 to vector<2x32xf32>
    %1148 = arith.mulf %1147, %1146 : vector<2x32xf32>
    %1149 = arith.addf %1067, %1148 : vector<2x32xf32>
    %cst_364 = arith.constant dense<0.000000e+00> : vector<2x32xf32>
    %1150 = tpu.matmul %1149, %396, %cst_364 {dimension_numbers = #tpu.dot_dimension_numbers<[1], [0], [0], [1], [0, 0, 1, 1], [], []>} : vector<2x32xf32>, vector<32x32xf32>, vector<2x32xf32> -> vector<2x32xf32>
    %1151 = vector.broadcast %397 : vector<1x32xf32> to vector<2x32xf32>
    %1152 = arith.addf %1150, %1151 : vector<2x32xf32>
    %cst_365 = arith.constant 0.000000e+00 : f32
    %1153 = vector.broadcast %cst_365 : f32 to vector<2x32xf32>
    %1154 = arith.cmpf ogt, %1152, %1153 : vector<2x32xf32>
    %1155 = math.exp %1152 : vector<2x32xf32>
    %cst_366 = arith.constant 1.000000e+00 : f32
    %1156 = vector.broadcast %cst_366 : f32 to vector<2x32xf32>
    %1157 = arith.subf %1155, %1156 : vector<2x32xf32>
    %1158 = arith.select %1154, %1152, %1157 : vector<2x32xi1>, vector<2x32xf32>
    %cst_367 = arith.constant dense<0.000000e+00> : vector<2x32xf32>
    %1159 = tpu.matmul %1158, %398, %cst_367 {dimension_numbers = #tpu.dot_dimension_numbers<[1], [0], [0], [1], [0, 0, 1, 1], [], []>} : vector<2x32xf32>, vector<32x32xf32>, vector<2x32xf32> -> vector<2x32xf32>
    %1160 = vector.broadcast %399 : vector<1x32xf32> to vector<2x32xf32>
    %1161 = arith.addf %1159, %1160 : vector<2x32xf32>
    %cst_368 = arith.constant 0.000000e+00 : f32
    %1162 = vector.broadcast %cst_368 : f32 to vector<2x32xf32>
    %1163 = arith.cmpf ogt, %1161, %1162 : vector<2x32xf32>
    %1164 = math.exp %1161 : vector<2x32xf32>
    %cst_369 = arith.constant 1.000000e+00 : f32
    %1165 = vector.broadcast %cst_369 : f32 to vector<2x32xf32>
    %1166 = arith.subf %1164, %1165 : vector<2x32xf32>
    %1167 = arith.select %1163, %1161, %1166 : vector<2x32xi1>, vector<2x32xf32>
    %cst_370 = arith.constant dense<0.000000e+00> : vector<2x32xf32>
    %1168 = tpu.matmul %1167, %400, %cst_370 {dimension_numbers = #tpu.dot_dimension_numbers<[1], [0], [0], [1], [0, 0, 1, 1], [], []>} : vector<2x32xf32>, vector<32x32xf32>, vector<2x32xf32> -> vector<2x32xf32>
    %1169 = vector.broadcast %401 : vector<1x32xf32> to vector<2x32xf32>
    %1170 = arith.addf %1168, %1169 : vector<2x32xf32>
    %1171 = arith.addf %1122, %1146 : vector<2x32xf32>
    %cst_371 = arith.constant 2.000000e+00 : f32
    %1172 = vector.broadcast %cst_371 : f32 to vector<2x32xf32>
    %1173 = arith.mulf %1172, %1171 : vector<2x32xf32>
    %1174 = arith.addf %1098, %1173 : vector<2x32xf32>
    %1175 = arith.addf %1174, %1170 : vector<2x32xf32>
    %1176 = vector.broadcast %1077 : f32 to vector<2x32xf32>
    %1177 = arith.mulf %1176, %1175 : vector<2x32xf32>
    %1178 = arith.addf %1067, %1177 : vector<2x32xf32>
    %c7_372 = arith.constant 7 : index
    %c0_373 = arith.constant 0 : index
    %c0_374 = arith.constant 0 : index
    %1179 = vector.load %arg1[%c7_372, %c0_373, %c0_374] : memref<8x2x32xf32, #tpu.memory_space<vmem>>, vector<1x2x32xf32>
    %1180 = vector.shape_cast %1179 : vector<1x2x32xf32> to vector<2x32xf32>
    %1181 = arith.mulf %1178, %1180 : vector<2x32xf32>
    %cst_375 = arith.constant dense<0.000000e+00> : vector<2xf32>
    %1182 = vector.multi_reduction <add>, %1181, %cst_375 [1] : vector<2x32xf32> to vector<2xf32>
    %c7_376 = arith.constant 7 : index
    %c0_377 = arith.constant 0 : index
    %1183 = vector.load %arg15[%c7_376, %c0_377] : memref<8x2xf32, #tpu.memory_space<vmem>>, vector<1x2xf32>
    %1184 = vector.shape_cast %1183 : vector<1x2xf32> to vector<2xf32>
    %1185 = vector.shape_cast %1182 : vector<2xf32> to vector<1x2xf32>
    tpu.vector_store %arg15[%c7_376, %c0_377], %1185 {strides = array<i32>} : memref<8x2xf32, #tpu.memory_space<vmem>>, vector<1x2xf32>,
    return
  }
}

</mosaic_0001>

<bundles_post_ra>
// kernel: tpu_custom_call.1
= control target key start
LH: loop header
LB: loop body
LE: loop exit
PB: predicated region body
PF: predicated region fallthrough
CT: control target
= control target key end

     0   :  { %20 = vsyncpa [#allocation4], 0  ;;  %s4763_s0 = inlined_call_operand.vmem [shape: f32[8,2,1], index: 0, kind: input, shape index: {}]   ;;  %s4764_s1 = inlined_call_operand.vmem [shape: f32[8,2,32], index: 1, kind: input, shape index: {}]   ;;  %s4765_s2 = inlined_call_operand.hbm [shape: f32[21], index: 2, kind: input, shape index: {}]   ;;  %s4766_s3 = inlined_call_operand.vmem [shape: f32[3,1,32], index: 3, kind: input, shape index: {}]   ;;  %s4767_s4 = inlined_call_operand.hbm [shape: f32[3,1,32], index: 4, kind: input, shape index: {}]   ;;  %s4768_s5 = inlined_call_operand.hbm [shape: f32[32,96], index: 5, kind: input, shape index: {}]   ;;  %s4769_s6 = inlined_call_operand.vmem [shape: f32[1,96], index: 6, kind: input, shape index: {}]   ;;  %s4770_s7 = inlined_call_operand.hbm [shape: f32[32,32], index: 7, kind: input, shape index: {}]   ;;  %s4771_s8 = inlined_call_operand.vmem [shape: f32[1,32], index: 8, kind: input, shape index: {}]   ;;  %s4772_s9 = inlined_call_operand.hbm [shape: f32[32,32], index: 9, kind: input, shape index: {}]   ;;  %s4773_s10 = inlined_call_operand.vmem [shape: f32[1,32], index: 10, kind: input, shape index: {}]   ;;  %s4774_s11 = inlined_call_operand.hbm [shape: f32[32,32], index: 11, kind: input, shape index: {}]   ;;  %s4775_s12 = inlined_call_operand.vmem [shape: f32[1,32], index: 12, kind: input, shape index: {}]   ;;  %s4776_s13 = inlined_call_operand.hbm [shape: f32[32,32], index: 13, kind: input, shape index: {}]   ;;  %s4777_s14 = inlined_call_operand.vmem [shape: f32[1,32], index: 14, kind: input, shape index: {}]   ;;  %s4778_s15 = inlined_call_operand.vmem [shape: f32[8,2], index: 15, kind: output, shape index: {}]  }
   0x1   :  { %21 = vsyncpa [#allocation3], 0 }
   0x2   :  { %22 = vsyncpa [#allocation7], 0 }
   0x3   :  { %23 = vsyncpa [#allocation10], 0  ;;  %s57_s20 = sshll.u32 %s4768_s5, 4  ;;  %s58_s20 = int_to_ptr.hbm [resolvable:$true] %s57_s20 }
   0x4   :  { %24 = vsyncpa [#allocation13], 0  ;;  %s3715_s21 = smov [#allocation6]   ;;  %s87_s25 = sshll.u32 %s4772_s9, 4  ;;  %s88_s25 = int_to_ptr.hbm [resolvable:$true] %s87_s25 }
   0x5   :  { %s59_s22 = sshll.u32 %s3715_s21, 4  ;;  %s3716_s26 = smov 128   ;;  %s60_s22 = int_to_ptr.vmem [resolvable:$true] %s59_s22 }
   0x6   :  { %s3717_s27 = smov 8   ;;  %s3718_s28 = smov [#allocation9]  }
   0x7   :  { %65 = dma.hbm_to_vmem [thread:$0]  %s58_s20, 512, %s60_s22, [#allocation7], %s3716_s26, %s3716_s26, %s3717_s27  }
   0x8   :  { %s89_s29 = sshll.u32 %s3718_s28, 4  ;;  %s34_s16 = sshll.u32 %s4765_s2, 4  ;;  %s90_s29 = int_to_ptr.vmem [resolvable:$true] %s89_s29  ;;  %s35_s16 = int_to_ptr.hbm [resolvable:$true] %s34_s16 }
   0x9   :  { %95 = dma.hbm_to_vmem [thread:$0]  %s88_s25, 512, %s90_s29, [#allocation10], %s3716_s26, %s3716_s26, %s3717_s27  }
   0xa   :  { %s44_s18 = sshll.u32 %s4767_s4, 4  ;;  %s3719_s19 = smov [#allocation2]   ;;  %s45_s18 = int_to_ptr.hbm [resolvable:$true] %s44_s18 }
   0xb   :  { %37 = dma.hbm_to_smem %s35_s16, 16, %s3719_s19, [#allocation4]  }
   0xc   :  { %s3720_s20 = smov [#allocation5]   ;;  %s3721_s22 = smov 16  }
   0xd   :  { %s46_s21 = sshll.u32 %s3720_s20, 4  ;;  %s3722_s23 = smov 1   ;;  %s47_s21 = int_to_ptr.vmem [resolvable:$true] %s46_s21 }
   0xe   :  { %52 = dma.hbm_to_vmem [thread:$0]  %s45_s18, 48, %s47_s21, [#allocation3], %s3721_s22, %s3721_s22, %s3722_s23  }
   0xf   :  { %s72_s28 = sshll.u32 %s4770_s7, 4  ;;  %s3723_s30 = smov [#allocation8]   ;;  %s73_s28 = int_to_ptr.hbm [resolvable:$true] %s72_s28 }
  0x10   :  { %s74_s25 = sshll.u32 %s3723_s30, 4  ;;  %s102_s4 = sshll.u32 %s4774_s11, 4  ;;  %s75_s25 = int_to_ptr.vmem [resolvable:$true] %s74_s25  ;;  %s103_s4 = int_to_ptr.hbm [resolvable:$true] %s102_s4 }
  0x11   :  { %80 = dma.hbm_to_vmem [thread:$0]  %s73_s28, 512, %s75_s25, [#allocation7], %s3716_s26, %s3716_s26, %s3717_s27  }
  0x12   :  { %s3724_s16 = smov [#allocation11]   ;;  %s117_s19 = sshll.u32 %s4776_s13, 4  ;;  %s118_s19 = int_to_ptr.hbm [resolvable:$true] %s117_s19 }
  0x13   :  { %s104_s9 = sshll.u32 %s3724_s16, 4  ;;  %s3725_s7 = smov [#allocation12]   ;;  %s105_s9 = int_to_ptr.vmem [resolvable:$true] %s104_s9 }
  0x14   :  { %110 = dma.hbm_to_vmem [thread:$0]  %s103_s4, 512, %s105_s9, [#allocation10], %s3716_s26, %s3716_s26, %s3717_s27  }
  0x15   :  { %s119_s20 = sshll.u32 %s3725_s7, 4  ;;  %s120_s20 = int_to_ptr.vmem [resolvable:$true] %s119_s20 }
  0x16   :  { %125 = dma.hbm_to_vmem [thread:$0]  %s118_s19, 512, %s120_s20, [#allocation13], %s3716_s26, %s3716_s26, %s3717_s27  }
  0x17   :  { %3705 = dma.done.wait [#allocation4], 16  }
  0x18   :  { %3706 = vsyncadd [#allocation4], 4294967280 }
  0x19   :  { %3707 = dma.done.wait [#allocation3], 48  }
  0x1a   :  { %3708 = vsyncadd [#allocation3], 4294967248 }
  0x1b   :  { %3709 = dma.done.wait [#allocation7], 1024  }
  0x1c   :  { %3710 = vsyncadd [#allocation7], 4294966272 }
  0x1d   :  { %3711 = dma.done.wait [#allocation10], 1024  }
  0x1e   :  { %3712 = vsyncadd [#allocation10], 4294966272 }
  0x1f   :  { %3713 = dma.done.wait [#allocation13], 512  }
  0x20   :  { %3714 = vsyncadd [#allocation13], 4294966784 }
  0x21   :  { %156 = sfence }
  0x22   :  { %v160_v0 = vld [vmem:[#allocation6 + $0x18] sm:$0xff]  ;;  %v159_v1 = vld [vmem:[#allocation6 + $0x10] sm:$0xff]  ;;  %v158_v2 = vld [vmem:[#allocation6 + $0x8] sm:$0xff]  ;;  %v3726_v3 = vmov 0   ;;  %v3727_v6 = vmov 0.0   ;;  %s3728_s21 = smov 64  }
  0x23   :  { %221 = vmatpush.msra.mxu0 %v160_v0  ;;  %3357 = vset.pattern.permute.xlu0 %v3726_v3  ;;  %v172_v4 = vld [vmem:[%s4763_s0] sm:$0x3]  ;;  %v157_v5 = vld [vmem:[#allocation6] sm:$0xff]  ;;  %s3729_s22 = smov 96   ;;  %v3170_v14 = vld [vmem:[%s4763_s0 + $0xc] sm:$0x3] }
  0x24   :  { %175 = vperm.xlu0 %3357, %v172_v4   ;;  %281 = vmatpush.msra.mxu1 %v160_v0  ;;  %v3852_v7 = vld [vmem:[%s4769_s6] ss:$0 sm:$0xff]  ;;  %v3162_v10 = vld [vmem:[%s4763_s0 + $0x4] sm:$0x3]  ;;  %v3164_v11 = vld [vmem:[%s4763_s0 + $0x6] sm:$0x3] }
  0x25   :  { %222 = vmatpush.msra.mxu0 %v159_v1  ;;  %3358 = vset.pattern.permute.xlu1 %v3726_v3  ;;  %v3166_v12 = vld [vmem:[%s4763_s0 + $0x8] sm:$0x3]  ;;  %v3168_v13 = vld [vmem:[%s4763_s0 + $0xa] sm:$0x3]  ;;  %v3172_v15 = vld [vmem:[%s4763_s0 + $0xe] sm:$0x3] }
  0x26   :  { %282 = vmatpush.msra.mxu1 %v159_v1  ;;  %341 = vmatpush.msra.mxu2 %v160_v0  ;;  %v3878_v16 = vld [vmem:[%s4766_s3] ss:$0 sm:$0xff]  ;;  %v3887_v23 = vld [vmem:[%s4766_s3 + $0x1] ss:$0 sm:$0xff]  ;;  %v3160_v27 = vld [vmem:[%s4763_s0 + $0x2] sm:$0x3] }
  0x27   :  { %223 = vmatpush.msra.mxu0 %v158_v2  ;;  %401 = vmatpush.msra.mxu3 %v160_v0  ;;  %v3881_v19 = vld [vmem:[#allocation5] ss:$0 sm:$0xff]  ;;  %v3890_v26 = vld [vmem:[#allocation5 + $0x1] ss:$0 sm:$0xff]  ;;  %v3898_v28 = vld [vmem:[%s4766_s3 + $0x2] ss:$0 sm:$0xff] }
  0x28   :  { %283 = vmatpush.msra.mxu1 %v158_v2  ;;  %342 = vmatpush.msra.mxu2 %v159_v1  ;;  %v3902_v35 = vld [vmem:[#allocation5 + $0x2] ss:$0 sm:$0xff]  ;;  %vm205_vm0 = vcmask 261120   ;;  %vm721_vm1 = vcmask 254976   ;;  %vm730_vm2 = vcmask 8192   ;;  %s4077_s6 = sld [smem:[#allocation2 + $0x7]] }
  0x29   :  { %224 = vmatpush.msra.mxu0 %v157_v5  ;;  %402 = vmatpush.msra.mxu3 %v159_v1  ;;  %s732_s29 = sld [smem:[#allocation2]] }
  0x2a   :  { %225 = vmatmul.f32.vlgmr.msra.gmra.mxu0 %v3727_v6  ;;  %284 = vmatpush.msra.mxu1 %v157_v5  ;;  %s3176_s5 = sld [smem:[#allocation2 + $0xe]] }
  0x2b   :  { %343 = vmatpush.msra.mxu2 %v158_v2  ;;  %403 = vmatpush.msra.mxu3 %v158_v2  ;;  %s4182_s18 = sld [smem:[#allocation2 + $0x8]] }
  0x2c   :  { %461 = vmatpush.msrb.mxu0 %v160_v0  ;;  %521 = vmatpush.msrb.mxu1 %v160_v0  ;;  %s3198_s19 = sld [smem:[#allocation2 + $0x1]] }
  0x2d   :  { %344 = vmatpush.msra.mxu2 %v157_v5  ;;  %404 = vmatpush.msra.mxu3 %v157_v5  ;;  %s3200_s7 = sld [smem:[#allocation2 + $0xf]] }
  0x2e   :  { %462 = vmatpush.msrb.mxu0 %v159_v1  ;;  %522 = vmatpush.msrb.mxu1 %v159_v1  ;;  %s4282_s0 = sld [smem:[#allocation2 + $0x9]] }
  0x2f   :  { %581 = vmatpush.msrb.mxu2 %v160_v0  ;;  %641 = vmatpush.msrb.mxu3 %v160_v0  ;;  %s3222_s3 = sld [smem:[#allocation2 + $0x2]] }
  0x30   :  { %463 = vmatpush.msrb.mxu0 %v158_v2  ;;  %523 = vmatpush.msrb.mxu1 %v158_v2  ;;  %s3224_s27 = sld [smem:[#allocation2 + $0x10]] }
  0x31   :  { %582 = vmatpush.msrb.mxu2 %v159_v1  ;;  %642 = vmatpush.msrb.mxu3 %v159_v1  ;;  %s4398_s2 = sld [smem:[#allocation2 + $0xa]] }
  0x32   :  { %464 = vmatpush.msrb.mxu0 %v157_v5  ;;  %524 = vmatpush.msrb.mxu1 %v157_v5  ;;  %s4521_s17 = sld [smem:[#allocation2 + $0xb]] }
  0x33   :  { %583 = vmatpush.msrb.mxu2 %v158_v2  ;;  %643 = vmatpush.msrb.mxu3 %v158_v2  ;;  %s4621_s26 = sld [smem:[#allocation2 + $0xc]] }
  0x34   :  { %s4718_s23 = sld [smem:[#allocation2 + $0xd]] }
  0x35   :  { %584 = vmatpush.msrb.mxu2 %v157_v5  ;;  %644 = vmatpush.msrb.mxu3 %v157_v5 }
  0x96   :  { %v176_v17 = vpop.permute.xlu0 %175 }
  0x97   :  { %v181_v18 = vmul.f32 %v3878_v16, %v176_v17  ;;  %v189_v25 = vmul.f32 %v3887_v23, %v176_v17  ;;  %v197_v34 = vmul.f32 %v3898_v28, %v176_v17 }
  0x99   :  { %v185_v20 = vadd.f32 %v3881_v19, %v181_v18  ;;  %v193_v30 = vadd.f32 %v3890_v26, %v189_v25  ;;  %v201_v39 = vadd.f32 %v3902_v35, %v197_v34 }
  0xa7   :  { %v226_v8 = vpop.f32.mrf.mxu0 }
  0xa8   :  { %v227_v9 = vadd.f32 %v3852_v7, %v226_v8 }
  0xaa   :  { %243 = vrot.lane.b32.xlu1 %v227_v9, %s3728_s21  ;;  %235 = vrot.lane.b32.xlu0 %v227_v9, %s3729_s22  ;;  %v229_v21 = vadd.f32 %v227_v9, %v185_v20 }
  0xac   :  { %v230_v22 = vmul.f32 0.5, %v229_v21 }
  0xae   :  { %3370 = vtanh.f32 %v230_v22 }
  0xb2   :  { %317 = vperm.xlu0 %3357, %v3162_v10   ;;  %257 = vperm.xlu1 %3358, %v3160_v27  }
  0xb4   :  { %v3371_v24 = vpop.eup %3370 }
  0xb5   :  { %v232_v29 = vadd.f32 1.0, %v3371_v24 }
  0xb7   :  { %v233_v36 = vmul.f32 0.5, %v232_v29 }
  0xba   :  { %377 = vperm.xlu0 %3357, %v3164_v11  }
  0xc2   :  { %437 = vperm.xlu0 %3357, %v3166_v12  }
  0xca   :  { %497 = vperm.xlu0 %3357, %v3168_v13  }
  0xd2   :  { %557 = vperm.xlu0 %3357, %v3170_v14  }
  0xda   :  { %617 = vperm.xlu0 %3357, %v3172_v15  }
 0x11c   :  { %v236_v31 = vpop.permute.xlu0 %235  ;;  %v244_v32 = vpop.permute.xlu1 %243 }
 0x11d   :  { %v238_v33 = vadd.f32 %v236_v31, %v193_v30  ;;  %v246_v38 = vmul.f32 %v244_v32, %v233_v36 }
 0x11f   :  { %v239_v37 = vmul.f32 0.5, %v238_v33  ;;  %v247_v40 = vadd.f32 %v246_v38, %v201_v39 }
 0x121   :  { %3372 = vtanh.f32 %v239_v37 }
 0x122   :  { %3374 = vtanh.f32 %v247_v40 }
 0x124   :  { %v258_v51 = vpop.permute.xlu1 %257  ;;  %v318_v17 = vpop.permute.xlu0 %317 }
 0x125   :  { %v260_v52 = vmul.f32 %v3878_v16, %v258_v51  ;;  %v262_v56 = vmul.f32 %v3887_v23, %v258_v51  ;;  %v264_v63 = vmul.f32 %v3898_v28, %v258_v51  ;;  %v320_v18 = vmul.f32 %v3878_v16, %v318_v17 }
 0x126   :  { %v322_v25 = vmul.f32 %v3887_v23, %v318_v17  ;;  %v324_v32 = vmul.f32 %v3898_v28, %v318_v17 }
 0x127   :  { %v3373_v41 = vpop.eup %3372  ;;  %v261_v53 = vadd.f32 %v3881_v19, %v260_v52  ;;  %v263_v57 = vadd.f32 %v3890_v26, %v262_v56  ;;  %v265_v2 = vadd.f32 %v3902_v35, %v264_v63  ;;  %v321_v20 = vadd.f32 %v3881_v19, %v320_v18 }
 0x128   :  { %v241_v42 = vadd.f32 1.0, %v3373_v41  ;;  %v3375_v45 = vpop.eup %3374  ;;  %v323_v29 = vadd.f32 %v3890_v26, %v322_v25  ;;  %v325_v38 = vadd.f32 %v3902_v35, %v324_v32 }
 0x12a   :  { %v242_v43 = vmul.f32 0.5, %v241_v42 }
 0x12c   :  { %v249_v44 = vsub.f32 1.0, %v242_v43  ;;  %v251_v46 = vmul.f32 0.0, %v242_v43 }
 0x12e   :  { %v250_v47 = vmul.f32 %v3375_v45, %v249_v44 }
 0x130   :  { %v252_v48 = vadd.f32 %v251_v46, %v250_v47 }
 0x132   :  { %3161 = vmatmul.msk.f32.vlgmr.msra.gmra.mxu1 %vm205_vm0, %v252_v48 }
 0x1af   :  { %v286_v49 = vpop.f32.mrf.mxu1 }
 0x1b0   :  { %v287_v50 = vadd.f32 %v3852_v7, %v286_v49 }
 0x1b2   :  { %295 = vrot.lane.b32.xlu2 %v287_v50, %s3729_s22  ;;  %v289_v54 = vadd.f32 %v287_v50, %v261_v53 }
 0x1b4   :  { %v290_v55 = vmul.f32 0.5, %v289_v54 }
 0x1b6   :  { %3376 = vtanh.f32 %v290_v55 }
 0x1ba   :  { %303 = vrot.lane.b32.xlu2 %v287_v50, %s3728_s21  ;;  %v378_v50 = vpop.permute.xlu0 %377 }
 0x1bb   :  { %v380_v51 = vmul.f32 %v3878_v16, %v378_v50  ;;  %v382_v56 = vmul.f32 %v3887_v23, %v378_v50 }
 0x1bc   :  { %v3377_v58 = vpop.eup %3376 }
 0x1bd   :  { %v292_v62 = vadd.f32 1.0, %v3377_v58  ;;  %v381_v52 = vadd.f32 %v3881_v19, %v380_v51  ;;  %v383_v58 = vadd.f32 %v3890_v26, %v382_v56 }
 0x1bf   :  { %v293_v0 = vmul.f32 0.5, %v292_v62 }
 0x20c   :  { %v296_v59 = vpop.permute.xlu2 %295 }
 0x20d   :  { %v298_v60 = vadd.f32 %v296_v59, %v263_v57 }
 0x20f   :  { %v299_v61 = vmul.f32 0.5, %v298_v60 }
 0x211   :  { %3378 = vtanh.f32 %v299_v61  ;;  %v384_v61 = vmul.f32 %v3898_v28, %v378_v50 }
 0x214   :  { %v304_v1 = vpop.permute.xlu2 %303 }
 0x215   :  { %v306_v3 = vmul.f32 %v304_v1, %v293_v0 }
 0x217   :  { %v3379_v4 = vpop.eup %3378  ;;  %v307_v5 = vadd.f32 %v306_v3, %v265_v2  ;;  %v385_v2 = vadd.f32 %v3902_v35, %v384_v61 }
 0x218   :  { %v301_v6 = vadd.f32 1.0, %v3379_v4 }
 0x219   :  { %3380 = vtanh.f32 %v307_v5 }
 0x21a   :  { %v302_v8 = vmul.f32 0.5, %v301_v6 }
 0x21c   :  { %v309_v9 = vsub.f32 1.0, %v302_v8  ;;  %v311_v11 = vmul.f32 %v302_v8, %v252_v48 }
 0x21f   :  { %v3381_v10 = vpop.eup %3380 }
 0x220   :  { %v310_v12 = vmul.f32 %v3381_v10, %v309_v9 }
 0x222   :  { %v312_v13 = vadd.f32 %v311_v11, %v310_v12 }
 0x224   :  { %3163 = vmatmul.msk.f32.vlgmr.msra.gmra.mxu2 %vm205_vm0, %v312_v13 }
 0x2a7   :  { %v346_v14 = vpop.f32.mrf.mxu2 }
 0x2a8   :  { %v347_v15 = vadd.f32 %v3852_v7, %v346_v14 }
 0x2aa   :  { %363 = vrot.lane.b32.xlu2 %v347_v15, %s3728_s21  ;;  %355 = vrot.lane.b32.xlu1 %v347_v15, %s3729_s22  ;;  %v349_v21 = vadd.f32 %v347_v15, %v321_v20  ;;  %v438_v15 = vpop.permute.xlu0 %437 }
 0x2ab   :  { %v440_v17 = vmul.f32 %v3878_v16, %v438_v15 }
 0x2ac   :  { %v350_v22 = vmul.f32 0.5, %v349_v21 }
 0x2ad   :  { %v441_v18 = vadd.f32 %v3881_v19, %v440_v17 }
 0x2ae   :  { %3382 = vtanh.f32 %v350_v22 }
 0x2b4   :  { %v3383_v24 = vpop.eup %3382 }
 0x2b5   :  { %v352_v27 = vadd.f32 1.0, %v3383_v24  ;;  %v442_v24 = vmul.f32 %v3887_v23, %v438_v15 }
 0x2b7   :  { %v353_v33 = vmul.f32 0.5, %v352_v27  ;;  %v443_v27 = vadd.f32 %v3890_v26, %v442_v24 }
 0x304   :  { %v364_v30 = vpop.permute.xlu2 %363 }
 0x305   :  { %v366_v36 = vmul.f32 %v364_v30, %v353_v33 }
 0x307   :  { %v367_v39 = vadd.f32 %v366_v36, %v325_v38 }
 0x31c   :  { %v356_v31 = vpop.permute.xlu1 %355 }
 0x31d   :  { %v358_v34 = vadd.f32 %v356_v31, %v323_v29  ;;  %v444_v31 = vmul.f32 %v3898_v28, %v438_v15 }
 0x31f   :  { %v359_v37 = vmul.f32 0.5, %v358_v34 }
 0x321   :  { %3384 = vtanh.f32 %v359_v37  ;;  %v445_v37 = vadd.f32 %v3902_v35, %v444_v31 }
 0x322   :  { %3386 = vtanh.f32 %v367_v39 }
 0x327   :  { %v3385_v40 = vpop.eup %3384 }
 0x328   :  { %v361_v41 = vadd.f32 1.0, %v3385_v40  ;;  %v3387_v44 = vpop.eup %3386 }
 0x32a   :  { %v362_v42 = vmul.f32 0.5, %v361_v41 }
 0x32c   :  { %v369_v43 = vsub.f32 1.0, %v362_v42  ;;  %v371_v45 = vmul.f32 %v362_v42, %v312_v13 }
 0x32e   :  { %v370_v46 = vmul.f32 %v3387_v44, %v369_v43 }
 0x330   :  { %v372_v47 = vadd.f32 %v371_v45, %v370_v46 }
 0x332   :  { %3165 = vmatmul.msk.f32.vlgmr.msra.gmra.mxu3 %vm205_vm0, %v372_v47 }
 0x3b5   :  { %v406_v48 = vpop.f32.mrf.mxu3 }
 0x3b6   :  { %v407_v49 = vadd.f32 %v3852_v7, %v406_v48 }
 0x3b8   :  { %423 = vrot.lane.b32.xlu2 %v407_v49, %s3728_s21  ;;  %415 = vrot.lane.b32.xlu1 %v407_v49, %s3729_s22  ;;  %v409_v53 = vadd.f32 %v407_v49, %v381_v52  ;;  %v498_v49 = vpop.permute.xlu0 %497 }
 0x3b9   :  { %v500_v50 = vmul.f32 %v3878_v16, %v498_v49 }
 0x3ba   :  { %v410_v54 = vmul.f32 0.5, %v409_v53 }
 0x3bb   :  { %v501_v51 = vadd.f32 %v3881_v19, %v500_v50 }
 0x3bc   :  { %3388 = vtanh.f32 %v410_v54 }
 0x3c2   :  { %v3389_v55 = vpop.eup %3388 }
 0x3c3   :  { %v412_v57 = vadd.f32 1.0, %v3389_v55  ;;  %v502_v55 = vmul.f32 %v3887_v23, %v498_v49 }
 0x3c5   :  { %v413_v62 = vmul.f32 0.5, %v412_v57  ;;  %v503_v57 = vadd.f32 %v3890_v26, %v502_v55  ;;  %v674_v55 = vld [vmem:[#allocation8 + $0x8] sm:$0xff] }
 0x412   :  { %v424_v59 = vpop.permute.xlu2 %423 }
 0x413   :  { %v426_v0 = vmul.f32 %v424_v59, %v413_v62 }
 0x415   :  { %v427_v3 = vadd.f32 %v426_v0, %v385_v2 }
 0x42a   :  { %v416_v60 = vpop.permute.xlu1 %415 }
 0x42b   :  { %v418_v63 = vadd.f32 %v416_v60, %v383_v58  ;;  %v504_v60 = vmul.f32 %v3898_v28, %v498_v49 }
 0x42d   :  { %v419_v1 = vmul.f32 0.5, %v418_v63 }
 0x42f   :  { %3390 = vtanh.f32 %v419_v1  ;;  %v505_v1 = vadd.f32 %v3902_v35, %v504_v60 }
 0x430   :  { %3392 = vtanh.f32 %v427_v3 }
 0x435   :  { %v3391_v4 = vpop.eup %3390 }
 0x436   :  { %v421_v5 = vadd.f32 1.0, %v3391_v4  ;;  %v3393_v9 = vpop.eup %3392 }
 0x438   :  { %v422_v6 = vmul.f32 0.5, %v421_v5 }
 0x43a   :  { %v429_v8 = vsub.f32 1.0, %v422_v6  ;;  %v431_v11 = vmul.f32 %v422_v6, %v372_v47 }
 0x43c   :  { %v430_v10 = vmul.f32 %v3393_v9, %v429_v8 }
 0x43e   :  { %v432_v12 = vadd.f32 %v431_v11, %v430_v10 }
 0x440   :  { %3167 = vmatmul.msk.f32.vlgmr.msrb.gmra.mxu0 %vm205_vm0, %v432_v12 }
 0x4bd   :  { %v466_v13 = vpop.f32.mrf.mxu0 }
 0x4be   :  { %v467_v14 = vadd.f32 %v3852_v7, %v466_v13 }
 0x4c0   :  { %483 = vrot.lane.b32.xlu2 %v467_v14, %s3728_s21  ;;  %475 = vrot.lane.b32.xlu1 %v467_v14, %s3729_s22  ;;  %v469_v20 = vadd.f32 %v467_v14, %v441_v18  ;;  %v558_v14 = vpop.permute.xlu0 %557 }
 0x4c1   :  { %v560_v15 = vmul.f32 %v3878_v16, %v558_v14 }
 0x4c2   :  { %v470_v21 = vmul.f32 0.5, %v469_v20 }
 0x4c3   :  { %v561_v17 = vadd.f32 %v3881_v19, %v560_v15 }
 0x4c4   :  { %3394 = vtanh.f32 %v470_v21 }
 0x4ca   :  { %v3395_v22 = vpop.eup %3394 }
 0x4cb   :  { %v472_v25 = vadd.f32 1.0, %v3395_v22  ;;  %v562_v22 = vmul.f32 %v3887_v23, %v558_v14 }
 0x4cd   :  { %v473_v32 = vmul.f32 0.5, %v472_v25  ;;  %v563_v25 = vadd.f32 %v3890_v26, %v562_v22  ;;  %v4013_v22 = vld [vmem:[#allocation11 + $0x8] sm:$0xff] }
 0x51a   :  { %v484_v29 = vpop.permute.xlu2 %483 }
 0x51b   :  { %v486_v34 = vmul.f32 %v484_v29, %v473_v32 }
 0x51d   :  { %v487_v38 = vadd.f32 %v486_v34, %v445_v37 }
 0x532   :  { %v476_v30 = vpop.permute.xlu1 %475 }
 0x533   :  { %v478_v33 = vadd.f32 %v476_v30, %v443_v27  ;;  %v564_v30 = vmul.f32 %v3898_v28, %v558_v14  ;;  %v719_v14 = vld [vmem:[%s4764_s1] sm:$0x3] }
 0x535   :  { %v479_v36 = vmul.f32 0.5, %v478_v33 }
 0x537   :  { %3396 = vtanh.f32 %v479_v36  ;;  %v565_v36 = vadd.f32 %v3902_v35, %v564_v30 }
 0x538   :  { %3398 = vtanh.f32 %v487_v38 }
 0x53d   :  { %v3397_v39 = vpop.eup %3396 }
 0x53e   :  { %v481_v40 = vadd.f32 1.0, %v3397_v39  ;;  %v3399_v43 = vpop.eup %3398 }
 0x540   :  { %v482_v41 = vmul.f32 0.5, %v481_v40 }
 0x542   :  { %v489_v42 = vsub.f32 1.0, %v482_v41  ;;  %v491_v45 = vmul.f32 %v482_v41, %v432_v12 }
 0x544   :  { %v490_v44 = vmul.f32 %v3399_v43, %v489_v42 }
 0x546   :  { %v492_v46 = vadd.f32 %v491_v45, %v490_v44 }
 0x548   :  { %3169 = vmatmul.msk.f32.vlgmr.msrb.gmra.mxu1 %vm205_vm0, %v492_v46 }
 0x5c5   :  { %v526_v47 = vpop.f32.mrf.mxu1 }
 0x5c6   :  { %v527_v48 = vadd.f32 %v3852_v7, %v526_v47 }
 0x5c8   :  { %543 = vrot.lane.b32.xlu2 %v527_v48, %s3728_s21  ;;  %535 = vrot.lane.b32.xlu1 %v527_v48, %s3729_s22  ;;  %v529_v52 = vadd.f32 %v527_v48, %v501_v51  ;;  %v618_v48 = vpop.permute.xlu0 %617 }
 0x5c9   :  { %v620_v49 = vmul.f32 %v3878_v16, %v618_v48  ;;  %v3977_v16 = vld [vmem:[#allocation9 + $0x8] sm:$0xff] }
 0x5ca   :  { %v530_v53 = vmul.f32 0.5, %v529_v52  ;;  %v676_v52 = vld [vmem:[#allocation8 + $0x18] sm:$0xff] }
 0x5cb   :  { %v621_v50 = vadd.f32 %v3881_v19, %v620_v49  ;;  %696 = vmatpush.msra.mxu0 %v676_v52  ;;  %v823_v52 = vstv %s4077_s6 }
 0x5cc   :  { %3400 = vtanh.f32 %v530_v53 }
 0x5d2   :  { %v3401_v54 = vpop.eup %3400 }
 0x5d3   :  { %v532_v56 = vadd.f32 1.0, %v3401_v54  ;;  %v675_v54 = vld [vmem:[#allocation8 + $0x10] sm:$0xff] }
 0x5d4   :  { %697 = vmatpush.msra.mxu0 %v675_v54 }
 0x5d5   :  { %v533_v61 = vmul.f32 0.5, %v532_v56  ;;  %v673_v56 = vld [vmem:[#allocation8] sm:$0xff] }
 0x5d6   :  { %698 = vmatpush.msra.mxu0 %v674_v55 }
 0x5d8   :  { %699 = vmatpush.msra.mxu0 %v673_v56 }
 0x622   :  { %v544_v58 = vpop.permute.xlu2 %543 }
 0x623   :  { %v546_v63 = vmul.f32 %v544_v58, %v533_v61  ;;  %v622_v58 = vmul.f32 %v3887_v23, %v618_v48 }
 0x625   :  { %v547_v2 = vadd.f32 %v546_v63, %v505_v1  ;;  %v623_v60 = vadd.f32 %v3890_v26, %v622_v58  ;;  %v624_v63 = vmul.f32 %v3898_v28, %v618_v48  ;;  %v3988_v28 = vld [vmem:[#allocation9] sm:$0xff] }
 0x63a   :  { %v536_v59 = vpop.permute.xlu1 %535 }
 0x63b   :  { %v538_v62 = vadd.f32 %v536_v59, %v503_v57  ;;  %v3973_v57 = vld [vmem:[#allocation9 + $0x10] sm:$0xff] }
 0x63d   :  { %v539_v0 = vmul.f32 0.5, %v538_v62 }
 0x63f   :  { %3402 = vtanh.f32 %v539_v0 }
 0x640   :  { %3404 = vtanh.f32 %v547_v2 }
 0x645   :  { %v3403_v3 = vpop.eup %3402 }
 0x646   :  { %v541_v4 = vadd.f32 1.0, %v3403_v3  ;;  %v3405_v8 = vpop.eup %3404 }
 0x648   :  { %v542_v5 = vmul.f32 0.5, %v541_v4  ;;  %v625_v4 = vadd.f32 %v3902_v35, %v624_v63  ;;  %v3366_v35 = vld [vmem:[%s4771_s8] ss:$0 sm:$0xff] }
 0x64a   :  { %v549_v6 = vsub.f32 1.0, %v542_v5  ;;  %v551_v10 = vmul.f32 %v542_v5, %v492_v46 }
 0x64c   :  { %v550_v9 = vmul.f32 %v3405_v8, %v549_v6 }
 0x64e   :  { %v552_v11 = vadd.f32 %v551_v10, %v550_v9 }
 0x650   :  { %3171 = vmatmul.msk.f32.vlgmr.msrb.gmra.mxu2 %vm205_vm0, %v552_v11 }
 0x6d3   :  { %v586_v12 = vpop.f32.mrf.mxu2 }
 0x6d4   :  { %v587_v13 = vadd.f32 %v3852_v7, %v586_v12 }
 0x6d6   :  { %603 = vrot.lane.b32.xlu2 %v587_v13, %s3728_s21  ;;  %595 = vrot.lane.b32.xlu1 %v587_v13, %s3729_s22  ;;  %v589_v18 = vadd.f32 %v587_v13, %v561_v17 }
 0x6d8   :  { %v590_v20 = vmul.f32 0.5, %v589_v18 }
 0x6da   :  { %3406 = vtanh.f32 %v590_v20  ;;  %v4004_v20 = vld [vmem:[#allocation11 + $0x18] sm:$0xff] }
 0x6db   :  { %784 = vmatpush.msra.mxu2 %v4004_v20 }
 0x6e0   :  { %v3407_v21 = vpop.eup %3406 }
 0x6e1   :  { %v592_v24 = vadd.f32 1.0, %v3407_v21  ;;  %v4008_v21 = vld [vmem:[#allocation11 + $0x10] sm:$0xff] }
 0x6e2   :  { %785 = vmatpush.msra.mxu2 %v4008_v21 }
 0x6e3   :  { %v593_v31 = vmul.f32 0.5, %v592_v24  ;;  %v4018_v24 = vld [vmem:[#allocation11] sm:$0xff] }
 0x6e4   :  { %786 = vmatpush.msra.mxu2 %v4013_v22 }
 0x6e6   :  { %787 = vmatpush.msra.mxu2 %v4018_v24 }
 0x730   :  { %v604_v27 = vpop.permute.xlu2 %603 }
 0x731   :  { %v606_v33 = vmul.f32 %v604_v27, %v593_v31  ;;  %v4034_v31 = vld [vmem:[%s4773_s10] ss:$0 sm:$0xff] }
 0x733   :  { %v607_v37 = vadd.f32 %v606_v33, %v565_v36 }
 0x748   :  { %v596_v29 = vpop.permute.xlu1 %595 }
 0x749   :  { %v598_v32 = vadd.f32 %v596_v29, %v563_v25  ;;  %v726_v25 = vlaneseq }
 0x74b   :  { %v599_v34 = vmul.f32 0.5, %v598_v32  ;;  %v4024_v27 = vand.u32 127, %v726_v25 }
 0x74d   :  { %3408 = vtanh.f32 %v599_v34 }
 0x74e   :  { %3410 = vtanh.f32 %v607_v37 }
 0x753   :  { %v3409_v38 = vpop.eup %3408 }
 0x754   :  { %v601_v39 = vadd.f32 1.0, %v3409_v38  ;;  %v3411_v42 = vpop.eup %3410 }
 0x756   :  { %v602_v40 = vmul.f32 0.5, %v601_v39  ;;  %v4038_v39 = vld [vmem:[#allocation12 + $0x18] sm:$0xff] }
 0x757   :  { %815 = vmatpush.msra.mxu3 %v4038_v39  ;;  %897 = vmatpush.msrb.mxu2 %v4038_v39 }
 0x758   :  { %v609_v41 = vsub.f32 1.0, %v602_v40  ;;  %v611_v44 = vmul.f32 %v602_v40, %v552_v11  ;;  %v4042_v40 = vld [vmem:[#allocation12 + $0x10] sm:$0xff] }
 0x759   :  { %816 = vmatpush.msra.mxu3 %v4042_v40  ;;  %898 = vmatpush.msrb.mxu2 %v4042_v40 }
 0x75a   :  { %v610_v43 = vmul.f32 %v3411_v42, %v609_v41  ;;  %v4047_v41 = vld [vmem:[#allocation12 + $0x8] sm:$0xff]  ;;  %v4052_v42 = vld [vmem:[#allocation12] sm:$0xff] }
 0x75b   :  { %817 = vmatpush.msra.mxu3 %v4047_v41  ;;  %899 = vmatpush.msrb.mxu2 %v4047_v41 }
 0x75c   :  { %v612_v45 = vadd.f32 %v611_v44, %v610_v43  ;;  %v4069_v43 = vld [vmem:[%s4775_s12] ss:$0 sm:$0xff] }
 0x75d   :  { %818 = vmatpush.msra.mxu3 %v4052_v42  ;;  %900 = vmatpush.msrb.mxu2 %v4052_v42 }
 0x75e   :  { %3173 = vmatmul.msk.f32.vlgmr.msrb.gmra.mxu3 %vm205_vm0, %v612_v45 }
 0x7e1   :  { %v646_v46 = vpop.f32.mrf.mxu3 }
 0x7e2   :  { %v647_v47 = vadd.f32 %v3852_v7, %v646_v46  ;;  %v3971_v7 = vld [vmem:[#allocation9 + $0x18] sm:$0xff] }
 0x7e3   :  { %753 = vmatpush.msra.mxu1 %v3971_v7  ;;  %841 = vmatpush.msrb.mxu0 %v3971_v7 }
 0x7e4   :  { %663 = vrot.lane.b32.xlu2 %v647_v47, %s3728_s21  ;;  %655 = vrot.lane.b32.xlu1 %v647_v47, %s3729_s22  ;;  %v649_v51 = vadd.f32 %v647_v47, %v621_v50  ;;  %v4082_v50 = vld [vmem:[%s4777_s14] ss:$0 sm:$0xff] }
 0x7e5   :  { %754 = vmatpush.msra.mxu1 %v3973_v57  ;;  %842 = vmatpush.msrb.mxu0 %v3973_v57 }
 0x7e6   :  { %v650_v53 = vmul.f32 0.5, %v649_v51  ;;  %922 = vmatpush.msrb.mxu3 %v3971_v7 }
 0x7e7   :  { %755 = vmatpush.msra.mxu1 %v3977_v16  ;;  %843 = vmatpush.msrb.mxu0 %v3977_v16 }
 0x7e8   :  { %3412 = vtanh.f32 %v650_v53  ;;  %923 = vmatpush.msrb.mxu3 %v3973_v57 }
 0x7e9   :  { %756 = vmatpush.msra.mxu1 %v3988_v28  ;;  %844 = vmatpush.msrb.mxu0 %v3988_v28 }
 0x7ea   :  { %924 = vmatpush.msrb.mxu3 %v3977_v16 }
 0x7eb   :  { %869 = vmatpush.msrb.mxu1 %v4004_v20 }
 0x7ec   :  { %925 = vmatpush.msrb.mxu3 %v3988_v28 }
 0x7ed   :  { %870 = vmatpush.msrb.mxu1 %v4008_v21 }
 0x7ee   :  { %v3413_v19 = vpop.eup %3412 }
 0x7ef   :  { %v652_v59 = vadd.f32 1.0, %v3413_v19  ;;  %871 = vmatpush.msrb.mxu1 %v4013_v22 }
 0x7f1   :  { %v653_v0 = vmul.f32 0.5, %v652_v59  ;;  %872 = vmatpush.msrb.mxu1 %v4018_v24 }
 0x83e   :  { %v664_v61 = vpop.permute.xlu2 %663 }
 0x83f   :  { %v666_v2 = vmul.f32 %v664_v61, %v653_v0 }
 0x841   :  { %v667_v5 = vadd.f32 %v666_v2, %v625_v4 }
 0x856   :  { %v656_v62 = vpop.permute.xlu1 %655 }
 0x857   :  { %v658_v1 = vadd.f32 %v656_v62, %v623_v60 }
 0x859   :  { %v659_v3 = vmul.f32 0.5, %v658_v1 }
 0x85b   :  { %3414 = vtanh.f32 %v659_v3 }
 0x85c   :  { %3416 = vtanh.f32 %v667_v5 }
 0x861   :  { %v3415_v23 = vpop.eup %3414 }
 0x862   :  { %v661_v6 = vadd.f32 1.0, %v3415_v23  ;;  %v3417_v10 = vpop.eup %3416 }
 0x864   :  { %v662_v8 = vmul.f32 0.5, %v661_v6 }
 0x866   :  { %v669_v9 = vsub.f32 1.0, %v662_v8  ;;  %v671_v26 = vmul.f32 %v662_v8, %v612_v45 }
 0x868   :  { %v670_v11 = vmul.f32 %v3417_v10, %v669_v9 }
 0x86a   :  { %v672_v12 = vadd.f32 %v671_v26, %v670_v11 }
 0x86c   :  { %3174 = vmatmul.msk.f32.vlgmr.msra.gmra.mxu0 %vm205_vm0, %v672_v12 }
 0x86d   :  { %950 = vmatpush.msra.mxu0 %v4004_v20 }
 0x86f   :  { %951 = vmatpush.msra.mxu0 %v4008_v21 }
 0x871   :  { %952 = vmatpush.msra.mxu0 %v4013_v22 }
 0x873   :  { %953 = vmatpush.msra.mxu0 %v4018_v24 }
 0x8e9   :  { %v701_v13 = vpop.f32.mrf.mxu0 }
 0x8ea   :  { %v3998_v15 = vadd.f32 %v3366_v35, %v701_v13 }
 0x8ec   :  { %3177 = vmatmul.msk.f32.vlgmr.msra.gmra.mxu1 %vm205_vm0, %v3998_v15  ;;  %v720_v17 = vmul.f32 %v719_v14, %v3998_v15 }
 0x8ed   :  { %978 = vmatpush.msra.mxu1 %v4038_v39 }
 0x8ee   :  { %v722_v18 = vsel %vm721_vm1, %v720_v17, 0.0 }
 0x8ef   :  { %723 = vadd.xlane.f32.xlu0 %v722_v18  ;;  %979 = vmatpush.msra.mxu1 %v4042_v40 }
 0x8f1   :  { %980 = vmatpush.msra.mxu1 %v4047_v41 }
 0x8f3   :  { %981 = vmatpush.msra.mxu1 %v4052_v42 }
 0x962   :  { %v724_v29 = vpop.xlane.xlu0 %723 }
 0x963   :  { %v728_v30 = vperm.slane %v724_v29, %v4024_v27 }
 0x965   :  { %731 = vst.msk [vmem:[%s4778_s15] sm:$0x1] %vm730_vm2, %v728_v30  ;;  %v986_v30 = vstv %s732_s29 }
 0x969   :  { %v758_v32 = vpop.f32.mrf.mxu1 }
 0x96a   :  { %v759_v33 = vadd.f32 %v4034_v31, %v758_v32 }
 0x96c   :  { %v762_v34 = vmul.f32 1.442695, %v759_v33  ;;  %vm761_vm3 = vcmp.gt.f32.partialorder %v759_v33, 0.0 }
 0x96e   :  { %3418 = vpow2.f32 %v762_v34 }
 0x974   :  { %v3419_v36 = vpop.eup %3418 }
 0x975   :  { %v3178_v37 = vadd.f32 -1.0, %v3419_v36 }
 0x977   :  { %v765_v38 = vsel %vm761_vm3, %v759_v33, %v3178_v37 }
 0x978   :  { %3179 = vmatmul.msk.f32.vlgmr.msra.gmra.mxu2 %vm205_vm0, %v765_v38 }
 0x979   :  { %1004 = vmatpush.msra.mxu2 %v3971_v7 }
 0x97b   :  { %1005 = vmatpush.msra.mxu2 %v3973_v57 }
 0x97d   :  { %1006 = vmatpush.msra.mxu2 %v3977_v16 }
 0x97f   :  { %1007 = vmatpush.msra.mxu2 %v3988_v28 }
 0x9fb   :  { %v789_v44 = vpop.f32.mrf.mxu2 }
 0x9fc   :  { %v790_v45 = vadd.f32 %v4069_v43, %v789_v44 }
 0x9fe   :  { %v793_v46 = vmul.f32 1.442695, %v790_v45  ;;  %vm792_vm4 = vcmp.gt.f32.partialorder %v790_v45, 0.0 }
 0xa00   :  { %3420 = vpow2.f32 %v793_v46 }
 0xa06   :  { %v3421_v47 = vpop.eup %3420 }
 0xa07   :  { %v3180_v48 = vadd.f32 -1.0, %v3421_v47 }
 0xa09   :  { %v796_v49 = vsel %vm792_vm4, %v790_v45, %v3180_v48 }
 0xa0a   :  { %3181 = vmatmul.msk.f32.vlgmr.msra.gmra.mxu3 %vm205_vm0, %v796_v49 }
 0xa0b   :  { %1032 = vmatpush.msra.mxu3 %v4004_v20 }
 0xa0d   :  { %1033 = vmatpush.msra.mxu3 %v4008_v21 }
 0xa0f   :  { %1034 = vmatpush.msra.mxu3 %v4013_v22 }
 0xa11   :  { %1035 = vmatpush.msra.mxu3 %v4018_v24 }
 0xa8d   :  { %v820_v51 = vpop.f32.mrf.mxu3 }
 0xa8e   :  { %v4086_v53 = vadd.f32 %v4082_v50, %v820_v51 }
 0xa90   :  { %v824_v54 = vmul.f32 %v823_v52, %v4086_v53 }
 0xa92   :  { %v825_v55 = vadd.f32 %v824_v54, %v3998_v15 }
 0xa94   :  { %3182 = vmatmul.msk.f32.vlgmr.msrb.gmra.mxu0 %vm205_vm0, %v825_v55 }
 0xa95   :  { %1060 = vmatpush.msrb.mxu0 %v4038_v39 }
 0xa97   :  { %1061 = vmatpush.msrb.mxu0 %v4042_v40 }
 0xa99   :  { %1062 = vmatpush.msrb.mxu0 %v4047_v41 }
 0xa9b   :  { %1063 = vmatpush.msrb.mxu0 %v4052_v42 }
 0xb11   :  { %v846_v56 = vpop.f32.mrf.mxu0 }
 0xb12   :  { %v847_v19 = vadd.f32 %v4034_v31, %v846_v56 }
 0xb14   :  { %v850_v58 = vmul.f32 1.442695, %v847_v19  ;;  %vm849_vm5 = vcmp.gt.f32.partialorder %v847_v19, 0.0 }
 0xb16   :  { %3422 = vpow2.f32 %v850_v58 }
 0xb1c   :  { %v3423_v59 = vpop.eup %3422 }
 0xb1d   :  { %v3183_v60 = vadd.f32 -1.0, %v3423_v59 }
 0xb1f   :  { %v853_v61 = vsel %vm849_vm5, %v847_v19, %v3183_v60  ;;  %v1072_v60 = vstv %s3176_s5 }
 0xb20   :  { %3184 = vmatmul.msk.f32.vlgmr.msrb.gmra.mxu1 %vm205_vm0, %v853_v61 }
 0xb21   :  { %1103 = vmatpush.msrb.mxu1 %v3971_v7 }
 0xb23   :  { %1104 = vmatpush.msrb.mxu1 %v3973_v57 }
 0xb25   :  { %1105 = vmatpush.msrb.mxu1 %v3977_v16 }
 0xb27   :  { %1106 = vmatpush.msrb.mxu1 %v3988_v28 }
 0xb9d   :  { %v874_v62 = vpop.f32.mrf.mxu1 }
 0xb9e   :  { %v875_v63 = vadd.f32 %v4069_v43, %v874_v62 }
 0xba0   :  { %v878_v0 = vmul.f32 1.442695, %v875_v63  ;;  %vm877_vm6 = vcmp.gt.f32.partialorder %v875_v63, 0.0 }
 0xba2   :  { %3424 = vpow2.f32 %v878_v0 }
 0xba8   :  { %v3425_v1 = vpop.eup %3424 }
 0xba9   :  { %v3185_v2 = vadd.f32 -1.0, %v3425_v1 }
 0xbab   :  { %v881_v3 = vsel %vm877_vm6, %v875_v63, %v3185_v2  ;;  %v3197_v63 = vld [vmem:[%s4764_s1 + $0x2] sm:$0x3] }
 0xbac   :  { %3186 = vmatmul.msk.f32.vlgmr.msrb.gmra.mxu2 %vm205_vm0, %v881_v3 }
 0xbad   :  { %1131 = vmatpush.msrb.mxu2 %v4004_v20 }
 0xbaf   :  { %1132 = vmatpush.msrb.mxu2 %v4008_v21 }
 0xbb1   :  { %1133 = vmatpush.msrb.mxu2 %v4013_v22 }
 0xbb3   :  { %1134 = vmatpush.msrb.mxu2 %v4018_v24 }
 0xc2f   :  { %v902_v4 = vpop.f32.mrf.mxu2 }
 0xc30   :  { %v4108_v5 = vadd.f32 %v4082_v50, %v902_v4 }
 0xc32   :  { %v905_v23 = vmul.f32 %v4108_v5, %v823_v52 }
 0xc34   :  { %v906_v6 = vadd.f32 %v905_v23, %v3998_v15 }
 0xc36   :  { %3187 = vmatmul.msk.f32.vlgmr.msrb.gmra.mxu3 %vm205_vm0, %v906_v6 }
 0xc37   :  { %1159 = vmatpush.msrb.mxu3 %v4038_v39 }
 0xc39   :  { %1160 = vmatpush.msrb.mxu3 %v4042_v40 }
 0xc3b   :  { %1161 = vmatpush.msrb.mxu3 %v4047_v41 }
 0xc3d   :  { %1162 = vmatpush.msrb.mxu3 %v4052_v42 }
 0xcb9   :  { %v927_v8 = vpop.f32.mrf.mxu3 }
 0xcba   :  { %v928_v9 = vadd.f32 %v4034_v31, %v927_v8 }
 0xcbc   :  { %v931_v10 = vmul.f32 1.442695, %v928_v9  ;;  %vm930_vm7 = vcmp.gt.f32.partialorder %v928_v9, 0.0 }
 0xcbe   :  { %3426 = vpow2.f32 %v931_v10 }
 0xcc4   :  { %v3427_v11 = vpop.eup %3426 }
 0xcc5   :  { %v3188_v26 = vadd.f32 -1.0, %v3427_v11 }
 0xcc7   :  { %v934_v12 = vsel %vm930_vm7, %v928_v9, %v3188_v26 }
 0xcc8   :  { %3189 = vmatmul.msk.f32.vlgmr.msra.gmra.mxu0 %vm205_vm0, %v934_v12 }
 0xcc9   :  { %1185 = vmatpush.msra.mxu0 %v3971_v7 }
 0xccb   :  { %1186 = vmatpush.msra.mxu0 %v3973_v57 }
 0xccd   :  { %1187 = vmatpush.msra.mxu0 %v3977_v16 }
 0xccf   :  { %1188 = vmatpush.msra.mxu0 %v3988_v28 }
 0xd45   :  { %v955_v35 = vpop.f32.mrf.mxu0 }
 0xd46   :  { %v956_v13 = vadd.f32 %v4069_v43, %v955_v35 }
 0xd48   :  { %v959_v14 = vmul.f32 1.442695, %v956_v13  ;;  %vm958_vm8 = vcmp.gt.f32.partialorder %v956_v13, 0.0 }
 0xd4a   :  { %3428 = vpow2.f32 %v959_v14  ;;  %v1167_v14 = vstv %s4182_s18  ;;  %s3270_s18 = sld [smem:[#allocation2 + $0x4]] }
 0xd50   :  { %v3429_v17 = vpop.eup %3428 }
 0xd51   :  { %v3190_v18 = vadd.f32 -1.0, %v3429_v17 }
 0xd53   :  { %v962_v25 = vsel %vm958_vm8, %v956_v13, %v3190_v18 }
 0xd54   :  { %3191 = vmatmul.msk.f32.vlgmr.msra.gmra.mxu1 %vm205_vm0, %v962_v25 }
 0xd55   :  { %1213 = vmatpush.msra.mxu1 %v4004_v20 }
 0xd57   :  { %1214 = vmatpush.msra.mxu1 %v4008_v21 }
 0xd59   :  { %1215 = vmatpush.msra.mxu1 %v4013_v22 }
 0xd5b   :  { %1216 = vmatpush.msra.mxu1 %v4018_v24 }
 0xdd1   :  { %v983_v29 = vpop.f32.mrf.mxu1 }
 0xdd2   :  { %v984_v32 = vadd.f32 %v4082_v50, %v983_v29 }
 0xdd4   :  { %v987_v33 = vmul.f32 %v986_v30, %v984_v32  ;;  %v1068_v55 = vadd.f32 %v984_v32, %v4108_v5 }
 0xdd6   :  { %v988_v34 = vadd.f32 %v987_v33, %v3998_v15  ;;  %v1069_v56 = vmul.f32 2.0, %v1068_v55 }
 0xdd8   :  { %3192 = vmatmul.msk.f32.vlgmr.msra.gmra.mxu2 %vm205_vm0, %v988_v34  ;;  %v1070_v59 = vadd.f32 %v1069_v56, %v4086_v53 }
 0xdd9   :  { %1241 = vmatpush.msra.mxu2 %v4038_v39 }
 0xddb   :  { %1242 = vmatpush.msra.mxu2 %v4042_v40 }
 0xddd   :  { %1243 = vmatpush.msra.mxu2 %v4047_v41 }
 0xddf   :  { %1244 = vmatpush.msra.mxu2 %v4052_v42 }
 0xe5b   :  { %v1009_v36 = vpop.f32.mrf.mxu2 }
 0xe5c   :  { %v1010_v37 = vadd.f32 %v4034_v31, %v1009_v36 }
 0xe5e   :  { %v1013_v38 = vmul.f32 1.442695, %v1010_v37  ;;  %vm1012_vm9 = vcmp.gt.f32.partialorder %v1010_v37, 0.0 }
 0xe60   :  { %3430 = vpow2.f32 %v1013_v38 }
 0xe66   :  { %v3431_v44 = vpop.eup %3430 }
 0xe67   :  { %v3193_v45 = vadd.f32 -1.0, %v3431_v44 }
 0xe69   :  { %v1016_v46 = vsel %vm1012_vm9, %v1010_v37, %v3193_v45 }
 0xe6a   :  { %3194 = vmatmul.msk.f32.vlgmr.msra.gmra.mxu3 %vm205_vm0, %v1016_v46 }
 0xe6b   :  { %1266 = vmatpush.msra.mxu3 %v3971_v7 }
 0xe6d   :  { %1267 = vmatpush.msra.mxu3 %v3973_v57 }
 0xe6f   :  { %1268 = vmatpush.msra.mxu3 %v3977_v16 }
 0xe71   :  { %1269 = vmatpush.msra.mxu3 %v3988_v28 }
 0xeed   :  { %v1037_v47 = vpop.f32.mrf.mxu3 }
 0xeee   :  { %v1038_v48 = vadd.f32 %v4069_v43, %v1037_v47 }
 0xef0   :  { %v1041_v49 = vmul.f32 1.442695, %v1038_v48  ;;  %vm1040_vm10 = vcmp.gt.f32.partialorder %v1038_v48, 0.0 }
 0xef2   :  { %3432 = vpow2.f32 %v1041_v49 }
 0xef8   :  { %v3433_v51 = vpop.eup %3432 }
 0xef9   :  { %v3195_v52 = vadd.f32 -1.0, %v3433_v51 }
 0xefb   :  { %v1044_v54 = vsel %vm1040_vm10, %v1038_v48, %v3195_v52 }
 0xefc   :  { %3196 = vmatmul.msk.f32.vlgmr.msrb.gmra.mxu0 %vm205_vm0, %v1044_v54 }
 0xefd   :  { %1294 = vmatpush.msrb.mxu0 %v4004_v20 }
 0xeff   :  { %1295 = vmatpush.msrb.mxu0 %v4008_v21 }
 0xf01   :  { %1296 = vmatpush.msrb.mxu0 %v4013_v22 }
 0xf03   :  { %1297 = vmatpush.msrb.mxu0 %v4018_v24 }
 0xf79   :  { %v1065_v19 = vpop.f32.mrf.mxu0 }
 0xf7a   :  { %v1066_v58 = vadd.f32 %v4082_v50, %v1065_v19 }
 0xf7c   :  { %v1071_v61 = vadd.f32 %v1070_v59, %v1066_v58 }
 0xf7e   :  { %v1073_v62 = vmul.f32 %v1072_v60, %v1071_v61 }
 0xf80   :  { %v4155_v0 = vadd.f32 %v1073_v62, %v3998_v15 }
 0xf82   :  { %3201 = vmatmul.msk.f32.vlgmr.msrb.gmra.mxu1 %vm205_vm0, %v4155_v0  ;;  %v1077_v1 = vmul.f32 %v3197_v63, %v4155_v0 }
 0xf83   :  { %1322 = vmatpush.msrb.mxu1 %v4038_v39 }
 0xf84   :  { %v1078_v2 = vsel %vm721_vm1, %v1077_v1, 0.0 }
 0xf85   :  { %1079 = vadd.xlane.f32.xlu1 %v1078_v2  ;;  %1323 = vmatpush.msrb.mxu1 %v4042_v40 }
 0xf87   :  { %1324 = vmatpush.msrb.mxu1 %v4047_v41 }
 0xf89   :  { %1325 = vmatpush.msrb.mxu1 %v4052_v42 }
 0xff8   :  { %v1080_v53 = vpop.xlane.xlu1 %1079 }
 0xff9   :  { %v1082_v15 = vperm.slane %v1080_v53, %v4024_v27 }
 0xffb   :  { %1084 = vst.msk [vmem:[%s4778_s15 + $0x1] sm:$0x1] %vm730_vm2, %v1082_v15  ;;  %v1330_v15 = vstv %s3198_s19  ;;  %s3272_s19 = sld [smem:[#allocation2 + $0x12]] }
 0xfff   :  { %v1108_v3 = vpop.f32.mrf.mxu1 }
0x1000   :  { %v1109_v4 = vadd.f32 %v4034_v31, %v1108_v3 }
0x1002   :  { %v1112_v5 = vmul.f32 1.442695, %v1109_v4  ;;  %vm1111_vm11 = vcmp.gt.f32.partialorder %v1109_v4, 0.0 }
0x1004   :  { %3434 = vpow2.f32 %v1112_v5 }
0x100a   :  { %v3435_v23 = vpop.eup %3434 }
0x100b   :  { %v3202_v6 = vadd.f32 -1.0, %v3435_v23 }
0x100d   :  { %v1115_v8 = vsel %vm1111_vm11, %v1109_v4, %v3202_v6 }
0x100e   :  { %3203 = vmatmul.msk.f32.vlgmr.msrb.gmra.mxu2 %vm205_vm0, %v1115_v8 }
0x100f   :  { %1348 = vmatpush.msrb.mxu2 %v3971_v7 }
0x1011   :  { %1349 = vmatpush.msrb.mxu2 %v3973_v57 }
0x1013   :  { %1350 = vmatpush.msrb.mxu2 %v3977_v16 }
0x1015   :  { %1351 = vmatpush.msrb.mxu2 %v3988_v28 }
0x1091   :  { %v1136_v9 = vpop.f32.mrf.mxu2 }
0x1092   :  { %v1137_v10 = vadd.f32 %v4069_v43, %v1136_v9 }
0x1094   :  { %v1140_v11 = vmul.f32 1.442695, %v1137_v10  ;;  %vm1139_vm12 = vcmp.gt.f32.partialorder %v1137_v10, 0.0 }
0x1096   :  { %3436 = vpow2.f32 %v1140_v11 }
0x109c   :  { %v3437_v26 = vpop.eup %3436 }
0x109d   :  { %v3204_v12 = vadd.f32 -1.0, %v3437_v26 }
0x109f   :  { %v1143_v35 = vsel %vm1139_vm12, %v1137_v10, %v3204_v12 }
0x10a0   :  { %3205 = vmatmul.msk.f32.vlgmr.msrb.gmra.mxu3 %vm205_vm0, %v1143_v35 }
0x10a1   :  { %1376 = vmatpush.msrb.mxu3 %v4004_v20 }
0x10a3   :  { %1377 = vmatpush.msrb.mxu3 %v4008_v21 }
0x10a5   :  { %1378 = vmatpush.msrb.mxu3 %v4013_v22 }
0x10a7   :  { %1379 = vmatpush.msrb.mxu3 %v4018_v24 }
0x1123   :  { %v1164_v13 = vpop.f32.mrf.mxu3 }
0x1124   :  { %v4186_v17 = vadd.f32 %v4082_v50, %v1164_v13 }
0x1126   :  { %v1168_v18 = vmul.f32 %v1167_v14, %v4186_v17 }
0x1128   :  { %v1169_v25 = vadd.f32 %v1168_v18, %v4155_v0 }
0x112a   :  { %3206 = vmatmul.msk.f32.vlgmr.msra.gmra.mxu0 %vm205_vm0, %v1169_v25 }
0x112b   :  { %1404 = vmatpush.msra.mxu0 %v4038_v39 }
0x112d   :  { %1405 = vmatpush.msra.mxu0 %v4042_v40 }
0x112f   :  { %1406 = vmatpush.msra.mxu0 %v4047_v41 }
0x1131   :  { %1407 = vmatpush.msra.mxu0 %v4052_v42 }
0x11a7   :  { %v1190_v29 = vpop.f32.mrf.mxu0 }
0x11a8   :  { %v1191_v30 = vadd.f32 %v4034_v31, %v1190_v29 }
0x11aa   :  { %v1194_v32 = vmul.f32 1.442695, %v1191_v30  ;;  %vm1193_vm13 = vcmp.gt.f32.partialorder %v1191_v30, 0.0 }
0x11ac   :  { %3438 = vpow2.f32 %v1194_v32 }
0x11b2   :  { %v3439_v33 = vpop.eup %3438 }
0x11b3   :  { %v3207_v34 = vadd.f32 -1.0, %v3439_v33 }
0x11b5   :  { %v1197_v36 = vsel %vm1193_vm13, %v1191_v30, %v3207_v34  ;;  %v1416_v34 = vstv %s3200_s7 }
0x11b6   :  { %3208 = vmatmul.msk.f32.vlgmr.msra.gmra.mxu1 %vm205_vm0, %v1197_v36 }
0x11b7   :  { %1447 = vmatpush.msra.mxu1 %v3971_v7 }
0x11b9   :  { %1448 = vmatpush.msra.mxu1 %v3973_v57 }
0x11bb   :  { %1449 = vmatpush.msra.mxu1 %v3977_v16 }
0x11bd   :  { %1450 = vmatpush.msra.mxu1 %v3988_v28 }
0x1233   :  { %v1218_v37 = vpop.f32.mrf.mxu1 }
0x1234   :  { %v1219_v38 = vadd.f32 %v4069_v43, %v1218_v37 }
0x1236   :  { %v1222_v44 = vmul.f32 1.442695, %v1219_v38  ;;  %vm1221_vm14 = vcmp.gt.f32.partialorder %v1219_v38, 0.0 }
0x1238   :  { %3440 = vpow2.f32 %v1222_v44 }
0x123e   :  { %v3441_v45 = vpop.eup %3440 }
0x123f   :  { %v3209_v46 = vadd.f32 -1.0, %v3441_v45 }
0x1241   :  { %v1225_v47 = vsel %vm1221_vm14, %v1219_v38, %v3209_v46  ;;  %v3221_v38 = vld [vmem:[%s4764_s1 + $0x4] sm:$0x3] }
0x1242   :  { %3210 = vmatmul.msk.f32.vlgmr.msra.gmra.mxu2 %vm205_vm0, %v1225_v47 }
0x1243   :  { %1475 = vmatpush.msra.mxu2 %v4004_v20 }
0x1245   :  { %1476 = vmatpush.msra.mxu2 %v4008_v21 }
0x1247   :  { %1477 = vmatpush.msra.mxu2 %v4013_v22 }
0x1249   :  { %1478 = vmatpush.msra.mxu2 %v4018_v24 }
0x12c5   :  { %v1246_v48 = vpop.f32.mrf.mxu2 }
0x12c6   :  { %v4208_v49 = vadd.f32 %v4082_v50, %v1246_v48 }
0x12c8   :  { %v1249_v51 = vmul.f32 %v4208_v49, %v1167_v14 }
0x12ca   :  { %v1250_v52 = vadd.f32 %v1249_v51, %v4155_v0 }
0x12cc   :  { %3211 = vmatmul.msk.f32.vlgmr.msra.gmra.mxu3 %vm205_vm0, %v1250_v52 }
0x12cd   :  { %1503 = vmatpush.msra.mxu3 %v4038_v39 }
0x12cf   :  { %1504 = vmatpush.msra.mxu3 %v4042_v40 }
0x12d1   :  { %1505 = vmatpush.msra.mxu3 %v4047_v41 }
0x12d3   :  { %1506 = vmatpush.msra.mxu3 %v4052_v42 }
0x134f   :  { %v1271_v54 = vpop.f32.mrf.mxu3 }
0x1350   :  { %v1272_v55 = vadd.f32 %v4034_v31, %v1271_v54 }
0x1352   :  { %v1275_v56 = vmul.f32 1.442695, %v1272_v55  ;;  %vm1274_vm15 = vcmp.gt.f32.partialorder %v1272_v55, 0.0 }
0x1354   :  { %3442 = vpow2.f32 %v1275_v56 }
0x135a   :  { %v3443_v19 = vpop.eup %3442 }
0x135b   :  { %v3212_v58 = vadd.f32 -1.0, %v3443_v19 }
0x135d   :  { %v1278_v59 = vsel %vm1274_vm15, %v1272_v55, %v3212_v58 }
0x135e   :  { %3213 = vmatmul.msk.f32.vlgmr.msrb.gmra.mxu0 %vm205_vm0, %v1278_v59 }
0x135f   :  { %1529 = vmatpush.msrb.mxu0 %v3971_v7 }
0x1361   :  { %1530 = vmatpush.msrb.mxu0 %v3973_v57 }
0x1363   :  { %1531 = vmatpush.msrb.mxu0 %v3977_v16 }
0x1365   :  { %1532 = vmatpush.msrb.mxu0 %v3988_v28 }
0x13db   :  { %v1299_v60 = vpop.f32.mrf.mxu0 }
0x13dc   :  { %v1300_v61 = vadd.f32 %v4069_v43, %v1299_v60 }
0x13de   :  { %v1303_v62 = vmul.f32 1.442695, %v1300_v61  ;;  %vm1302_vm3 = vcmp.gt.f32.partialorder %v1300_v61, 0.0 }
0x13e0   :  { %3444 = vpow2.f32 %v1303_v62  ;;  %v1511_v62 = vstv %s4282_s0  ;;  %s3294_s0 = sld [smem:[#allocation2 + $0x5]] }
0x13e6   :  { %v3445_v63 = vpop.eup %3444 }
0x13e7   :  { %v3214_v1 = vadd.f32 -1.0, %v3445_v63 }
0x13e9   :  { %v1306_v2 = vsel %vm1302_vm3, %v1300_v61, %v3214_v1 }
0x13ea   :  { %3215 = vmatmul.msk.f32.vlgmr.msrb.gmra.mxu1 %vm205_vm0, %v1306_v2 }
0x13eb   :  { %1557 = vmatpush.msrb.mxu1 %v4004_v20 }
0x13ed   :  { %1558 = vmatpush.msrb.mxu1 %v4008_v21 }
0x13ef   :  { %1559 = vmatpush.msrb.mxu1 %v4013_v22 }
0x13f1   :  { %1560 = vmatpush.msrb.mxu1 %v4018_v24 }
0x1467   :  { %v1327_v53 = vpop.f32.mrf.mxu1 }
0x1468   :  { %v1328_v3 = vadd.f32 %v4082_v50, %v1327_v53 }
0x146a   :  { %v1331_v4 = vmul.f32 %v1330_v15, %v1328_v3  ;;  %v1412_v25 = vadd.f32 %v1328_v3, %v4208_v49 }
0x146c   :  { %v1332_v5 = vadd.f32 %v1331_v4, %v4155_v0  ;;  %v1413_v29 = vmul.f32 2.0, %v1412_v25 }
0x146e   :  { %3216 = vmatmul.msk.f32.vlgmr.msrb.gmra.mxu2 %vm205_vm0, %v1332_v5  ;;  %v1414_v33 = vadd.f32 %v1413_v29, %v4186_v17 }
0x146f   :  { %1585 = vmatpush.msrb.mxu2 %v4038_v39 }
0x1471   :  { %1586 = vmatpush.msrb.mxu2 %v4042_v40 }
0x1473   :  { %1587 = vmatpush.msrb.mxu2 %v4047_v41 }
0x1475   :  { %1588 = vmatpush.msrb.mxu2 %v4052_v42 }
0x14f1   :  { %v1353_v23 = vpop.f32.mrf.mxu2 }
0x14f2   :  { %v1354_v6 = vadd.f32 %v4034_v31, %v1353_v23 }
0x14f4   :  { %v1357_v8 = vmul.f32 1.442695, %v1354_v6  ;;  %vm1356_vm4 = vcmp.gt.f32.partialorder %v1354_v6, 0.0 }
0x14f6   :  { %3446 = vpow2.f32 %v1357_v8 }
0x14fc   :  { %v3447_v9 = vpop.eup %3446 }
0x14fd   :  { %v3217_v10 = vadd.f32 -1.0, %v3447_v9 }
0x14ff   :  { %v1360_v11 = vsel %vm1356_vm4, %v1354_v6, %v3217_v10 }
0x1500   :  { %3218 = vmatmul.msk.f32.vlgmr.msrb.gmra.mxu3 %vm205_vm0, %v1360_v11 }
0x1501   :  { %1610 = vmatpush.msrb.mxu3 %v3971_v7 }
0x1503   :  { %1611 = vmatpush.msrb.mxu3 %v3973_v57 }
0x1505   :  { %1612 = vmatpush.msrb.mxu3 %v3977_v16 }
0x1507   :  { %1613 = vmatpush.msrb.mxu3 %v3988_v28 }
0x1583   :  { %v1381_v26 = vpop.f32.mrf.mxu3 }
0x1584   :  { %v1382_v12 = vadd.f32 %v4069_v43, %v1381_v26 }
0x1586   :  { %v1385_v35 = vmul.f32 1.442695, %v1382_v12  ;;  %vm1384_vm5 = vcmp.gt.f32.partialorder %v1382_v12, 0.0 }
0x1588   :  { %3448 = vpow2.f32 %v1385_v35 }
0x158e   :  { %v3449_v13 = vpop.eup %3448 }
0x158f   :  { %v3219_v14 = vadd.f32 -1.0, %v3449_v13 }
0x1591   :  { %v1388_v18 = vsel %vm1384_vm5, %v1382_v12, %v3219_v14 }
0x1592   :  { %3220 = vmatmul.msk.f32.vlgmr.msra.gmra.mxu0 %vm205_vm0, %v1388_v18 }
0x1593   :  { %1638 = vmatpush.msra.mxu0 %v4004_v20 }
0x1595   :  { %1639 = vmatpush.msra.mxu0 %v4008_v21 }
0x1597   :  { %1640 = vmatpush.msra.mxu0 %v4013_v22 }
0x1599   :  { %1641 = vmatpush.msra.mxu0 %v4018_v24 }
0x160f   :  { %v1409_v30 = vpop.f32.mrf.mxu0 }
0x1610   :  { %v1410_v32 = vadd.f32 %v4082_v50, %v1409_v30 }
0x1612   :  { %v1415_v36 = vadd.f32 %v1414_v33, %v1410_v32 }
0x1614   :  { %v1417_v37 = vmul.f32 %v1416_v34, %v1415_v36 }
0x1616   :  { %v4255_v44 = vadd.f32 %v1417_v37, %v4155_v0 }
0x1618   :  { %3225 = vmatmul.msk.f32.vlgmr.msra.gmra.mxu1 %vm205_vm0, %v4255_v44  ;;  %v1421_v45 = vmul.f32 %v3221_v38, %v4255_v44 }
0x1619   :  { %1666 = vmatpush.msra.mxu1 %v4038_v39 }
0x161a   :  { %v1422_v46 = vsel %vm721_vm1, %v1421_v45, 0.0 }
0x161b   :  { %1423 = vadd.xlane.f32.xlu2 %v1422_v46  ;;  %1667 = vmatpush.msra.mxu1 %v4042_v40 }
0x161d   :  { %1668 = vmatpush.msra.mxu1 %v4047_v41 }
0x161f   :  { %1669 = vmatpush.msra.mxu1 %v4052_v42 }
0x168e   :  { %v1424_v17 = vpop.xlane.xlu2 %1423 }
0x168f   :  { %v1426_v0 = vperm.slane %v1424_v17, %v4024_v27 }
0x1691   :  { %1428 = vst.msk [vmem:[%s4778_s15 + $0x2] sm:$0x1] %vm730_vm2, %v1426_v0 }
0x1695   :  { %v1452_v47 = vpop.f32.mrf.mxu1 }
0x1696   :  { %v1453_v48 = vadd.f32 %v4034_v31, %v1452_v47 }
0x1698   :  { %v1456_v49 = vmul.f32 1.442695, %v1453_v48  ;;  %vm1455_vm6 = vcmp.gt.f32.partialorder %v1453_v48, 0.0 }
0x169a   :  { %3450 = vpow2.f32 %v1456_v49 }
0x16a0   :  { %v3451_v51 = vpop.eup %3450 }
0x16a1   :  { %v3226_v52 = vadd.f32 -1.0, %v3451_v51 }
0x16a3   :  { %v1459_v54 = vsel %vm1455_vm6, %v1453_v48, %v3226_v52 }
0x16a4   :  { %3227 = vmatmul.msk.f32.vlgmr.msra.gmra.mxu2 %vm205_vm0, %v1459_v54 }
0x16a5   :  { %1692 = vmatpush.msra.mxu2 %v3971_v7 }
0x16a7   :  { %1693 = vmatpush.msra.mxu2 %v3973_v57 }
0x16a9   :  { %1694 = vmatpush.msra.mxu2 %v3977_v16 }
0x16ab   :  { %1695 = vmatpush.msra.mxu2 %v3988_v28 }
0x1727   :  { %v1480_v55 = vpop.f32.mrf.mxu2 }
0x1728   :  { %v1481_v56 = vadd.f32 %v4069_v43, %v1480_v55  ;;  %v4338_v55 = vld [vmem:[#allocation9 + $0x18] sm:$0xff] }
0x172a   :  { %v1484_v19 = vmul.f32 1.442695, %v1481_v56  ;;  %vm1483_vm7 = vcmp.gt.f32.partialorder %v1481_v56, 0.0 }
0x172c   :  { %3452 = vpow2.f32 %v1484_v19  ;;  %v4344_v19 = vld [vmem:[#allocation9 + $0x8] sm:$0xff] }
0x1732   :  { %v3453_v58 = vpop.eup %3452 }
0x1733   :  { %v3228_v59 = vadd.f32 -1.0, %v3453_v58 }
0x1735   :  { %v1487_v60 = vsel %vm1483_vm7, %v1481_v56, %v3228_v59  ;;  %v4341_v56 = vld [vmem:[#allocation9 + $0x10] sm:$0xff] }
0x1736   :  { %3229 = vmatmul.msk.f32.vlgmr.msra.gmra.mxu3 %vm205_vm0, %v1487_v60 }
0x1737   :  { %1720 = vmatpush.msra.mxu3 %v4004_v20 }
0x1739   :  { %1721 = vmatpush.msra.mxu3 %v4008_v21 }
0x173b   :  { %1722 = vmatpush.msra.mxu3 %v4013_v22 }
0x173d   :  { %1723 = vmatpush.msra.mxu3 %v4018_v24 }
0x17b9   :  { %v1508_v61 = vpop.f32.mrf.mxu3 }
0x17ba   :  { %v4286_v63 = vadd.f32 %v4082_v50, %v1508_v61 }
0x17bc   :  { %v1512_v1 = vmul.f32 %v1511_v62, %v4286_v63 }
0x17be   :  { %v1513_v2 = vadd.f32 %v1512_v1, %v4255_v44 }
0x17c0   :  { %3230 = vmatmul.msk.f32.vlgmr.msrb.gmra.mxu0 %vm205_vm0, %v1513_v2 }
0x17c1   :  { %1748 = vmatpush.msrb.mxu0 %v4038_v39 }
0x17c3   :  { %1749 = vmatpush.msrb.mxu0 %v4042_v40 }
0x17c5   :  { %1750 = vmatpush.msrb.mxu0 %v4047_v41 }
0x17c7   :  { %1751 = vmatpush.msrb.mxu0 %v4052_v42 }
0x183d   :  { %v1534_v53 = vpop.f32.mrf.mxu0 }
0x183e   :  { %v1535_v15 = vadd.f32 %v4034_v31, %v1534_v53 }
0x1840   :  { %v1538_v3 = vmul.f32 1.442695, %v1535_v15  ;;  %vm1537_vm8 = vcmp.gt.f32.partialorder %v1535_v15, 0.0 }
0x1842   :  { %3454 = vpow2.f32 %v1538_v3 }
0x1848   :  { %v3455_v4 = vpop.eup %3454 }
0x1849   :  { %v3231_v5 = vadd.f32 -1.0, %v3455_v4  ;;  %v1760_v4 = vstv %s3224_s27 }
0x184b   :  { %v1541_v23 = vsel %vm1537_vm8, %v1535_v15, %v3231_v5 }
0x184c   :  { %3232 = vmatmul.msk.f32.vlgmr.msrb.gmra.mxu1 %vm205_vm0, %v1541_v23 }
0x184d   :  { %1791 = vmatpush.msrb.mxu1 %v3971_v7 }
0x184f   :  { %1792 = vmatpush.msrb.mxu1 %v3973_v57 }
0x1851   :  { %1793 = vmatpush.msrb.mxu1 %v3977_v16 }
0x1853   :  { %1794 = vmatpush.msrb.mxu1 %v3988_v28 }
0x18c9   :  { %v1562_v6 = vpop.f32.mrf.mxu1 }
0x18ca   :  { %v1563_v8 = vadd.f32 %v4069_v43, %v1562_v6 }
0x18cc   :  { %v1566_v9 = vmul.f32 1.442695, %v1563_v8  ;;  %vm1565_vm9 = vcmp.gt.f32.partialorder %v1563_v8, 0.0 }
0x18ce   :  { %3456 = vpow2.f32 %v1566_v9 }
0x18d4   :  { %v3457_v10 = vpop.eup %3456 }
0x18d5   :  { %v3233_v11 = vadd.f32 -1.0, %v3457_v10 }
0x18d7   :  { %v1569_v26 = vsel %vm1565_vm9, %v1563_v8, %v3233_v11 }
0x18d8   :  { %3234 = vmatmul.msk.f32.vlgmr.msrb.gmra.mxu2 %vm205_vm0, %v1569_v26 }
0x18d9   :  { %1819 = vmatpush.msrb.mxu2 %v4004_v20 }
0x18db   :  { %1820 = vmatpush.msrb.mxu2 %v4008_v21 }
0x18dd   :  { %1821 = vmatpush.msrb.mxu2 %v4013_v22 }
0x18df   :  { %1822 = vmatpush.msrb.mxu2 %v4018_v24 }
0x195b   :  { %v1590_v12 = vpop.f32.mrf.mxu2 }
0x195c   :  { %v4308_v35 = vadd.f32 %v4082_v50, %v1590_v12 }
0x195e   :  { %v1593_v13 = vmul.f32 %v4308_v35, %v1511_v62 }
0x1960   :  { %v1594_v14 = vadd.f32 %v1593_v13, %v4255_v44 }
0x1962   :  { %3235 = vmatmul.msk.f32.vlgmr.msrb.gmra.mxu3 %vm205_vm0, %v1594_v14  ;;  %v4386_v14 = vld [vmem:[#allocation11 + $0x18] sm:$0xff] }
0x1963   :  { %1847 = vmatpush.msrb.mxu3 %v4038_v39 }
0x1965   :  { %1848 = vmatpush.msrb.mxu3 %v4042_v40 }
0x1967   :  { %1849 = vmatpush.msrb.mxu3 %v4047_v41 }
0x1969   :  { %1850 = vmatpush.msrb.mxu3 %v4052_v42 }
0x19e5   :  { %v1615_v18 = vpop.f32.mrf.mxu3 }
0x19e6   :  { %v1616_v25 = vadd.f32 %v4034_v31, %v1615_v18  ;;  %v4389_v18 = vld [vmem:[#allocation11 + $0x10] sm:$0xff] }
0x19e8   :  { %v1619_v29 = vmul.f32 1.442695, %v1616_v25  ;;  %vm1618_vm10 = vcmp.gt.f32.partialorder %v1616_v25, 0.0 }
0x19ea   :  { %3458 = vpow2.f32 %v1619_v29  ;;  %v4395_v29 = vld [vmem:[#allocation11] sm:$0xff] }
0x19f0   :  { %v3459_v30 = vpop.eup %3458 }
0x19f1   :  { %v3236_v32 = vadd.f32 -1.0, %v3459_v30 }
0x19f3   :  { %v1622_v33 = vsel %vm1618_vm10, %v1616_v25, %v3236_v32  ;;  %v4392_v25 = vld [vmem:[#allocation11 + $0x8] sm:$0xff]  ;;  %v1855_v32 = vstv %s4398_s2  ;;  %s3318_s2 = sld [smem:[#allocation2 + $0x6]] }
0x19f4   :  { %3237 = vmatmul.msk.f32.vlgmr.msra.gmra.mxu0 %vm205_vm0, %v1622_v33 }
0x19f5   :  { %1873 = vmatpush.msra.mxu0 %v3971_v7 }
0x19f7   :  { %1874 = vmatpush.msra.mxu0 %v3973_v57  ;;  %v1674_v57 = vstv %s3222_s3  ;;  %s3296_s3 = sld [smem:[#allocation2 + $0x13]] }
0x19f9   :  { %1875 = vmatpush.msra.mxu0 %v3977_v16 }
0x19fb   :  { %1876 = vmatpush.msra.mxu0 %v3988_v28 }
0x1a71   :  { %v1643_v34 = vpop.f32.mrf.mxu0 }
0x1a72   :  { %v1644_v36 = vadd.f32 %v4069_v43, %v1643_v34 }
0x1a74   :  { %v1647_v37 = vmul.f32 1.442695, %v1644_v36  ;;  %vm1646_vm11 = vcmp.gt.f32.partialorder %v1644_v36, 0.0 }
0x1a76   :  { %3460 = vpow2.f32 %v1647_v37  ;;  %v4407_v37 = vld [vmem:[#allocation12 + $0x18] sm:$0xff] }
0x1a7c   :  { %v3461_v38 = vpop.eup %3460 }
0x1a7d   :  { %v3238_v45 = vadd.f32 -1.0, %v3461_v38  ;;  %v4410_v38 = vld [vmem:[#allocation12 + $0x10] sm:$0xff] }
0x1a7f   :  { %v1650_v46 = vsel %vm1646_vm11, %v1644_v36, %v3238_v45  ;;  %v4413_v45 = vld [vmem:[#allocation12 + $0x8] sm:$0xff] }
0x1a80   :  { %3239 = vmatmul.msk.f32.vlgmr.msra.gmra.mxu1 %vm205_vm0, %v1650_v46 }
0x1a81   :  { %1901 = vmatpush.msra.mxu1 %v4004_v20 }
0x1a83   :  { %1902 = vmatpush.msra.mxu1 %v4008_v21 }
0x1a85   :  { %1903 = vmatpush.msra.mxu1 %v4013_v22 }
0x1a87   :  { %1904 = vmatpush.msra.mxu1 %v4018_v24 }
0x1afd   :  { %v1671_v7 = vpop.f32.mrf.mxu1 }
0x1afe   :  { %v1672_v16 = vadd.f32 %v4082_v50, %v1671_v7  ;;  %v4420_v7 = vld [vmem:[%s4773_s10] ss:$0 sm:$0xff] }
0x1b00   :  { %v1675_v17 = vmul.f32 %v1674_v57, %v1672_v16 }
0x1b02   :  { %v1676_v0 = vadd.f32 %v1675_v17, %v4255_v44 }
0x1b04   :  { %3240 = vmatmul.msk.f32.vlgmr.msra.gmra.mxu2 %vm205_vm0, %v1676_v0 }
0x1b05   :  { %1929 = vmatpush.msra.mxu2 %v4038_v39 }
0x1b07   :  { %1930 = vmatpush.msra.mxu2 %v4042_v40 }
0x1b09   :  { %1931 = vmatpush.msra.mxu2 %v4047_v41 }
0x1b0b   :  { %1932 = vmatpush.msra.mxu2 %v4052_v42 }
0x1b87   :  { %v1697_v47 = vpop.f32.mrf.mxu2 }
0x1b88   :  { %v1698_v48 = vadd.f32 %v4034_v31, %v1697_v47 }
0x1b8a   :  { %v1701_v49 = vmul.f32 1.442695, %v1698_v48  ;;  %vm1700_vm12 = vcmp.gt.f32.partialorder %v1698_v48, 0.0 }
0x1b8c   :  { %3462 = vpow2.f32 %v1701_v49 }
0x1b92   :  { %v3463_v51 = vpop.eup %3462 }
0x1b93   :  { %v3241_v52 = vadd.f32 -1.0, %v3463_v51 }
0x1b95   :  { %v1704_v54 = vsel %vm1700_vm12, %v1698_v48, %v3241_v52 }
0x1b96   :  { %3242 = vmatmul.msk.f32.vlgmr.msra.gmra.mxu3 %vm205_vm0, %v1704_v54 }
0x1b97   :  { %1954 = vmatpush.msra.mxu3 %v4338_v55 }
0x1b99   :  { %1955 = vmatpush.msra.mxu3 %v4341_v56 }
0x1b9b   :  { %1956 = vmatpush.msra.mxu3 %v4344_v19 }
0x1b9d   :  { %1957 = vmatpush.msra.mxu3 %v3988_v28  ;;  %v1756_v28 = vadd.f32 %v1672_v16, %v4308_v35 }
0x1b9f   :  { %v1757_v2 = vmul.f32 2.0, %v1756_v28 }
0x1ba1   :  { %v1758_v3 = vadd.f32 %v1757_v2, %v4286_v63 }
0x1c19   :  { %v1725_v58 = vpop.f32.mrf.mxu3 }
0x1c1a   :  { %v1726_v59 = vadd.f32 %v4069_v43, %v1725_v58 }
0x1c1c   :  { %v1729_v60 = vmul.f32 1.442695, %v1726_v59  ;;  %vm1728_vm13 = vcmp.gt.f32.partialorder %v1726_v59, 0.0 }
0x1c1e   :  { %3464 = vpow2.f32 %v1729_v60 }
0x1c24   :  { %v3465_v61 = vpop.eup %3464 }
0x1c25   :  { %v3243_v62 = vadd.f32 -1.0, %v3465_v61  ;;  %v4443_v61 = vld [vmem:[#allocation12] sm:$0xff] }
0x1c27   :  { %v1732_v1 = vsel %vm1728_vm13, %v1726_v59, %v3243_v62 }
0x1c28   :  { %3244 = vmatmul.msk.f32.vlgmr.msrb.gmra.mxu0 %vm205_vm0, %v1732_v1 }
0x1c29   :  { %1982 = vmatpush.msrb.mxu0 %v4004_v20  ;;  %v3245_v20 = vld [vmem:[%s4764_s1 + $0x6] sm:$0x3] }
0x1c2b   :  { %1983 = vmatpush.msrb.mxu0 %v4008_v21 }
0x1c2d   :  { %1984 = vmatpush.msrb.mxu0 %v4013_v22 }
0x1c2f   :  { %1985 = vmatpush.msrb.mxu0 %v4018_v24 }
0x1ca5   :  { %v1753_v53 = vpop.f32.mrf.mxu0 }
0x1ca6   :  { %v1754_v15 = vadd.f32 %v4082_v50, %v1753_v53 }
0x1ca8   :  { %v1759_v5 = vadd.f32 %v1758_v3, %v1754_v15  ;;  %v4455_v3 = vld [vmem:[%s4775_s12] ss:$0 sm:$0xff]  ;;  %s3246_s12 = sld [smem:[#allocation2 + $0x3]] }
0x1caa   :  { %v1761_v23 = vmul.f32 %v1760_v4, %v1759_v5 }
0x1cac   :  { %v4361_v21 = vadd.f32 %v1761_v23, %v4255_v44 }
0x1cae   :  { %3249 = vmatmul.msk.f32.vlgmr.msrb.gmra.mxu1 %vm205_vm0, %v4361_v21  ;;  %v1765_v22 = vmul.f32 %v3245_v20, %v4361_v21 }
0x1caf   :  { %2010 = vmatpush.msrb.mxu1 %v4038_v39 }
0x1cb0   :  { %v1766_v24 = vsel %vm721_vm1, %v1765_v22, 0.0 }
0x1cb1   :  { %1767 = vadd.xlane.f32.xlu2 %v1766_v24  ;;  %2011 = vmatpush.msrb.mxu1 %v4042_v40 }
0x1cb3   :  { %2012 = vmatpush.msrb.mxu1 %v4047_v41  ;;  %v4381_v41 = vld [vmem:[#allocation9] sm:$0xff] }
0x1cb5   :  { %2013 = vmatpush.msrb.mxu1 %v4052_v42 }
0x1d24   :  { %v1768_v63 = vpop.xlane.xlu2 %1767 }
0x1d25   :  { %v1770_v44 = vperm.slane %v1768_v63, %v4024_v27  ;;  %v2018_v63 = vstv %s3246_s12 }
0x1d27   :  { %1772 = vst.msk [vmem:[%s4778_s15 + $0x3] sm:$0x1] %vm730_vm2, %v1770_v44  ;;  %v4466_v44 = vld [vmem:[%s4777_s14] ss:$0 sm:$0xff]  ;;  %s3248_s14 = sld [smem:[#allocation2 + $0x11]] }
0x1d2b   :  { %v1796_v6 = vpop.f32.mrf.mxu1 }
0x1d2c   :  { %v1797_v39 = vadd.f32 %v4034_v31, %v1796_v6 }
0x1d2e   :  { %v1800_v8 = vmul.f32 1.442695, %v1797_v39  ;;  %vm1799_vm14 = vcmp.gt.f32.partialorder %v1797_v39, 0.0 }
0x1d30   :  { %3466 = vpow2.f32 %v1800_v8 }
0x1d36   :  { %v3467_v9 = vpop.eup %3466 }
0x1d37   :  { %v3250_v10 = vadd.f32 -1.0, %v3467_v9 }
0x1d39   :  { %v1803_v40 = vsel %vm1799_vm14, %v1797_v39, %v3250_v10 }
0x1d3a   :  { %3251 = vmatmul.msk.f32.vlgmr.msrb.gmra.mxu2 %vm205_vm0, %v1803_v40 }
0x1d3b   :  { %2036 = vmatpush.msrb.mxu2 %v4338_v55 }
0x1d3d   :  { %2037 = vmatpush.msrb.mxu2 %v4341_v56 }
0x1d3f   :  { %2038 = vmatpush.msrb.mxu2 %v4344_v19 }
0x1d41   :  { %2039 = vmatpush.msrb.mxu2 %v4381_v41 }
0x1dbd   :  { %v1824_v11 = vpop.f32.mrf.mxu2 }
0x1dbe   :  { %v1825_v31 = vadd.f32 %v4069_v43, %v1824_v11 }
0x1dc0   :  { %v1828_v26 = vmul.f32 1.442695, %v1825_v31  ;;  %vm1827_vm15 = vcmp.gt.f32.partialorder %v1825_v31, 0.0 }
0x1dc2   :  { %3468 = vpow2.f32 %v1828_v26 }
0x1dc8   :  { %v3469_v12 = vpop.eup %3468 }
0x1dc9   :  { %v3252_v35 = vadd.f32 -1.0, %v3469_v12 }
0x1dcb   :  { %v1831_v13 = vsel %vm1827_vm15, %v1825_v31, %v3252_v35 }
0x1dcc   :  { %3253 = vmatmul.msk.f32.vlgmr.msrb.gmra.mxu3 %vm205_vm0, %v1831_v13 }
0x1dcd   :  { %2064 = vmatpush.msrb.mxu3 %v4386_v14 }
0x1dcf   :  { %2065 = vmatpush.msrb.mxu3 %v4389_v18 }
0x1dd1   :  { %2066 = vmatpush.msrb.mxu3 %v4392_v25 }
0x1dd3   :  { %2067 = vmatpush.msrb.mxu3 %v4395_v29 }
0x1e4f   :  { %v1852_v30 = vpop.f32.mrf.mxu3 }
0x1e50   :  { %v4402_v33 = vadd.f32 %v4082_v50, %v1852_v30 }
0x1e52   :  { %v1856_v34 = vmul.f32 %v1855_v32, %v4402_v33 }
0x1e54   :  { %v1857_v36 = vadd.f32 %v1856_v34, %v4361_v21 }
0x1e56   :  { %3254 = vmatmul.msk.f32.vlgmr.msra.gmra.mxu0 %vm205_vm0, %v1857_v36 }
0x1e57   :  { %2092 = vmatpush.msra.mxu0 %v4407_v37 }
0x1e59   :  { %2093 = vmatpush.msra.mxu0 %v4410_v38 }
0x1e5b   :  { %2094 = vmatpush.msra.mxu0 %v4413_v45 }
0x1e5d   :  { %2095 = vmatpush.msra.mxu0 %v4052_v42 }
0x1ed3   :  { %v1878_v46 = vpop.f32.mrf.mxu0 }
0x1ed4   :  { %v1879_v57 = vadd.f32 %v4420_v7, %v1878_v46 }
0x1ed6   :  { %v1882_v16 = vmul.f32 1.442695, %v1879_v57  ;;  %vm1881_vm3 = vcmp.gt.f32.partialorder %v1879_v57, 0.0 }
0x1ed8   :  { %3470 = vpow2.f32 %v1882_v16 }
0x1ede   :  { %v3471_v17 = vpop.eup %3470 }
0x1edf   :  { %v3255_v0 = vadd.f32 -1.0, %v3471_v17 }
0x1ee1   :  { %v1885_v47 = vsel %vm1881_vm3, %v1879_v57, %v3255_v0  ;;  %v2104_v0 = vstv %s3248_s14 }
0x1ee2   :  { %3256 = vmatmul.msk.f32.vlgmr.msra.gmra.mxu1 %vm205_vm0, %v1885_v47 }
0x1ee3   :  { %2135 = vmatpush.msra.mxu1 %v4338_v55 }
0x1ee5   :  { %2136 = vmatpush.msra.mxu1 %v4341_v56 }
0x1ee7   :  { %2137 = vmatpush.msra.mxu1 %v4344_v19 }
0x1ee9   :  { %2138 = vmatpush.msra.mxu1 %v4381_v41 }
0x1f5f   :  { %v1906_v42 = vpop.f32.mrf.mxu1 }
0x1f60   :  { %v1907_v48 = vadd.f32 %v4069_v43, %v1906_v42 }
0x1f62   :  { %v1910_v49 = vmul.f32 1.442695, %v1907_v48  ;;  %vm1909_vm4 = vcmp.gt.f32.partialorder %v1907_v48, 0.0 }
0x1f64   :  { %3472 = vpow2.f32 %v1910_v49 }
0x1f6a   :  { %v3473_v51 = vpop.eup %3472 }
0x1f6b   :  { %v3257_v52 = vadd.f32 -1.0, %v3473_v51 }
0x1f6d   :  { %v1913_v54 = vsel %vm1909_vm4, %v1907_v48, %v3257_v52  ;;  %v3269_v48 = vld [vmem:[%s4764_s1 + $0x8] sm:$0x3] }
0x1f6e   :  { %3258 = vmatmul.msk.f32.vlgmr.msra.gmra.mxu2 %vm205_vm0, %v1913_v54 }
0x1f6f   :  { %2163 = vmatpush.msra.mxu2 %v4386_v14 }
0x1f71   :  { %2164 = vmatpush.msra.mxu2 %v4389_v18 }
0x1f73   :  { %2165 = vmatpush.msra.mxu2 %v4392_v25 }
0x1f75   :  { %2166 = vmatpush.msra.mxu2 %v4395_v29 }
0x1ff1   :  { %v1934_v58 = vpop.f32.mrf.mxu2 }
0x1ff2   :  { %v4435_v59 = vadd.f32 %v4082_v50, %v1934_v58 }
0x1ff4   :  { %v1937_v43 = vmul.f32 %v4435_v59, %v1855_v32 }
0x1ff6   :  { %v1938_v60 = vadd.f32 %v1937_v43, %v4361_v21 }
0x1ff8   :  { %3259 = vmatmul.msk.f32.vlgmr.msra.gmra.mxu3 %vm205_vm0, %v1938_v60 }
0x1ff9   :  { %2191 = vmatpush.msra.mxu3 %v4407_v37 }
0x1ffb   :  { %2192 = vmatpush.msra.mxu3 %v4410_v38 }
0x1ffd   :  { %2193 = vmatpush.msra.mxu3 %v4413_v45 }
0x1fff   :  { %2194 = vmatpush.msra.mxu3 %v4443_v61 }
0x207b   :  { %v1959_v62 = vpop.f32.mrf.mxu3 }
0x207c   :  { %v1960_v50 = vadd.f32 %v4420_v7, %v1959_v62 }
0x207e   :  { %v1963_v1 = vmul.f32 1.442695, %v1960_v50  ;;  %vm1962_vm5 = vcmp.gt.f32.partialorder %v1960_v50, 0.0 }
0x2080   :  { %3474 = vpow2.f32 %v1963_v1 }
0x2086   :  { %v3475_v28 = vpop.eup %3474 }
0x2087   :  { %v3260_v2 = vadd.f32 -1.0, %v3475_v28 }
0x2089   :  { %v1966_v53 = vsel %vm1962_vm5, %v1960_v50, %v3260_v2 }
0x208a   :  { %3261 = vmatmul.msk.f32.vlgmr.msrb.gmra.mxu0 %vm205_vm0, %v1966_v53 }
0x208b   :  { %2217 = vmatpush.msrb.mxu0 %v4338_v55 }
0x208d   :  { %2218 = vmatpush.msrb.mxu0 %v4341_v56 }
0x208f   :  { %2219 = vmatpush.msrb.mxu0 %v4344_v19 }
0x2091   :  { %2220 = vmatpush.msrb.mxu0 %v4381_v41 }
0x2107   :  { %v1987_v15 = vpop.f32.mrf.mxu0 }
0x2108   :  { %v1988_v4 = vadd.f32 %v4455_v3, %v1987_v15 }
0x210a   :  { %v1991_v5 = vmul.f32 1.442695, %v1988_v4  ;;  %vm1990_vm6 = vcmp.gt.f32.partialorder %v1988_v4, 0.0 }
0x210c   :  { %3476 = vpow2.f32 %v1991_v5  ;;  %v2199_v5 = vstv %s4521_s17 }
0x2112   :  { %v3477_v23 = vpop.eup %3476 }
0x2113   :  { %v3262_v20 = vadd.f32 -1.0, %v3477_v23 }
0x2115   :  { %v1994_v22 = vsel %vm1990_vm6, %v1988_v4, %v3262_v20 }
0x2116   :  { %3263 = vmatmul.msk.f32.vlgmr.msrb.gmra.mxu1 %vm205_vm0, %v1994_v22 }
0x2117   :  { %2245 = vmatpush.msrb.mxu1 %v4386_v14 }
0x2119   :  { %2246 = vmatpush.msrb.mxu1 %v4389_v18 }
0x211b   :  { %2247 = vmatpush.msrb.mxu1 %v4392_v25 }
0x211d   :  { %2248 = vmatpush.msrb.mxu1 %v4395_v29 }
0x2193   :  { %v2015_v24 = vpop.f32.mrf.mxu1 }
0x2194   :  { %v2016_v6 = vadd.f32 %v4466_v44, %v2015_v24 }
0x2196   :  { %v2019_v39 = vmul.f32 %v2018_v63, %v2016_v6  ;;  %v2100_v36 = vadd.f32 %v2016_v6, %v4435_v59 }
0x2198   :  { %v2020_v8 = vadd.f32 %v2019_v39, %v4361_v21  ;;  %v2101_v46 = vmul.f32 2.0, %v2100_v36 }
0x219a   :  { %3264 = vmatmul.msk.f32.vlgmr.msrb.gmra.mxu2 %vm205_vm0, %v2020_v8  ;;  %v2102_v17 = vadd.f32 %v2101_v46, %v4402_v33 }
0x219b   :  { %2273 = vmatpush.msrb.mxu2 %v4407_v37 }
0x219d   :  { %2274 = vmatpush.msrb.mxu2 %v4410_v38 }
0x219f   :  { %2275 = vmatpush.msrb.mxu2 %v4413_v45 }
0x21a1   :  { %2276 = vmatpush.msrb.mxu2 %v4443_v61 }
0x221d   :  { %v2041_v9 = vpop.f32.mrf.mxu2 }
0x221e   :  { %v2042_v10 = vadd.f32 %v4420_v7, %v2041_v9 }
0x2220   :  { %v2045_v40 = vmul.f32 1.442695, %v2042_v10  ;;  %vm2044_vm7 = vcmp.gt.f32.partialorder %v2042_v10, 0.0 }
0x2222   :  { %3478 = vpow2.f32 %v2045_v40 }
0x2228   :  { %v3479_v11 = vpop.eup %3478 }
0x2229   :  { %v3265_v31 = vadd.f32 -1.0, %v3479_v11 }
0x222b   :  { %v2048_v26 = vsel %vm2044_vm7, %v2042_v10, %v3265_v31 }
0x222c   :  { %3266 = vmatmul.msk.f32.vlgmr.msrb.gmra.mxu3 %vm205_vm0, %v2048_v26 }
0x222d   :  { %2298 = vmatpush.msrb.mxu3 %v4338_v55 }
0x222f   :  { %2299 = vmatpush.msrb.mxu3 %v4341_v56 }
0x2231   :  { %2300 = vmatpush.msrb.mxu3 %v4344_v19 }
0x2233   :  { %2301 = vmatpush.msrb.mxu3 %v4381_v41 }
0x22af   :  { %v2069_v12 = vpop.f32.mrf.mxu3 }
0x22b0   :  { %v2070_v35 = vadd.f32 %v4455_v3, %v2069_v12 }
0x22b2   :  { %v2073_v13 = vmul.f32 1.442695, %v2070_v35  ;;  %vm2072_vm8 = vcmp.gt.f32.partialorder %v2070_v35, 0.0 }
0x22b4   :  { %3480 = vpow2.f32 %v2073_v13 }
0x22ba   :  { %v3481_v30 = vpop.eup %3480 }
0x22bb   :  { %v3267_v32 = vadd.f32 -1.0, %v3481_v30 }
0x22bd   :  { %v2076_v34 = vsel %vm2072_vm8, %v2070_v35, %v3267_v32 }
0x22be   :  { %3268 = vmatmul.msk.f32.vlgmr.msra.gmra.mxu0 %vm205_vm0, %v2076_v34 }
0x22bf   :  { %2326 = vmatpush.msra.mxu0 %v4386_v14 }
0x22c1   :  { %2327 = vmatpush.msra.mxu0 %v4389_v18 }
0x22c3   :  { %2328 = vmatpush.msra.mxu0 %v4392_v25 }
0x22c5   :  { %2329 = vmatpush.msra.mxu0 %v4395_v29 }
0x233b   :  { %v2097_v57 = vpop.f32.mrf.mxu0 }
0x233c   :  { %v2098_v16 = vadd.f32 %v4466_v44, %v2097_v57 }
0x233e   :  { %v2103_v47 = vadd.f32 %v2102_v17, %v2098_v16 }
0x2340   :  { %v2105_v42 = vmul.f32 %v2104_v0, %v2103_v47 }
0x2342   :  { %v4494_v49 = vadd.f32 %v2105_v42, %v4361_v21 }
0x2344   :  { %3273 = vmatmul.msk.f32.vlgmr.msra.gmra.mxu1 %vm205_vm0, %v4494_v49  ;;  %v2109_v51 = vmul.f32 %v3269_v48, %v4494_v49 }
0x2345   :  { %2354 = vmatpush.msra.mxu1 %v4407_v37 }
0x2346   :  { %v2110_v52 = vsel %vm721_vm1, %v2109_v51, 0.0 }
0x2347   :  { %2111 = vadd.xlane.f32.xlu0 %v2110_v52  ;;  %2355 = vmatpush.msra.mxu1 %v4410_v38 }
0x2349   :  { %2356 = vmatpush.msra.mxu1 %v4413_v45 }
0x234b   :  { %2357 = vmatpush.msra.mxu1 %v4443_v61 }
0x23ba   :  { %v2112_v33 = vpop.xlane.xlu0 %2111 }
0x23bb   :  { %v2114_v21 = vperm.slane %v2112_v33, %v4024_v27 }
0x23bd   :  { %2116 = vst.msk [vmem:[%s4778_s15 + $0x4] sm:$0x1] %vm730_vm2, %v2114_v21  ;;  %v2362_v21 = vstv %s3270_s18 }
0x23c1   :  { %v2140_v54 = vpop.f32.mrf.mxu1 }
0x23c2   :  { %v2141_v58 = vadd.f32 %v4420_v7, %v2140_v54 }
0x23c4   :  { %v2144_v59 = vmul.f32 1.442695, %v2141_v58  ;;  %vm2143_vm9 = vcmp.gt.f32.partialorder %v2141_v58, 0.0 }
0x23c6   :  { %3482 = vpow2.f32 %v2144_v59 }
0x23cc   :  { %v3483_v43 = vpop.eup %3482 }
0x23cd   :  { %v3274_v60 = vadd.f32 -1.0, %v3483_v43 }
0x23cf   :  { %v2147_v62 = vsel %vm2143_vm9, %v2141_v58, %v3274_v60 }
0x23d0   :  { %3275 = vmatmul.msk.f32.vlgmr.msra.gmra.mxu2 %vm205_vm0, %v2147_v62 }
0x23d1   :  { %2380 = vmatpush.msra.mxu2 %v4338_v55 }
0x23d3   :  { %2381 = vmatpush.msra.mxu2 %v4341_v56 }
0x23d5   :  { %2382 = vmatpush.msra.mxu2 %v4344_v19 }
0x23d7   :  { %2383 = vmatpush.msra.mxu2 %v4381_v41 }
0x2453   :  { %v2168_v50 = vpop.f32.mrf.mxu2 }
0x2454   :  { %v2169_v1 = vadd.f32 %v4455_v3, %v2168_v50 }
0x2456   :  { %v2172_v28 = vmul.f32 1.442695, %v2169_v1  ;;  %vm2171_vm10 = vcmp.gt.f32.partialorder %v2169_v1, 0.0 }
0x2458   :  { %3484 = vpow2.f32 %v2172_v28 }
0x245e   :  { %v3485_v2 = vpop.eup %3484 }
0x245f   :  { %v3276_v53 = vadd.f32 -1.0, %v3485_v2 }
0x2461   :  { %v2175_v15 = vsel %vm2171_vm10, %v2169_v1, %v3276_v53 }
0x2462   :  { %3277 = vmatmul.msk.f32.vlgmr.msra.gmra.mxu3 %vm205_vm0, %v2175_v15 }
0x2463   :  { %2408 = vmatpush.msra.mxu3 %v4386_v14 }
0x2465   :  { %2409 = vmatpush.msra.mxu3 %v4389_v18 }
0x2467   :  { %2410 = vmatpush.msra.mxu3 %v4392_v25 }
0x2469   :  { %2411 = vmatpush.msra.mxu3 %v4395_v29 }
0x24e5   :  { %v2196_v4 = vpop.f32.mrf.mxu3 }
0x24e6   :  { %v4525_v23 = vadd.f32 %v4466_v44, %v2196_v4 }
0x24e8   :  { %v2200_v20 = vmul.f32 %v2199_v5, %v4525_v23 }
0x24ea   :  { %v2201_v22 = vadd.f32 %v2200_v20, %v4494_v49 }
0x24ec   :  { %3278 = vmatmul.msk.f32.vlgmr.msrb.gmra.mxu0 %vm205_vm0, %v2201_v22 }
0x24ed   :  { %2436 = vmatpush.msrb.mxu0 %v4407_v37 }
0x24ef   :  { %2437 = vmatpush.msrb.mxu0 %v4410_v38 }
0x24f1   :  { %2438 = vmatpush.msrb.mxu0 %v4413_v45 }
0x24f3   :  { %2439 = vmatpush.msrb.mxu0 %v4443_v61 }
0x2569   :  { %v2222_v24 = vpop.f32.mrf.mxu0 }
0x256a   :  { %v2223_v63 = vadd.f32 %v4420_v7, %v2222_v24 }
0x256c   :  { %v2226_v6 = vmul.f32 1.442695, %v2223_v63  ;;  %vm2225_vm11 = vcmp.gt.f32.partialorder %v2223_v63, 0.0 }
0x256e   :  { %3486 = vpow2.f32 %v2226_v6 }
0x2574   :  { %v3487_v39 = vpop.eup %3486 }
0x2575   :  { %v3279_v8 = vadd.f32 -1.0, %v3487_v39 }
0x2577   :  { %v2229_v9 = vsel %vm2225_vm11, %v2223_v63, %v3279_v8  ;;  %v2448_v8 = vstv %s3272_s19 }
0x2578   :  { %3280 = vmatmul.msk.f32.vlgmr.msrb.gmra.mxu1 %vm205_vm0, %v2229_v9 }
0x2579   :  { %2479 = vmatpush.msrb.mxu1 %v4338_v55 }
0x257b   :  { %2480 = vmatpush.msrb.mxu1 %v4341_v56 }
0x257d   :  { %2481 = vmatpush.msrb.mxu1 %v4344_v19 }
0x257f   :  { %2482 = vmatpush.msrb.mxu1 %v4381_v41 }
0x25f5   :  { %v2250_v10 = vpop.f32.mrf.mxu1 }
0x25f6   :  { %v2251_v40 = vadd.f32 %v4455_v3, %v2250_v10 }
0x25f8   :  { %v2254_v11 = vmul.f32 1.442695, %v2251_v40  ;;  %vm2253_vm12 = vcmp.gt.f32.partialorder %v2251_v40, 0.0 }
0x25fa   :  { %3488 = vpow2.f32 %v2254_v11 }
0x2600   :  { %v3489_v31 = vpop.eup %3488 }
0x2601   :  { %v3281_v26 = vadd.f32 -1.0, %v3489_v31 }
0x2603   :  { %v2257_v12 = vsel %vm2253_vm12, %v2251_v40, %v3281_v26  ;;  %v3293_v40 = vld [vmem:[%s4764_s1 + $0xa] sm:$0x3] }
0x2604   :  { %3282 = vmatmul.msk.f32.vlgmr.msrb.gmra.mxu2 %vm205_vm0, %v2257_v12 }
0x2605   :  { %2507 = vmatpush.msrb.mxu2 %v4386_v14 }
0x2607   :  { %2508 = vmatpush.msrb.mxu2 %v4389_v18 }
0x2609   :  { %2509 = vmatpush.msrb.mxu2 %v4392_v25 }
0x260b   :  { %2510 = vmatpush.msrb.mxu2 %v4395_v29 }
0x2687   :  { %v2278_v35 = vpop.f32.mrf.mxu2 }
0x2688   :  { %v4547_v13 = vadd.f32 %v4466_v44, %v2278_v35 }
0x268a   :  { %v2281_v30 = vmul.f32 %v4547_v13, %v2199_v5 }
0x268c   :  { %v2282_v32 = vadd.f32 %v2281_v30, %v4494_v49 }
0x268e   :  { %3283 = vmatmul.msk.f32.vlgmr.msrb.gmra.mxu3 %vm205_vm0, %v2282_v32 }
0x268f   :  { %2535 = vmatpush.msrb.mxu3 %v4407_v37 }
0x2691   :  { %2536 = vmatpush.msrb.mxu3 %v4410_v38 }
0x2693   :  { %2537 = vmatpush.msrb.mxu3 %v4413_v45 }
0x2695   :  { %2538 = vmatpush.msrb.mxu3 %v4443_v61 }
0x2711   :  { %v2303_v34 = vpop.f32.mrf.mxu3 }
0x2712   :  { %v2304_v36 = vadd.f32 %v4420_v7, %v2303_v34 }
0x2714   :  { %v2307_v46 = vmul.f32 1.442695, %v2304_v36  ;;  %vm2306_vm13 = vcmp.gt.f32.partialorder %v2304_v36, 0.0 }
0x2716   :  { %3490 = vpow2.f32 %v2307_v46 }
0x271c   :  { %v3491_v57 = vpop.eup %3490 }
0x271d   :  { %v3284_v16 = vadd.f32 -1.0, %v3491_v57 }
0x271f   :  { %v2310_v17 = vsel %vm2306_vm13, %v2304_v36, %v3284_v16 }
0x2720   :  { %3285 = vmatmul.msk.f32.vlgmr.msra.gmra.mxu0 %vm205_vm0, %v2310_v17 }
0x2721   :  { %2561 = vmatpush.msra.mxu0 %v4338_v55 }
0x2723   :  { %2562 = vmatpush.msra.mxu0 %v4341_v56 }
0x2725   :  { %2563 = vmatpush.msra.mxu0 %v4344_v19 }
0x2727   :  { %2564 = vmatpush.msra.mxu0 %v4381_v41 }
0x279d   :  { %v2331_v0 = vpop.f32.mrf.mxu0 }
0x279e   :  { %v2332_v47 = vadd.f32 %v4455_v3, %v2331_v0 }
0x27a0   :  { %v2335_v42 = vmul.f32 1.442695, %v2332_v47  ;;  %vm2334_vm14 = vcmp.gt.f32.partialorder %v2332_v47, 0.0 }
0x27a2   :  { %3492 = vpow2.f32 %v2335_v42  ;;  %v2543_v42 = vstv %s4621_s26 }
0x27a8   :  { %v3493_v48 = vpop.eup %3492 }
0x27a9   :  { %v3286_v51 = vadd.f32 -1.0, %v3493_v48 }
0x27ab   :  { %v2338_v52 = vsel %vm2334_vm14, %v2332_v47, %v3286_v51 }
0x27ac   :  { %3287 = vmatmul.msk.f32.vlgmr.msra.gmra.mxu1 %vm205_vm0, %v2338_v52 }
0x27ad   :  { %2589 = vmatpush.msra.mxu1 %v4386_v14 }
0x27af   :  { %2590 = vmatpush.msra.mxu1 %v4389_v18 }
0x27b1   :  { %2591 = vmatpush.msra.mxu1 %v4392_v25 }
0x27b3   :  { %2592 = vmatpush.msra.mxu1 %v4395_v29 }
0x2829   :  { %v2359_v33 = vpop.f32.mrf.mxu1 }
0x282a   :  { %v2360_v54 = vadd.f32 %v4466_v44, %v2359_v33 }
0x282c   :  { %v2363_v58 = vmul.f32 %v2362_v21, %v2360_v54  ;;  %v2444_v22 = vadd.f32 %v2360_v54, %v4547_v13 }
0x282e   :  { %v2364_v59 = vadd.f32 %v2363_v58, %v4494_v49  ;;  %v2445_v24 = vmul.f32 2.0, %v2444_v22 }
0x2830   :  { %3288 = vmatmul.msk.f32.vlgmr.msra.gmra.mxu2 %vm205_vm0, %v2364_v59  ;;  %v2446_v39 = vadd.f32 %v2445_v24, %v4525_v23 }
0x2831   :  { %2617 = vmatpush.msra.mxu2 %v4407_v37 }
0x2833   :  { %2618 = vmatpush.msra.mxu2 %v4410_v38 }
0x2835   :  { %2619 = vmatpush.msra.mxu2 %v4413_v45 }
0x2837   :  { %2620 = vmatpush.msra.mxu2 %v4443_v61 }
0x28b3   :  { %v2385_v43 = vpop.f32.mrf.mxu2 }
0x28b4   :  { %v2386_v60 = vadd.f32 %v4420_v7, %v2385_v43 }
0x28b6   :  { %v2389_v62 = vmul.f32 1.442695, %v2386_v60  ;;  %vm2388_vm15 = vcmp.gt.f32.partialorder %v2386_v60, 0.0 }
0x28b8   :  { %3494 = vpow2.f32 %v2389_v62 }
0x28be   :  { %v3495_v50 = vpop.eup %3494 }
0x28bf   :  { %v3289_v1 = vadd.f32 -1.0, %v3495_v50 }
0x28c1   :  { %v2392_v28 = vsel %vm2388_vm15, %v2386_v60, %v3289_v1 }
0x28c2   :  { %3290 = vmatmul.msk.f32.vlgmr.msra.gmra.mxu3 %vm205_vm0, %v2392_v28 }
0x28c3   :  { %2642 = vmatpush.msra.mxu3 %v4338_v55 }
0x28c5   :  { %2643 = vmatpush.msra.mxu3 %v4341_v56 }
0x28c7   :  { %2644 = vmatpush.msra.mxu3 %v4344_v19 }
0x28c9   :  { %2645 = vmatpush.msra.mxu3 %v4381_v41 }
0x2945   :  { %v2413_v2 = vpop.f32.mrf.mxu3 }
0x2946   :  { %v2414_v53 = vadd.f32 %v4455_v3, %v2413_v2 }
0x2948   :  { %v2417_v15 = vmul.f32 1.442695, %v2414_v53  ;;  %vm2416_vm3 = vcmp.gt.f32.partialorder %v2414_v53, 0.0 }
0x294a   :  { %3496 = vpow2.f32 %v2417_v15 }
0x2950   :  { %v3497_v4 = vpop.eup %3496 }
0x2951   :  { %v3291_v5 = vadd.f32 -1.0, %v3497_v4 }
0x2953   :  { %v2420_v20 = vsel %vm2416_vm3, %v2414_v53, %v3291_v5 }
0x2954   :  { %3292 = vmatmul.msk.f32.vlgmr.msrb.gmra.mxu0 %vm205_vm0, %v2420_v20 }
0x2955   :  { %2670 = vmatpush.msrb.mxu0 %v4386_v14 }
0x2957   :  { %2671 = vmatpush.msrb.mxu0 %v4389_v18 }
0x2959   :  { %2672 = vmatpush.msrb.mxu0 %v4392_v25 }
0x295b   :  { %2673 = vmatpush.msrb.mxu0 %v4395_v29 }
0x29d1   :  { %v2441_v63 = vpop.f32.mrf.mxu0 }
0x29d2   :  { %v2442_v6 = vadd.f32 %v4466_v44, %v2441_v63 }
0x29d4   :  { %v2447_v9 = vadd.f32 %v2446_v39, %v2442_v6 }
0x29d6   :  { %v2449_v10 = vmul.f32 %v2448_v8, %v2447_v9 }
0x29d8   :  { %v4594_v11 = vadd.f32 %v2449_v10, %v4494_v49 }
0x29da   :  { %3297 = vmatmul.msk.f32.vlgmr.msrb.gmra.mxu1 %vm205_vm0, %v4594_v11  ;;  %v2453_v31 = vmul.f32 %v3293_v40, %v4594_v11 }
0x29db   :  { %2698 = vmatpush.msrb.mxu1 %v4407_v37 }
0x29dc   :  { %v2454_v26 = vsel %vm721_vm1, %v2453_v31, 0.0 }
0x29dd   :  { %2455 = vadd.xlane.f32.xlu1 %v2454_v26  ;;  %2699 = vmatpush.msrb.mxu1 %v4410_v38 }
0x29df   :  { %2700 = vmatpush.msrb.mxu1 %v4413_v45 }
0x29e1   :  { %2701 = vmatpush.msrb.mxu1 %v4443_v61 }
0x2a50   :  { %v2456_v23 = vpop.xlane.xlu1 %2455 }
0x2a51   :  { %v2458_v49 = vperm.slane %v2456_v23, %v4024_v27 }
0x2a53   :  { %2460 = vst.msk [vmem:[%s4778_s15 + $0x5] sm:$0x1] %vm730_vm2, %v2458_v49  ;;  %v2706_v49 = vstv %s3294_s0 }
0x2a57   :  { %v2484_v12 = vpop.f32.mrf.mxu1 }
0x2a58   :  { %v2485_v35 = vadd.f32 %v4420_v7, %v2484_v12 }
0x2a5a   :  { %v2488_v13 = vmul.f32 1.442695, %v2485_v35  ;;  %vm2487_vm4 = vcmp.gt.f32.partialorder %v2485_v35, 0.0 }
0x2a5c   :  { %3498 = vpow2.f32 %v2488_v13 }
0x2a62   :  { %v3499_v30 = vpop.eup %3498 }
0x2a63   :  { %v3298_v32 = vadd.f32 -1.0, %v3499_v30 }
0x2a65   :  { %v2491_v34 = vsel %vm2487_vm4, %v2485_v35, %v3298_v32 }
0x2a66   :  { %3299 = vmatmul.msk.f32.vlgmr.msrb.gmra.mxu2 %vm205_vm0, %v2491_v34 }
0x2a67   :  { %2724 = vmatpush.msrb.mxu2 %v4338_v55 }
0x2a69   :  { %2725 = vmatpush.msrb.mxu2 %v4341_v56 }
0x2a6b   :  { %2726 = vmatpush.msrb.mxu2 %v4344_v19 }
0x2a6d   :  { %2727 = vmatpush.msrb.mxu2 %v4381_v41 }
0x2ae9   :  { %v2512_v36 = vpop.f32.mrf.mxu2 }
0x2aea   :  { %v2513_v46 = vadd.f32 %v4455_v3, %v2512_v36 }
0x2aec   :  { %v2516_v57 = vmul.f32 1.442695, %v2513_v46  ;;  %vm2515_vm5 = vcmp.gt.f32.partialorder %v2513_v46, 0.0 }
0x2aee   :  { %3500 = vpow2.f32 %v2516_v57 }
0x2af4   :  { %v3501_v16 = vpop.eup %3500 }
0x2af5   :  { %v3300_v17 = vadd.f32 -1.0, %v3501_v16 }
0x2af7   :  { %v2519_v0 = vsel %vm2515_vm5, %v2513_v46, %v3300_v17 }
0x2af8   :  { %3301 = vmatmul.msk.f32.vlgmr.msrb.gmra.mxu3 %vm205_vm0, %v2519_v0 }
0x2af9   :  { %2752 = vmatpush.msrb.mxu3 %v4386_v14 }
0x2afb   :  { %2753 = vmatpush.msrb.mxu3 %v4389_v18 }
0x2afd   :  { %2754 = vmatpush.msrb.mxu3 %v4392_v25 }
0x2aff   :  { %2755 = vmatpush.msrb.mxu3 %v4395_v29 }
0x2b7b   :  { %v2540_v47 = vpop.f32.mrf.mxu3 }
0x2b7c   :  { %v4625_v48 = vadd.f32 %v4466_v44, %v2540_v47 }
0x2b7e   :  { %v2544_v51 = vmul.f32 %v2543_v42, %v4625_v48 }
0x2b80   :  { %v2545_v52 = vadd.f32 %v2544_v51, %v4594_v11 }
0x2b82   :  { %3302 = vmatmul.msk.f32.vlgmr.msra.gmra.mxu0 %vm205_vm0, %v2545_v52 }
0x2b83   :  { %2780 = vmatpush.msra.mxu0 %v4407_v37 }
0x2b85   :  { %2781 = vmatpush.msra.mxu0 %v4410_v38 }
0x2b87   :  { %2782 = vmatpush.msra.mxu0 %v4413_v45 }
0x2b89   :  { %2783 = vmatpush.msra.mxu0 %v4443_v61 }
0x2bff   :  { %v2566_v33 = vpop.f32.mrf.mxu0 }
0x2c00   :  { %v2567_v21 = vadd.f32 %v4420_v7, %v2566_v33 }
0x2c02   :  { %v2570_v54 = vmul.f32 1.442695, %v2567_v21  ;;  %vm2569_vm6 = vcmp.gt.f32.partialorder %v2567_v21, 0.0 }
0x2c04   :  { %3502 = vpow2.f32 %v2570_v54 }
0x2c0a   :  { %v3503_v58 = vpop.eup %3502 }
0x2c0b   :  { %v3303_v59 = vadd.f32 -1.0, %v3503_v58 }
0x2c0d   :  { %v2573_v43 = vsel %vm2569_vm6, %v2567_v21, %v3303_v59  ;;  %v2792_v21 = vstv %s3296_s3  ;;  %v3317_v59 = vld [vmem:[%s4764_s1 + $0xc] sm:$0x3] }
0x2c0e   :  { %3304 = vmatmul.msk.f32.vlgmr.msra.gmra.mxu1 %vm205_vm0, %v2573_v43 }
0x2c0f   :  { %2823 = vmatpush.msra.mxu1 %v4338_v55 }
0x2c11   :  { %2824 = vmatpush.msra.mxu1 %v4341_v56 }
0x2c13   :  { %2825 = vmatpush.msra.mxu1 %v4344_v19 }
0x2c15   :  { %2826 = vmatpush.msra.mxu1 %v4381_v41 }
0x2c8b   :  { %v2594_v60 = vpop.f32.mrf.mxu1 }
0x2c8c   :  { %v2595_v62 = vadd.f32 %v4455_v3, %v2594_v60 }
0x2c8e   :  { %v2598_v50 = vmul.f32 1.442695, %v2595_v62  ;;  %vm2597_vm7 = vcmp.gt.f32.partialorder %v2595_v62, 0.0 }
0x2c90   :  { %3504 = vpow2.f32 %v2598_v50 }
0x2c96   :  { %v3505_v1 = vpop.eup %3504 }
0x2c97   :  { %v3305_v28 = vadd.f32 -1.0, %v3505_v1 }
0x2c99   :  { %v2601_v2 = vsel %vm2597_vm7, %v2595_v62, %v3305_v28 }
0x2c9a   :  { %3306 = vmatmul.msk.f32.vlgmr.msra.gmra.mxu2 %vm205_vm0, %v2601_v2 }
0x2c9b   :  { %2851 = vmatpush.msra.mxu2 %v4386_v14 }
0x2c9d   :  { %2852 = vmatpush.msra.mxu2 %v4389_v18 }
0x2c9f   :  { %2853 = vmatpush.msra.mxu2 %v4392_v25 }
0x2ca1   :  { %2854 = vmatpush.msra.mxu2 %v4395_v29 }
0x2d1d   :  { %v2622_v53 = vpop.f32.mrf.mxu2 }
0x2d1e   :  { %v4647_v15 = vadd.f32 %v4466_v44, %v2622_v53 }
0x2d20   :  { %v2625_v4 = vmul.f32 %v4647_v15, %v2543_v42 }
0x2d22   :  { %v2626_v5 = vadd.f32 %v2625_v4, %v4594_v11  ;;  %v3545_v4 = vld [vmem:[#allocation9 + $0x18] sm:$0xff] }
0x2d24   :  { %3307 = vmatmul.msk.f32.vlgmr.msra.gmra.mxu3 %vm205_vm0, %v2626_v5  ;;  %v3546_v5 = vld [vmem:[#allocation9 + $0x10] sm:$0xff] }
0x2d25   :  { %2879 = vmatpush.msra.mxu3 %v4407_v37 }
0x2d27   :  { %2880 = vmatpush.msra.mxu3 %v4410_v38 }
0x2d29   :  { %2881 = vmatpush.msra.mxu3 %v4413_v45 }
0x2d2b   :  { %2882 = vmatpush.msra.mxu3 %v4443_v61 }
0x2da7   :  { %v2647_v20 = vpop.f32.mrf.mxu3 }
0x2da8   :  { %v2648_v22 = vadd.f32 %v4420_v7, %v2647_v20  ;;  %v3547_v20 = vld [vmem:[#allocation9 + $0x8] sm:$0xff] }
0x2daa   :  { %v2651_v24 = vmul.f32 1.442695, %v2648_v22  ;;  %vm2650_vm8 = vcmp.gt.f32.partialorder %v2648_v22, 0.0 }
0x2dac   :  { %3506 = vpow2.f32 %v2651_v24 }
0x2db2   :  { %v3507_v63 = vpop.eup %3506 }
0x2db3   :  { %v3308_v6 = vadd.f32 -1.0, %v3507_v63 }
0x2db5   :  { %v2654_v39 = vsel %vm2650_vm8, %v2648_v22, %v3308_v6 }
0x2db6   :  { %3309 = vmatmul.msk.f32.vlgmr.msrb.gmra.mxu0 %vm205_vm0, %v2654_v39 }
0x2db7   :  { %2905 = vmatpush.msrb.mxu0 %v4338_v55 }
0x2db9   :  { %2906 = vmatpush.msrb.mxu0 %v4341_v56 }
0x2dbb   :  { %2907 = vmatpush.msrb.mxu0 %v4344_v19 }
0x2dbd   :  { %2908 = vmatpush.msrb.mxu0 %v4381_v41 }
0x2e33   :  { %v2675_v8 = vpop.f32.mrf.mxu0 }
0x2e34   :  { %v2676_v9 = vadd.f32 %v4455_v3, %v2675_v8 }
0x2e36   :  { %v2679_v10 = vmul.f32 1.442695, %v2676_v9  ;;  %vm2678_vm9 = vcmp.gt.f32.partialorder %v2676_v9, 0.0 }
0x2e38   :  { %3508 = vpow2.f32 %v2679_v10 }
0x2e3e   :  { %v3509_v40 = vpop.eup %3508 }
0x2e3f   :  { %v3310_v31 = vadd.f32 -1.0, %v3509_v40 }
0x2e41   :  { %v2682_v26 = vsel %vm2678_vm9, %v2676_v9, %v3310_v31  ;;  %v2887_v9 = vstv %s4718_s23 }
0x2e42   :  { %3311 = vmatmul.msk.f32.vlgmr.msrb.gmra.mxu1 %vm205_vm0, %v2682_v26 }
0x2e43   :  { %2933 = vmatpush.msrb.mxu1 %v4386_v14 }
0x2e45   :  { %2934 = vmatpush.msrb.mxu1 %v4389_v18 }
0x2e47   :  { %2935 = vmatpush.msrb.mxu1 %v4392_v25 }
0x2e49   :  { %2936 = vmatpush.msrb.mxu1 %v4395_v29 }
0x2ebf   :  { %v2703_v23 = vpop.f32.mrf.mxu1 }
0x2ec0   :  { %v2704_v12 = vadd.f32 %v4466_v44, %v2703_v23 }
0x2ec2   :  { %v2707_v35 = vmul.f32 %v2706_v49, %v2704_v12 }
0x2ec4   :  { %v2708_v13 = vadd.f32 %v2707_v35, %v4594_v11 }
0x2ec6   :  { %3312 = vmatmul.msk.f32.vlgmr.msrb.gmra.mxu2 %vm205_vm0, %v2708_v13 }
0x2ec7   :  { %2961 = vmatpush.msrb.mxu2 %v4407_v37 }
0x2ec9   :  { %2962 = vmatpush.msrb.mxu2 %v4410_v38 }
0x2ecb   :  { %2963 = vmatpush.msrb.mxu2 %v4413_v45 }
0x2ecd   :  { %2964 = vmatpush.msrb.mxu2 %v4443_v61 }
0x2f49   :  { %v2729_v30 = vpop.f32.mrf.mxu2 }
0x2f4a   :  { %v2730_v32 = vadd.f32 %v4420_v7, %v2729_v30 }
0x2f4c   :  { %v2733_v34 = vmul.f32 1.442695, %v2730_v32  ;;  %vm2732_vm10 = vcmp.gt.f32.partialorder %v2730_v32, 0.0 }
0x2f4e   :  { %3510 = vpow2.f32 %v2733_v34 }
0x2f54   :  { %v3511_v36 = vpop.eup %3510 }
0x2f55   :  { %v3313_v46 = vadd.f32 -1.0, %v3511_v36 }
0x2f57   :  { %v2736_v57 = vsel %vm2732_vm10, %v2730_v32, %v3313_v46 }
0x2f58   :  { %3314 = vmatmul.msk.f32.vlgmr.msrb.gmra.mxu3 %vm205_vm0, %v2736_v57 }
0x2f59   :  { %2986 = vmatpush.msrb.mxu3 %v4338_v55  ;;  %v2788_v55 = vadd.f32 %v2704_v12, %v4647_v15 }
0x2f5b   :  { %2987 = vmatpush.msrb.mxu3 %v4341_v56  ;;  %v2789_v56 = vmul.f32 2.0, %v2788_v55 }
0x2f5d   :  { %2988 = vmatpush.msrb.mxu3 %v4344_v19  ;;  %v2790_v33 = vadd.f32 %v2789_v56, %v4625_v48 }
0x2f5f   :  { %2989 = vmatpush.msrb.mxu3 %v4381_v41 }
0x2fdb   :  { %v2757_v16 = vpop.f32.mrf.mxu3 }
0x2fdc   :  { %v2758_v17 = vadd.f32 %v4455_v3, %v2757_v16 }
0x2fde   :  { %v2761_v0 = vmul.f32 1.442695, %v2758_v17  ;;  %vm2760_vm11 = vcmp.gt.f32.partialorder %v2758_v17, 0.0 }
0x2fe0   :  { %3512 = vpow2.f32 %v2761_v0 }
0x2fe6   :  { %v3513_v47 = vpop.eup %3512 }
0x2fe7   :  { %v3315_v42 = vadd.f32 -1.0, %v3513_v47 }
0x2fe9   :  { %v2764_v51 = vsel %vm2760_vm11, %v2758_v17, %v3315_v42 }
0x2fea   :  { %3316 = vmatmul.msk.f32.vlgmr.msra.gmra.mxu0 %vm205_vm0, %v2764_v51 }
0x2feb   :  { %3014 = vmatpush.msra.mxu0 %v4386_v14 }
0x2fed   :  { %3015 = vmatpush.msra.mxu0 %v4389_v18 }
0x2fef   :  { %3016 = vmatpush.msra.mxu0 %v4392_v25 }
0x2ff1   :  { %3017 = vmatpush.msra.mxu0 %v4395_v29 }
0x3067   :  { %v2785_v19 = vpop.f32.mrf.mxu0 }
0x3068   :  { %v2786_v52 = vadd.f32 %v4466_v44, %v2785_v19  ;;  %v3050_v19 = vstv %s3318_s2 }
0x306a   :  { %v2791_v54 = vadd.f32 %v2790_v33, %v2786_v52 }
0x306c   :  { %v2793_v58 = vmul.f32 %v2792_v21, %v2791_v54 }
0x306e   :  { %v4694_v43 = vadd.f32 %v2793_v58, %v4594_v11  ;;  %v3548_v58 = vld [vmem:[%s4773_s10] ss:$0 sm:$0xff]  ;;  %s3320_s10 = sld [smem:[#allocation2 + $0x14]] }
0x3070   :  { %3321 = vmatmul.msk.f32.vlgmr.msra.gmra.mxu1 %vm205_vm0, %v4694_v43  ;;  %v2797_v60 = vmul.f32 %v3317_v59, %v4694_v43 }
0x3071   :  { %3042 = vmatpush.msra.mxu1 %v4407_v37 }
0x3072   :  { %v2798_v62 = vsel %vm721_vm1, %v2797_v60, 0.0 }
0x3073   :  { %2799 = vadd.xlane.f32.xlu2 %v2798_v62  ;;  %3043 = vmatpush.msra.mxu1 %v4410_v38 }
0x3075   :  { %3044 = vmatpush.msra.mxu1 %v4413_v45 }
0x3077   :  { %3045 = vmatpush.msra.mxu1 %v4443_v61 }
0x30e6   :  { %v2800_v48 = vpop.xlane.xlu2 %2799 }
0x30e7   :  { %v2802_v11 = vperm.slane %v2800_v48, %v4024_v27 }
0x30e9   :  { %2804 = vst.msk [vmem:[%s4778_s15 + $0x6] sm:$0x1] %vm730_vm2, %v2802_v11 }
0x30ed   :  { %v2828_v50 = vpop.f32.mrf.mxu1 }
0x30ee   :  { %v2829_v1 = vadd.f32 %v4420_v7, %v2828_v50 }
0x30f0   :  { %v2832_v28 = vmul.f32 1.442695, %v2829_v1  ;;  %vm2831_vm12 = vcmp.gt.f32.partialorder %v2829_v1, 0.0 }
0x30f2   :  { %3514 = vpow2.f32 %v2832_v28 }
0x30f8   :  { %v3515_v2 = vpop.eup %3514 }
0x30f9   :  { %v3322_v53 = vadd.f32 -1.0, %v3515_v2 }
0x30fb   :  { %v2835_v15 = vsel %vm2831_vm12, %v2829_v1, %v3322_v53 }
0x30fc   :  { %3323 = vmatmul.msk.f32.vlgmr.msra.gmra.mxu2 %vm205_vm0, %v2835_v15 }
0x30fd   :  { %3068 = vmatpush.msra.mxu2 %v3545_v4 }
0x30ff   :  { %3069 = vmatpush.msra.mxu2 %v3546_v5 }
0x3101   :  { %3070 = vmatpush.msra.mxu2 %v3547_v20 }
0x3103   :  { %3071 = vmatpush.msra.mxu2 %v4381_v41 }
0x317f   :  { %v2856_v22 = vpop.f32.mrf.mxu2 }
0x3180   :  { %v2857_v24 = vadd.f32 %v4455_v3, %v2856_v22 }
0x3182   :  { %v2860_v63 = vmul.f32 1.442695, %v2857_v24  ;;  %vm2859_vm13 = vcmp.gt.f32.partialorder %v2857_v24, 0.0 }
0x3184   :  { %3516 = vpow2.f32 %v2860_v63  ;;  %v3136_v63 = vstv %s3320_s10 }
0x318a   :  { %v3517_v6 = vpop.eup %3516 }
0x318b   :  { %v3324_v39 = vadd.f32 -1.0, %v3517_v6 }
0x318d   :  { %v2863_v8 = vsel %vm2859_vm13, %v2857_v24, %v3324_v39 }
0x318e   :  { %3325 = vmatmul.msk.f32.vlgmr.msra.gmra.mxu3 %vm205_vm0, %v2863_v8 }
0x318f   :  { %3096 = vmatpush.msra.mxu3 %v4386_v14 }
0x3191   :  { %3097 = vmatpush.msra.mxu3 %v4389_v18 }
0x3193   :  { %3098 = vmatpush.msra.mxu3 %v4392_v25 }
0x3195   :  { %3099 = vmatpush.msra.mxu3 %v4395_v29 }
0x3211   :  { %v2884_v41 = vpop.f32.mrf.mxu3 }
0x3212   :  { %v4722_v10 = vadd.f32 %v4466_v44, %v2884_v41 }
0x3214   :  { %v2888_v40 = vmul.f32 %v2887_v9, %v4722_v10 }
0x3216   :  { %v2889_v31 = vadd.f32 %v2888_v40, %v4694_v43 }
0x3218   :  { %3326 = vmatmul.msk.f32.vlgmr.msrb.gmra.mxu0 %vm205_vm0, %v2889_v31 }
0x3219   :  { %3124 = vmatpush.msrb.mxu0 %v4407_v37 }
0x321b   :  { %3125 = vmatpush.msrb.mxu0 %v4410_v38 }
0x321d   :  { %3126 = vmatpush.msrb.mxu0 %v4413_v45 }
0x321f   :  { %3127 = vmatpush.msrb.mxu0 %v4443_v61 }
0x3295   :  { %v2910_v14 = vpop.f32.mrf.mxu0 }
0x3296   :  { %v2911_v18 = vadd.f32 %v4420_v7, %v2910_v14 }
0x3298   :  { %v2914_v25 = vmul.f32 1.442695, %v2911_v18  ;;  %vm2913_vm14 = vcmp.gt.f32.partialorder %v2911_v18, 0.0 }
0x329a   :  { %3518 = vpow2.f32 %v2914_v25 }
0x32a0   :  { %v3519_v29 = vpop.eup %3518 }
0x32a1   :  { %v3327_v26 = vadd.f32 -1.0, %v3519_v29 }
0x32a3   :  { %v2917_v23 = vsel %vm2913_vm14, %v2911_v18, %v3327_v26 }
0x32a4   :  { %3328 = vmatmul.msk.f32.vlgmr.msrb.gmra.mxu1 %vm205_vm0, %v2917_v23 }
0x3321   :  { %v2938_v49 = vpop.f32.mrf.mxu1 }
0x3322   :  { %v2939_v37 = vadd.f32 %v4455_v3, %v2938_v49 }
0x3324   :  { %v2942_v12 = vmul.f32 1.442695, %v2939_v37  ;;  %vm2941_vm15 = vcmp.gt.f32.partialorder %v2939_v37, 0.0 }
0x3326   :  { %3520 = vpow2.f32 %v2942_v12 }
0x332c   :  { %v3521_v38 = vpop.eup %3520 }
0x332d   :  { %v3329_v45 = vadd.f32 -1.0, %v3521_v38 }
0x332f   :  { %v2945_v61 = vsel %vm2941_vm15, %v2939_v37, %v3329_v45 }
0x3330   :  { %3330 = vmatmul.msk.f32.vlgmr.msrb.gmra.mxu2 %vm205_vm0, %v2945_v61 }
0x33b3   :  { %v2966_v35 = vpop.f32.mrf.mxu2 }
0x33b4   :  { %v2967_v13 = vadd.f32 %v4466_v44, %v2966_v35 }
0x33b6   :  { %v2969_v30 = vmul.f32 %v2967_v13, %v2887_v9 }
0x33b8   :  { %v2970_v32 = vadd.f32 %v2969_v30, %v4694_v43 }
0x33ba   :  { %3331 = vmatmul.msk.f32.vlgmr.msrb.gmra.mxu3 %vm205_vm0, %v2970_v32 }
0x343d   :  { %v2991_v34 = vpop.f32.mrf.mxu3 }
0x343e   :  { %v2992_v36 = vadd.f32 %v4420_v7, %v2991_v34 }
0x3440   :  { %v2995_v46 = vmul.f32 1.442695, %v2992_v36  ;;  %vm2994_vm3 = vcmp.gt.f32.partialorder %v2992_v36, 0.0 }
0x3442   :  { %3522 = vpow2.f32 %v2995_v46 }
0x3448   :  { %v3523_v57 = vpop.eup %3522 }
0x3449   :  { %v3332_v16 = vadd.f32 -1.0, %v3523_v57 }
0x344b   :  { %v2998_v17 = vsel %vm2994_vm3, %v2992_v36, %v3332_v16 }
0x344c   :  { %3333 = vmatmul.msk.f32.vlgmr.msra.gmra.mxu0 %vm205_vm0, %v2998_v17 }
0x34c9   :  { %v3019_v0 = vpop.f32.mrf.mxu0 }
0x34ca   :  { %v3020_v47 = vadd.f32 %v4455_v3, %v3019_v0 }
0x34cc   :  { %v3023_v42 = vmul.f32 1.442695, %v3020_v47  ;;  %vm3022_vm4 = vcmp.gt.f32.partialorder %v3020_v47, 0.0 }
0x34ce   :  { %3524 = vpow2.f32 %v3023_v42 }
0x34d4   :  { %v3525_v51 = vpop.eup %3524 }
0x34d5   :  { %v3334_v55 = vadd.f32 -1.0, %v3525_v51 }
0x34d7   :  { %v3026_v56 = vsel %vm3022_vm4, %v3020_v47, %v3334_v55 }
0x34d8   :  { %3335 = vmatmul.msk.f32.vlgmr.msra.gmra.mxu1 %vm205_vm0, %v3026_v56 }
0x3555   :  { %v3047_v7 = vpop.f32.mrf.mxu1 }
0x3556   :  { %v3048_v52 = vadd.f32 %v4466_v44, %v3047_v7 }
0x3558   :  { %v3051_v33 = vmul.f32 %v3050_v19, %v3048_v52  ;;  %v3132_v4 = vadd.f32 %v3048_v52, %v2967_v13 }
0x355a   :  { %v3052_v21 = vadd.f32 %v3051_v33, %v4694_v43  ;;  %v3133_v5 = vmul.f32 2.0, %v3132_v4 }
0x355c   :  { %3336 = vmatmul.msk.f32.vlgmr.msra.gmra.mxu2 %vm205_vm0, %v3052_v21  ;;  %v3134_v24 = vadd.f32 %v3133_v5, %v4722_v10 }
0x35df   :  { %v3073_v54 = vpop.f32.mrf.mxu2 }
0x35e0   :  { %v3074_v59 = vadd.f32 %v3548_v58, %v3073_v54 }
0x35e2   :  { %v3077_v60 = vmul.f32 1.442695, %v3074_v59  ;;  %vm3076_vm5 = vcmp.gt.f32.partialorder %v3074_v59, 0.0 }
0x35e4   :  { %3526 = vpow2.f32 %v3077_v60 }
0x35ea   :  { %v3527_v62 = vpop.eup %3526 }
0x35eb   :  { %v3337_v48 = vadd.f32 -1.0, %v3527_v62 }
0x35ed   :  { %v3080_v11 = vsel %vm3076_vm5, %v3074_v59, %v3337_v48 }
0x35ee   :  { %3338 = vmatmul.msk.f32.vlgmr.msra.gmra.mxu3 %vm205_vm0, %v3080_v11 }
0x3671   :  { %v3101_v50 = vpop.f32.mrf.mxu3 }
0x3672   :  { %v3102_v1 = vadd.f32 %v4455_v3, %v3101_v50  ;;  %v3341_v3 = vld [vmem:[%s4764_s1 + $0xe] sm:$0x3] }
0x3674   :  { %v3105_v28 = vmul.f32 1.442695, %v3102_v1  ;;  %vm3104_vm6 = vcmp.gt.f32.partialorder %v3102_v1, 0.0 }
0x3676   :  { %3528 = vpow2.f32 %v3105_v28 }
0x367c   :  { %v3529_v2 = vpop.eup %3528 }
0x367d   :  { %v3339_v53 = vadd.f32 -1.0, %v3529_v2 }
0x367f   :  { %v3108_v15 = vsel %vm3104_vm6, %v3102_v1, %v3339_v53 }
0x3680   :  { %3340 = vmatmul.msk.f32.vlgmr.msrb.gmra.mxu0 %vm205_vm0, %v3108_v15 }
0x36fd   :  { %v3129_v20 = vpop.f32.mrf.mxu0 }
0x36fe   :  { %v3130_v22 = vadd.f32 %v4466_v44, %v3129_v20 }
0x3700   :  { %v3135_v6 = vadd.f32 %v3134_v24, %v3130_v22 }
0x3702   :  { %v3137_v39 = vmul.f32 %v3136_v63, %v3135_v6 }
0x3704   :  { %v3138_v8 = vadd.f32 %v3137_v39, %v4694_v43 }
0x3706   :  { %v3141_v41 = vmul.f32 %v3341_v3, %v3138_v8 }
0x3708   :  { %v3142_v9 = vsel %vm721_vm1, %v3141_v41, 0.0 }
0x3709   :  { %3143 = vadd.xlane.f32.xlu0 %v3142_v9 }
0x377c   :  { %v3144_v40 = vpop.xlane.xlu0 %3143 }
0x377d   :  { %v3146_v31 = vperm.slane %v3144_v40, %v4024_v27 }
0x377f   :  { %3148 = vst.msk [vmem:[%s4778_s15 + $0x7] sm:$0x1] %vm730_vm2, %v3146_v31 }
0x3780   :  { %3153 = vsyncpa [#allocation3], 1 }
0x3781   :  { %3154 = vsyncpa [#allocation7], 1 }
0x3782   :  { %3155 = vsyncpa [#allocation10], 1 }
0x3783   :  { %3156 = vsyncpa [#allocation13], 1 }
0x3784   :  { %3157 = vsyncpa [#allocation4], 1 }

</bundles_post_ra>
